<compile_context>
chip_gen: v6e
topology: v6e:2x2x1
jax: 0.10.0
libtpu: 0.0.40
codegen_flags: <defaults>
</compile_context>

<pallas_src>
import functools

import jax
import jax.numpy as jnp
from jax.experimental import pallas as pl
from jax.experimental.pallas import tpu as pltpu


def _convlstm_kernel(xpad_ref, w_ref, b_ref, c_ref, out_ref, *, K, H, W, Cc, Ch):
    """One batch element per grid step.

    xpad_ref : (1, H+2p, W+2p, Cc)   zero-padded [x ; h] concat (matmul dtype)
    w_ref    : (K*K*Cc, 4*Ch)        im2col-flattened conv weight (matmul dtype)
    b_ref    : (1, 4*Ch)             conv bias (f32)
    c_ref    : (1, H*W, Ch)          previous cell state (f32)
    out_ref  : (1, H*W, 2*Ch)        fused output [h_new | c_new] (f32)
    """
    HW = H * W

    # im2col slab: only K strided width-window relayouts (one per kw); the kh
    # shifts are free leading-dim slices of each window.
    #   slab[h*W + w, (kw*K + kh)*Cc + c] == xpad[h+kh, w+kw, c]
    cols = []
    for kw in range(K):
        s = xpad_ref[0, :, kw:kw + W, :]        # (H+2p, W, Cc)  one relayout
        for kh in range(K):
            cols.append(s[kh:kh + H])           # (H, W, Cc)     free view
    slab = jnp.concatenate(cols, axis=-1).reshape(HW, K * K * Cc)

    # Single fat MXU matmul (contraction K*K*Cc), f32 accumulation.
    gates = jnp.dot(slab, w_ref[...], preferred_element_type=jnp.float32)
    gates = gates + b_ref[...]                  # (HW, 4*Ch) f32, bias broadcast

    # Fused nonlinearities: one wide sigmoid (i|f|o) + one tanh (g), all f32.
    ifo = jax.nn.sigmoid(gates[:, :3 * Ch])
    g_gate = jnp.tanh(gates[:, 3 * Ch:])

    i_gate = ifo[:, 0 * Ch:1 * Ch]
    f_gate = ifo[:, 1 * Ch:2 * Ch]
    o_gate = ifo[:, 2 * Ch:3 * Ch]

    c_prev = c_ref[0].astype(jnp.float32)       # (HW, Ch)
    c_new = f_gate * c_prev + i_gate * g_gate
    h_new = o_gate * jnp.tanh(c_new)

    # One lane-dense (2*Ch-wide) store; wrapper splits h / c.
    out_ref[0] = jnp.concatenate([h_new, c_new], axis=-1).astype(out_ref.dtype)


def conv_lstm_cell(x, weight_hwio, bias, hidden_state=None, *,
                   matmul_dtype=jnp.bfloat16):
    """NHWC ConvLSTM cell step (matches the PyTorch module's forward).

    x           : (B, H, W, Cin)         float32
    weight_hwio : (K, K, Cin+Ch, 4*Ch)   float32, out channels ordered i|f|o|g
    bias        : (4*Ch,)                float32
    hidden_state: optional (h, c), each (B, H, W, Ch); zeros if None
    matmul_dtype: dtype fed to the MXU (bf16 default; f32 for exactness)
    returns (h_new, c_new), each (B, H, W, Ch)
    """
    B, H, W, Cin = x.shape
    K, K2, Cc, C4 = weight_hwio.shape
    Ch = C4 // 4
    assert K == K2 and Cc == Cin + Ch
    pad = K // 2
    HW = H * W

    if hidden_state is None:
        h_state = jnp.zeros((B, H, W, Ch), x.dtype)
        c_state = jnp.zeros((B, H, W, Ch), x.dtype)
    else:
        h_state, c_state = hidden_state

    # ---- wrapper-side layout plumbing (cheap XLA ops, keeps the kernel lean) ----
    combined = jnp.concatenate([x, h_state], axis=-1)                 # (B,H,W,Cc)
    combined_pad = jnp.pad(
        combined, ((0, 0), (pad, pad), (pad, pad), (0, 0))).astype(matmul_dtype)
    # im2col-flattened weight: w_flat[(kw*K + kh)*Cc + c, o] == W[kh, kw, c, o]
    w_flat = weight_hwio.transpose(1, 0, 2, 3).reshape(K * K * Cc, C4)
    w_flat = w_flat.astype(matmul_dtype)
    bias2d = bias.reshape(1, C4).astype(jnp.float32)
    c_flat = c_state.reshape(B, HW, Ch).astype(jnp.float32)

    kernel = functools.partial(_convlstm_kernel, K=K, H=H, W=W, Cc=Cc, Ch=Ch)

    # Advisory cost estimate so XLA schedules around the custom call sensibly.
    mm_itemsize = jnp.dtype(matmul_dtype).itemsize
    flops = 2 * B * HW * (K * K * Cc) * C4 + 8 * B * HW * Ch
    transcendentals = B * HW * 5 * Ch                     # 3Ch sigm + 2*Ch tanh
    bytes_accessed = (B * (H + 2 * pad) * (W + 2 * pad) * Cc * mm_itemsize
                      + K * K * Cc * C4 * mm_itemsize
                      + C4 * 4
                      + B * HW * Ch * 4
                      + B * HW * 2 * Ch * 4)
    cost = pl.CostEstimate(flops=flops, transcendentals=transcendentals,
                           bytes_accessed=bytes_accessed)

    out = pl.pallas_call(
        kernel,
        grid=(B,),
        in_specs=[
            pl.BlockSpec((1, H + 2 * pad, W + 2 * pad, Cc),
                         lambda b: (b, 0, 0, 0)),
            pl.BlockSpec((K * K * Cc, C4), lambda b: (0, 0)),
            pl.BlockSpec((1, C4), lambda b: (0, 0)),
            pl.BlockSpec((1, HW, Ch), lambda b: (b, 0, 0)),
        ],
        out_specs=pl.BlockSpec((1, HW, 2 * Ch), lambda b: (b, 0, 0)),
        out_shape=jax.ShapeDtypeStruct((B, HW, 2 * Ch), jnp.float32),
        compiler_params=pltpu.CompilerParams(
            dimension_semantics=("parallel",)),
        cost_estimate=cost,
    )(combined_pad, w_flat, bias2d, c_flat)

    h_new = out[:, :, :Ch].reshape(B, H, W, Ch).astype(x.dtype)
    c_new = out[:, :, Ch:].reshape(B, H, W, Ch).astype(x.dtype)
    return h_new, c_new


def _reference(x, weight_hwio, bias, hidden_state=None):
    """Pure-JAX reference (mirrors the PyTorch forward, NHWC)."""
    B, H, W, Cin = x.shape
    C4 = weight_hwio.shape[-1]
    Ch = C4 // 4
    if hidden_state is None:
        h_state = jnp.zeros((B, H, W, Ch), x.dtype)
        c_state = jnp.zeros((B, H, W, Ch), x.dtype)
    else:
        h_state, c_state = hidden_state
    combined = jnp.concatenate([x, h_state], axis=-1)
    gates = jax.lax.conv_general_dilated(
        combined, weight_hwio, window_strides=(1, 1), padding="SAME",
        dimension_numbers=("NHWC", "HWIO", "NHWC")) + bias
    i_g, f_g, o_g, g_g = jnp.split(gates, 4, axis=-1)
    i_g = jax.nn.sigmoid(i_g)
    f_g = jax.nn.sigmoid(f_g)
    o_g = jax.nn.sigmoid(o_g)
    g_g = jnp.tanh(g_g)
    c_new = f_g * c_state + i_g * g_g
    h_new = o_g * jnp.tanh(c_new)
    return h_new, c_new


if __name__ == "__main__":
    # Small, deterministic example: B=2, Cin=4, Ch=32, H=W=16, K=3.
    B, Cin, Ch, H, W, K = 2, 4, 32, 16, 16, 3
    Cc, C4 = Cin + Ch, 4 * Ch

    key = jax.random.PRNGKey(0)
    kx, kh, kc, kw_, kb = jax.random.split(key, 5)

    x = jax.random.normal(kx, (B, H, W, Cin), jnp.float32)
    h0 = jax.random.normal(kh, (B, H, W, Ch), jnp.float32) * 0.1
    c0 = jax.random.normal(kc, (B, H, W, Ch), jnp.float32) * 0.1

    # Deterministic "Conv2d" parameters (HWIO layout; output channels ordered
    # [i | f | o | g] exactly like torch chunk(4, dim=1)).
    fan_in = Cc * K * K
    bound = 1.0 / (fan_in ** 0.5)
    weight = jax.random.uniform(kw_, (K, K, Cc, C4), jnp.float32,
                                minval=-bound, maxval=bound)
    bias = jax.random.uniform(kb, (C4,), jnp.float32,
                              minval=-bound, maxval=bound)

    h_expect, c_expect = _reference(x, weight, bias, hidden_state=(h0, c0))

    # Exact path (f32 MXU operands) — tight tolerance.
    h32, c32 = conv_lstm_cell(x, weight, bias, hidden_state=(h0, c0),
                              matmul_dtype=jnp.float32)
    jax.block_until_ready((h32, c32))
    assert jnp.allclose(h32, h_expect, atol=1e-5, rtol=1e-5)
    assert jnp.allclose(c32, c_expect, atol=1e-5, rtol=1e-5)

    # Fast path (bf16 MXU operands, f32 accumulate) — default; loosened tol.
    hbf, cbf = conv_lstm_cell(x, weight, bias, hidden_state=(h0, c0))
    jax.block_until_ready((hbf, cbf))
    assert jnp.allclose(hbf, h_expect, atol=3e-2, rtol=3e-2)
    assert jnp.allclose(cbf, c_expect, atol=3e-2, rtol=3e-2)

    # Also exercise the default (zero) hidden-state path.
    h_z, c_z = conv_lstm_cell(x, weight, bias, hidden_state=None)
    jax.block_until_ready((h_z, c_z))

    print("KERNEL_OK")
</pallas_src>

<mosaic_0001>
module attributes {stable_mosaic.version = 11 : i64} {
  func.func @_convlstm_kernel(%arg0: i32, %arg1: memref<1x18x18x36xf32, #tpu.memory_space<vmem>>, %arg2: memref<324x128xf32, #tpu.memory_space<vmem>>, %arg3: memref<1x128xf32, #tpu.memory_space<vmem>>, %arg4: memref<1x256x32xf32, #tpu.memory_space<vmem>>, %arg5: memref<1x256x64xf32, #tpu.memory_space<vmem>>) attributes {dimension_semantics = [#tpu.dimension_semantics<parallel>], iteration_bounds = array<i64: 2>, scalar_prefetch = 0 : i64, scratch_operands = 0 : i64, tpu.core_type = #tpu.core_type<tc>, window_params = [{transform_indices = @transform_0, window_bounds = array<i64: 1, 18, 18, 36>}, {pipeline_mode = #tpu.pipeline_mode<synchronous>, transform_indices = @transform_1, window_bounds = array<i64: 324, 128>}, {pipeline_mode = #tpu.pipeline_mode<synchronous>, transform_indices = @transform_2, window_bounds = array<i64: 1, 128>}, {transform_indices = @transform_3, window_bounds = array<i64: 1, 256, 32>}, {transform_indices = @transform_4, window_bounds = array<i64: 1, 256, 64>}]} {
    %c0 = arith.constant 0 : index
    %c0_0 = arith.constant 0 : index
    %c0_1 = arith.constant 0 : index
    %c0_2 = arith.constant 0 : index
    %0 = vector.load %arg1[%c0, %c0_0, %c0_1, %c0_2] : memref<1x18x18x36xf32, #tpu.memory_space<vmem>>, vector<1x18x16x36xf32>
    %1 = vector.shape_cast %0 : vector<1x18x16x36xf32> to vector<18x16x36xf32>
    %2 = vector.extract_strided_slice %1 {offsets = [0, 0, 0], sizes = [16, 16, 36], strides = [1, 1, 1]} : vector<18x16x36xf32> to vector<16x16x36xf32>
    %3 = vector.extract_strided_slice %1 {offsets = [1, 0, 0], sizes = [16, 16, 36], strides = [1, 1, 1]} : vector<18x16x36xf32> to vector<16x16x36xf32>
    %4 = vector.extract_strided_slice %1 {offsets = [2, 0, 0], sizes = [16, 16, 36], strides = [1, 1, 1]} : vector<18x16x36xf32> to vector<16x16x36xf32>
    %c0_3 = arith.constant 0 : index
    %c0_4 = arith.constant 0 : index
    %c1 = arith.constant 1 : index
    %c0_5 = arith.constant 0 : index
    %5 = vector.load %arg1[%c0_3, %c0_4, %c1, %c0_5] : memref<1x18x18x36xf32, #tpu.memory_space<vmem>>, vector<1x18x16x36xf32>
    %6 = vector.shape_cast %5 : vector<1x18x16x36xf32> to vector<18x16x36xf32>
    %7 = vector.extract_strided_slice %6 {offsets = [0, 0, 0], sizes = [16, 16, 36], strides = [1, 1, 1]} : vector<18x16x36xf32> to vector<16x16x36xf32>
    %8 = vector.extract_strided_slice %6 {offsets = [1, 0, 0], sizes = [16, 16, 36], strides = [1, 1, 1]} : vector<18x16x36xf32> to vector<16x16x36xf32>
    %9 = vector.extract_strided_slice %6 {offsets = [2, 0, 0], sizes = [16, 16, 36], strides = [1, 1, 1]} : vector<18x16x36xf32> to vector<16x16x36xf32>
    %c0_6 = arith.constant 0 : index
    %c0_7 = arith.constant 0 : index
    %c2 = arith.constant 2 : index
    %c0_8 = arith.constant 0 : index
    %10 = vector.load %arg1[%c0_6, %c0_7, %c2, %c0_8] : memref<1x18x18x36xf32, #tpu.memory_space<vmem>>, vector<1x18x16x36xf32>
    %11 = vector.shape_cast %10 : vector<1x18x16x36xf32> to vector<18x16x36xf32>
    %12 = vector.extract_strided_slice %11 {offsets = [0, 0, 0], sizes = [16, 16, 36], strides = [1, 1, 1]} : vector<18x16x36xf32> to vector<16x16x36xf32>
    %13 = vector.extract_strided_slice %11 {offsets = [1, 0, 0], sizes = [16, 16, 36], strides = [1, 1, 1]} : vector<18x16x36xf32> to vector<16x16x36xf32>
    %14 = vector.extract_strided_slice %11 {offsets = [2, 0, 0], sizes = [16, 16, 36], strides = [1, 1, 1]} : vector<18x16x36xf32> to vector<16x16x36xf32>
    %15 = tpu.concatenate %2, %3, %4, %7, %8, %9, %12, %13, %14 in 2 : vector<16x16x36xf32>, vector<16x16x36xf32>, vector<16x16x36xf32>, vector<16x16x36xf32>, vector<16x16x36xf32>, vector<16x16x36xf32>, vector<16x16x36xf32>, vector<16x16x36xf32>, vector<16x16x36xf32> -> vector<16x16x324xf32>
    %16 = vector.shape_cast %15 : vector<16x16x324xf32> to vector<256x324xf32>
    %c0_9 = arith.constant 0 : index
    %c0_10 = arith.constant 0 : index
    %17 = vector.load %arg2[%c0_9, %c0_10] : memref<324x128xf32, #tpu.memory_space<vmem>>, vector<324x128xf32>
    %cst = arith.constant dense<0.000000e+00> : vector<256x128xf32>
    %18 = tpu.matmul %16, %17, %cst {dimension_numbers = #tpu.dot_dimension_numbers<[1], [0], [0], [1], [0, 0, 1, 1], [], []>} : vector<256x324xf32>, vector<324x128xf32>, vector<256x128xf32> -> vector<256x128xf32>
    %c0_11 = arith.constant 0 : index
    %c0_12 = arith.constant 0 : index
    %19 = vector.load %arg3[%c0_11, %c0_12] : memref<1x128xf32, #tpu.memory_space<vmem>>, vector<1x128xf32>
    %20 = vector.broadcast %19 : vector<1x128xf32> to vector<256x128xf32>
    %21 = arith.addf %18, %20 : vector<256x128xf32>
    %22 = vector.extract_strided_slice %21 {offsets = [0, 0], sizes = [256, 96], strides = [1, 1]} : vector<256x128xf32> to vector<256x96xf32>
    %23 = arith.negf %22 : vector<256x96xf32>
    %24 = math.exp %23 : vector<256x96xf32>
    %cst_13 = arith.constant 1.000000e+00 : f32
    %25 = vector.broadcast %cst_13 : f32 to vector<256x96xf32>
    %26 = arith.addf %25, %24 : vector<256x96xf32>
    %27 = arith.divf %25, %26 : vector<256x96xf32>
    %28 = vector.extract_strided_slice %21 {offsets = [0, 96], sizes = [256, 32], strides = [1, 1]} : vector<256x128xf32> to vector<256x32xf32>
    %29 = math.tanh %28 : vector<256x32xf32>
    %30 = vector.extract_strided_slice %27 {offsets = [0, 0], sizes = [256, 32], strides = [1, 1]} : vector<256x96xf32> to vector<256x32xf32>
    %31 = vector.extract_strided_slice %27 {offsets = [0, 32], sizes = [256, 32], strides = [1, 1]} : vector<256x96xf32> to vector<256x32xf32>
    %32 = vector.extract_strided_slice %27 {offsets = [0, 64], sizes = [256, 32], strides = [1, 1]} : vector<256x96xf32> to vector<256x32xf32>
    %c0_14 = arith.constant 0 : index
    %c0_15 = arith.constant 0 : index
    %c0_16 = arith.constant 0 : index
    %33 = vector.load %arg4[%c0_14, %c0_15, %c0_16] : memref<1x256x32xf32, #tpu.memory_space<vmem>>, vector<1x256x32xf32>
    %34 = vector.shape_cast %33 : vector<1x256x32xf32> to vector<256x32xf32>
    %35 = arith.mulf %31, %34 : vector<256x32xf32>
    %36 = arith.mulf %30, %29 : vector<256x32xf32>
    %37 = arith.addf %35, %36 : vector<256x32xf32>
    %38 = math.tanh %37 : vector<256x32xf32>
    %39 = arith.mulf %32, %38 : vector<256x32xf32>
    %40 = tpu.concatenate %39, %37 in 1 : vector<256x32xf32>, vector<256x32xf32> -> vector<256x64xf32>
    %c0_17 = arith.constant 0 : index
    %c0_18 = arith.constant 0 : index
    %c0_19 = arith.constant 0 : index
    %41 = vector.load %arg5[%c0_17, %c0_18, %c0_19] : memref<1x256x64xf32, #tpu.memory_space<vmem>>, vector<1x256x64xf32>
    %42 = vector.shape_cast %41 : vector<1x256x64xf32> to vector<256x64xf32>
    %43 = vector.shape_cast %40 : vector<256x64xf32> to vector<1x256x64xf32>
    tpu.vector_store %arg5[%c0_17, %c0_18, %c0_19], %43 {strides = array<i32>} : memref<1x256x64xf32, #tpu.memory_space<vmem>>, vector<1x256x64xf32>,
    return
  }
  func.func @transform_0(%arg0: i32) -> (i32, i32, i32, i32) {
    %c0_i32 = arith.constant 0 : i32
    %c0_i32_0 = arith.constant 0 : i32
    %c0_i32_1 = arith.constant 0 : i32
    %c0_i32_2 = arith.constant 0 : i32
    return %arg0, %c0_i32, %c0_i32_0, %c0_i32_1 : i32, i32, i32, i32
  }
  func.func @transform_1(%arg0: i32) -> (i32, i32) {
    %c0_i32 = arith.constant 0 : i32
    %c0_i32_0 = arith.constant 0 : i32
    %c0_i32_1 = arith.constant 0 : i32
    return %c0_i32, %c0_i32_0 : i32, i32
  }
  func.func @transform_2(%arg0: i32) -> (i32, i32) {
    %c0_i32 = arith.constant 0 : i32
    %c0_i32_0 = arith.constant 0 : i32
    %c0_i32_1 = arith.constant 0 : i32
    return %c0_i32, %c0_i32_0 : i32, i32
  }
  func.func @transform_3(%arg0: i32) -> (i32, i32, i32) {
    %c0_i32 = arith.constant 0 : i32
    %c0_i32_0 = arith.constant 0 : i32
    %c0_i32_1 = arith.constant 0 : i32
    return %arg0, %c0_i32, %c0_i32_0 : i32, i32, i32
  }
  func.func @transform_4(%arg0: i32) -> (i32, i32, i32) {
    %c0_i32 = arith.constant 0 : i32
    %c0_i32_0 = arith.constant 0 : i32
    %c0_i32_1 = arith.constant 0 : i32
    return %arg0, %c0_i32, %c0_i32_0 : i32, i32, i32
  }
}

</mosaic_0001>

<bundles_post_ra>
// kernel: tpu_custom_call.1
= control target key start
LH: loop header
LB: loop body
LE: loop exit
PB: predicated region body
PF: predicated region fallthrough
CT: control target
= control target key end

     0   :  { %s4326_s15 = smov 0   ;;  %s6775_s0 = inlined_call_operand.vmem [shape: f32[2,18,18,36], index: 0, kind: input, shape index: {}]   ;;  %s6776_s1 = inlined_call_operand.vmem [shape: f32[324,128], index: 1, kind: input, shape index: {}]   ;;  %s6777_s2 = inlined_call_operand.vmem [shape: f32[1,128], index: 2, kind: input, shape index: {}]   ;;  %s6778_s3 = inlined_call_operand.vmem [shape: f32[2,256,32], index: 3, kind: input, shape index: {}]   ;;  %s6779_s4 = inlined_call_operand.vmem [shape: f32[2,256,64], index: 4, kind: output, shape index: {}]  }
   0x1 LB: > { %s3251_s16 = sadd.s32 4294967295, %s4289_s15   ;;  %p3255_p0 = scmp.ge.s32.totalorder %s4289_s15, 1  ;;  %s4289_s15 = sphi %s4326_s15, %s14_s15  }
   0x2   : > { %p172_p1 = scmp.lt.s32.totalorder %s4289_s15, 3 }
   0x4   : > { %p173_p2 = pnand %p3255_p0, %p172_p1 }
   0x6   : > { %176 = sbr.rel (%p173_p2) target bundleno = 1185 (0x4a1), region = 36 }
   0xb   : > { %p203_p3 = scmp.lt.s32.totalorder %s3251_s16, 1  ;;  %s4291_s21 = smov 36   ;;  %v1479_v48 = vld [vmem:[%s6776_s1 + $0x78] sm:$0xff]  ;;  %v4293_v49 = vmov 0.0   ;;  %v1478_v50 = vld [vmem:[%s6776_s1 + $0x70] sm:$0xff]  ;;  %v1477_v51 = vld [vmem:[%s6776_s1 + $0x68] sm:$0xff] }
   0xc   : > { %s4292_s22 = smov 72   ;;  %1613 = vmatprep.subr.mxu0 %v4293_v49  ;;  %3438 = vmatprep.subr.mxu1 %v4293_v49  ;;  %v1476_v52 = vld [vmem:[%s6776_s1 + $0x60] sm:$0xff]  ;;  %v1475_v53 = vld [vmem:[%s6776_s1 + $0x58] sm:$0xff]  ;;  %v1474_v54 = vld [vmem:[%s6776_s1 + $0x50] sm:$0xff]  ;;  %s4295_s25 = smov 16   ;;  %vm1200_vm0 = vcmask 293888  }
   0xd   : > { %s6928_s16 = smov (!%p203_p3, %s3251_s16), 1  ;;  %1614 = vmatpush1.msra.mxu0 %v1479_v48  ;;  %3470 = vmatpush1.msra.mxu1 %v1479_v48  ;;  %v1473_v58 = vld [vmem:[%s6776_s1 + $0x48] sm:$0xff]  ;;  %v1472_v61 = vld [vmem:[%s6776_s1 + $0x40] sm:$0xff]  ;;  %s4296_s7 = smov 88   ;;  %vm1233_vm1 = vcmask 588800   ;;  %vm1609_vm2 = vcmask 1043456  }
   0xe   : > { %s3502_s17 = smul.u32 432, %s6928_s16  ;;  %1615 = vmatprep.subr.mxu0 %v4293_v49  ;;  %3439 = vmatprep.subr.mxu1 %v4293_v49  ;;  %s4297_s10 = smov 52   ;;  %vm1266_vm3 = vcmask 883712   ;;  %vm1299_vm4 = vcmask 130048   ;;  %vm1332_vm5 = vcmask 424960   ;;  %vm1365_vm6 = vcmask 719872  }
   0xf   : > { %1616 = vmatpush1.msra.mxu0 %v1478_v50  ;;  %3471 = vmatpush1.msra.mxu1 %v1478_v50  ;;  %s4298_s13 = smov 124   ;;  %s4299_s26 = smov 32   ;;  %vm1398_vm7 = vcmask 1014784   ;;  %vm1431_vm8 = vcmask 261120   ;;  %vm1512_vm9 = vcmask 556032   ;;  %vm3151_vm10 = vcmask 523264  }
  0x10   : > { %s4340_s20 = scalar_lea.vmem %s6775_s0, %s3502_s17  ;;  %1617 = vmatprep.subr.mxu0 %v4293_v49  ;;  %3440 = vmatprep.subr.mxu1 %v4293_v49 }
  0x11   : > { %v224_v0 = vld [vmem:[%s4340_s20 + $0x48] sm:$0xff]  ;;  %v4344_v1 = vld [vmem:[%s4340_s20 + $0x50] sm:$0xff]  ;;  %v220_v2 = vld [vmem:[%s4340_s20 + $0x18] sm:$0xff]  ;;  %1618 = vmatpush1.msra.mxu0 %v1477_v51  ;;  %3472 = vmatpush1.msra.mxu1 %v1477_v51 }
  0x12   : > { %v3531_v3 = vpack.i.bf16 %v4344_v1, %v224_v0  ;;  %v221_v4 = vld [vmem:[%s4340_s20 + $0x20] sm:$0xff]  ;;  %v4353_v6 = vld [vmem:[%s4340_s20 + $0x68] sm:$0xff]  ;;  %v222_v8 = vld [vmem:[%s4340_s20 + $0x30] sm:$0xff]  ;;  %1619 = vmatprep.subr.mxu0 %v4293_v49  ;;  %3441 = vmatprep.subr.mxu1 %v4293_v49 }
  0x13   : > { %v4350_v5 = vld [vmem:[%s4340_s20 + $0x60] sm:$0xff]  ;;  %v3521_v7 = vpack.i.bf16 %v221_v4, %v220_v2  ;;  %v223_v9 = vld [vmem:[%s4340_s20 + $0x38] sm:$0xff]  ;;  %v4362_v12 = vld [vmem:[%s4340_s20 + $0x90] sm:$0xff]  ;;  %1620 = vmatpush1.msra.mxu0 %v1476_v52  ;;  %3473 = vmatpush1.msra.mxu1 %v1476_v52 }
  0x14   : > { %3532 = vrot.lane.b32.xlu1 %v3531_v3, %s4291_s21  ;;  %v3536_v10 = vpack.i.bf16 %v4353_v6, %v4350_v5  ;;  %v3526_v11 = vpack.i.bf16 %v223_v9, %v222_v8  ;;  %v4365_v13 = vld [vmem:[%s4340_s20 + $0x98] sm:$0xff]  ;;  %v4371_v15 = vld [vmem:[%s4340_s20 + $0x80] sm:$0xff]  ;;  %v4383_v19 = vld [vmem:[%s4340_s20 + $0xc8] sm:$0xff]  ;;  %1621 = vmatprep.subr.mxu0 %v4293_v49 }
  0x15   : > { %3522 = vrot.lane.b32.xlu0 %v3521_v7, %s4291_s21  ;;  %v4368_v14 = vld [vmem:[%s4340_s20 + $0x78] sm:$0xff]  ;;  %v3546_v16 = vpack.i.bf16 %v4365_v13, %v4362_v12  ;;  %v4380_v18 = vld [vmem:[%s4340_s20 + $0xc0] sm:$0xff]  ;;  %v4386_v20 = vld [vmem:[%s4340_s20 + $0xa8] sm:$0xff]  ;;  %3442 = vmatprep.subr.mxu1 %v4293_v49 }
  0x16   : > { %v3541_v17 = vpack.i.bf16 %v4371_v15, %v4368_v14  ;;  %v4389_v21 = vld [vmem:[%s4340_s20 + $0xb0] sm:$0xff]  ;;  %v3556_v22 = vpack.i.bf16 %v4383_v19, %v4380_v18  ;;  %v4401_v25 = vld [vmem:[%s4340_s20 + $0xf8] sm:$0xff]  ;;  %v4407_v27 = vld [vmem:[%s4340_s20 + $0xe0] sm:$0xff]  ;;  %1622 = vmatpush1.msra.mxu0 %v1475_v53  ;;  %3474 = vmatpush1.msra.mxu1 %v1475_v53 }
  0x17   : > { %v3551_v23 = vpack.i.bf16 %v4389_v21, %v4386_v20  ;;  %v4398_v24 = vld [vmem:[%s4340_s20 + $0xf0] sm:$0xff]  ;;  %v4404_v26 = vld [vmem:[%s4340_s20 + $0xd8] sm:$0xff]  ;;  %v242_v30 = vld [vmem:[%s4340_s20 + $0x120] sm:$0xff]  ;;  %1623 = vmatprep.subr.mxu0 %v4293_v49  ;;  %3443 = vmatprep.subr.mxu1 %v4293_v49 }
  0x18   : > { %3537 = vrot.lane.b32.xlu1 %v3536_v10, %s4291_s21  ;;  %v3566_v28 = vpack.i.bf16 %v4401_v25, %v4398_v24  ;;  %v3561_v29 = vpack.i.bf16 %v4407_v27, %v4404_v26  ;;  %v243_v31 = vld [vmem:[%s4340_s20 + $0x128] sm:$0xff]  ;;  %v4421_v33 = vld [vmem:[%s4340_s20 + $0x110] sm:$0xff]  ;;  %v247_v37 = vld [vmem:[%s4340_s20 + $0x158] sm:$0xff]  ;;  %1624 = vmatpush1.msra.mxu0 %v1474_v54 }
  0x19   : > { %3527 = vrot.lane.b32.xlu0 %v3526_v11, %s4291_s21  ;;  %v4418_v32 = vld [vmem:[%s4340_s20 + $0x108] sm:$0xff]  ;;  %v4424_v34 = vpack.i.bf16 %v243_v31, %v242_v30  ;;  %v246_v36 = vld [vmem:[%s4340_s20 + $0x150] sm:$0xff]  ;;  %v244_v38 = vld [vmem:[%s4340_s20 + $0x138] sm:$0xff]  ;;  %3475 = vmatpush1.msra.mxu1 %v1474_v54 }
  0x1a   : > { %v3571_v35 = vpack.i.bf16 %v4421_v33, %v4418_v32  ;;  %v245_v39 = vld [vmem:[%s4340_s20 + $0x140] sm:$0xff]  ;;  %v4435_v40 = vpack.i.bf16 %v247_v37, %v246_v36  ;;  %v251_v43 = vld [vmem:[%s4340_s20 + $0x188] sm:$0xff]  ;;  %v4442_v45 = vld [vmem:[%s4340_s20 + $0x170] sm:$0xff]  ;;  %1625 = vmatprep.subr.mxu0 %v4293_v49  ;;  %3444 = vmatprep.subr.mxu1 %v4293_v49 }
  0x1b   : > { %v3581_v41 = vpack.i.bf16 %v245_v39, %v244_v38  ;;  %v250_v42 = vld [vmem:[%s4340_s20 + $0x180] sm:$0xff]  ;;  %v248_v44 = vld [vmem:[%s4340_s20 + $0x168] sm:$0xff]  ;;  %v4492_v55 = vld [vmem:[%s4340_s20 + $0x91] sm:$0xff]  ;;  %1626 = vmatpush1.msra.mxu0 %v1473_v58  ;;  %3476 = vmatpush1.msra.mxu1 %v1473_v58 }
  0x1c   : > { %3547 = vrot.lane.b32.xlu1 %v3546_v16, %s4291_s21  ;;  %v4446_v46 = vpack.i.bf16 %v251_v43, %v250_v42  ;;  %v3591_v47 = vpack.i.bf16 %v4442_v45, %v248_v44  ;;  %v4495_v56 = vld [vmem:[%s4340_s20 + $0x99] sm:$0xff]  ;;  %1627 = vmatprep.subr.mxu0 %v4293_v49  ;;  %v257_v0 = vld [vmem:[%s4340_s20 + $0x21] sm:$0xff]  ;;  %v255_v4 = vld [vmem:[%s4340_s20 + $0x9] sm:$0xff] }
  0x1d   : > { %3542 = vrot.lane.b32.xlu0 %v3541_v17, %s4291_s21  ;;  %v4501_v57 = vpack.i.bf16 %v4495_v56, %v4492_v55  ;;  %v252_v59 = vld [vmem:[%s4340_s20 + $0x198] sm:$0xff]  ;;  %v253_v60 = vld [vmem:[%s4340_s20 + $0x1a0] sm:$0xff]  ;;  %3445 = vmatprep.subr.mxu1 %v4293_v49  ;;  %v1470_v8 = vld [vmem:[%s6776_s1 + $0x30] sm:$0xff] }
  0x1e   : > { %v3676_v62 = vpack.i.bf16 %v253_v60, %v252_v59  ;;  %v256_v63 = vld [vmem:[%s4340_s20 + $0x19] sm:$0xff]  ;;  %1628 = vmatpush1.msra.mxu0 %v1472_v61  ;;  %3477 = vmatpush1.msra.mxu1 %v1472_v61  ;;  %v4571_v30 = vld [vmem:[%s4340_s20 + $0x81] sm:$0xff]  ;;  %v268_v39 = vld [vmem:[%s4340_s20 + $0xa9] sm:$0xff] }
  0x1f   : > { %v1471_v2 = vld [vmem:[%s6776_s1 + $0x38] sm:$0xff]  ;;  %1629 = vmatprep.subr.mxu0 %v4293_v49  ;;  %3446 = vmatprep.subr.mxu1 %v4293_v49  ;;  %v4531_v7 = vpack.i.bf16 %v257_v0, %v256_v63  ;;  %v1468_v31 = vld [vmem:[%s6776_s1 + $0x20] sm:$0xff]  ;;  %v271_v48 = vld [vmem:[%s4340_s20 + $0xc9] sm:$0xff] }
  0x20   : > { %3557 = vrot.lane.b32.xlu1 %v3556_v22, %s4291_s21  ;;  %1630 = vmatpush1.msra.mxu0 %v1471_v2  ;;  %v1467_v37 = vld [vmem:[%s6776_s1 + $0x18] sm:$0xff]  ;;  %v273_v44 = vld [vmem:[%s4340_s20 + $0xe1] sm:$0xff]  ;;  %v276_v53 = vld [vmem:[%s4340_s20 + $0x109] sm:$0xff] }
  0x21   : > { %3552 = vrot.lane.b32.xlu0 %v3551_v23, %s4291_s21  ;;  %3478 = vmatpush1.msra.mxu1 %v1471_v2  ;;  %v272_v43 = vld [vmem:[%s4340_s20 + $0xd9] sm:$0xff]  ;;  %v277_v54 = vld [vmem:[%s4340_s20 + $0x111] sm:$0xff]  ;;  %v4653_v0 = vld [vmem:[%s4340_s20 + $0x141] sm:$0xff] }
  0x22   : > { %1631 = vmatprep.subr.mxu0 %v4293_v49  ;;  %3447 = vmatprep.subr.mxu1 %v4293_v49  ;;  %v4626_v50 = vpack.i.bf16 %v273_v44, %v272_v43  ;;  %v1464_v51 = vld [vmem:[%s6776_s1] sm:$0xff]  ;;  %v274_v58 = vld [vmem:[%s4340_s20 + $0xf1] sm:$0xff]  ;;  %v3736_v61 = vpack.i.bf16 %v277_v54, %v276_v53 }
  0x23   : > { %1632 = vmatpush1.msra.mxu0 %v1470_v8  ;;  %3479 = vmatpush1.msra.mxu1 %v1470_v8  ;;  %v275_v59 = vld [vmem:[%s4340_s20 + $0xf9] sm:$0xff]  ;;  %v1494_v2 = vld [vmem:[%s6776_s1 + $0xf0] sm:$0xff]  ;;  %v290_v53 = vld [vmem:[%s4340_s20 + $0x2] sm:$0xff] }
  0x24   : > { %3567 = vrot.lane.b32.xlu1 %v3566_v28, %s4291_s21  ;;  %1633 = vmatprep.subr.mxu0 %v4293_v49  ;;  %v1495_v60 = vld [vmem:[%s6776_s1 + $0xf8] sm:$0xff]  ;;  %v314_v54 = vld [vmem:[%s4340_s20 + $0x122] sm:$0xff] }
  0x25   : > { %3562 = vrot.lane.b32.xlu0 %v3561_v29, %s4291_s21  ;;  %3448 = vmatprep.subr.mxu1 %v4293_v49  ;;  %v4650_v63 = vld [vmem:[%s4340_s20 + $0x139] sm:$0xff] }
  0x26   : > { %v3746_v8 = vpack.i.bf16 %v4653_v0, %v4650_v63 }
  0x28   : > { %3577 = vrot.lane.b32.xlu1 %v4424_v34, %s4291_s21 }
  0x29   : > { %3572 = vrot.lane.b32.xlu0 %v3571_v35, %s4291_s21 }
  0x2c   : > { %3587 = vrot.lane.b32.xlu1 %v4435_v40, %s4291_s21 }
  0x2d   : > { %3582 = vrot.lane.b32.xlu0 %v3581_v41, %s4291_s21 }
  0x30   : > { %3597 = vrot.lane.b32.xlu1 %v4446_v46, %s4291_s21 }
  0x31   : > { %3592 = vrot.lane.b32.xlu0 %v3591_v47, %s4291_s21 }
  0x34   : > { %3607 = vrot.lane.b32.xlu1 %v3531_v3, %s4292_s22  ;;  %v254_v3 = vld [vmem:[%s4340_s20 + $0x1] sm:$0xff] }
  0x35   : > { %3602 = vrot.lane.b32.xlu0 %v3526_v11, %s4292_s22  ;;  %v3681_v9 = vpack.i.bf16 %v255_v4, %v254_v3  ;;  %v4542_v11 = vld [vmem:[%s4340_s20 + $0x51] sm:$0xff]  ;;  %v278_v3 = vld [vmem:[%s4340_s20 + $0x121] sm:$0xff]  ;;  %v279_v4 = vld [vmem:[%s4340_s20 + $0x129] sm:$0xff] }
  0x38   : > { %3617 = vrot.lane.b32.xlu1 %v3541_v17, %s4292_s22  ;;  %v4548_v17 = vld [vmem:[%s4340_s20 + $0x39] sm:$0xff] }
  0x39   : > { %3612 = vrot.lane.b32.xlu0 %v3536_v10, %s4292_s22  ;;  %v4539_v10 = vld [vmem:[%s4340_s20 + $0x49] sm:$0xff] }
  0x3c   : > { %3627 = vrot.lane.b32.xlu1 %v3551_v23, %s4292_s22  ;;  %v4559_v23 = vpack.i.bf16 %v4542_v11, %v4539_v10 }
  0x3d   : > { %3622 = vrot.lane.b32.xlu0 %v3546_v16, %s4292_s22  ;;  %v4545_v16 = vld [vmem:[%s4340_s20 + $0x31] sm:$0xff] }
  0x40   : > { %3637 = vrot.lane.b32.xlu1 %v3561_v29, %s4292_s22  ;;  %v4568_v29 = vld [vmem:[%s4340_s20 + $0x79] sm:$0xff] }
  0x41   : > { %3632 = vrot.lane.b32.xlu0 %v3556_v22, %s4292_s22  ;;  %v1469_v22 = vld [vmem:[%s6776_s1 + $0x28] sm:$0xff]  ;;  %v4589_v36 = vpack.i.bf16 %v4571_v30, %v4568_v29 }
  0x42   : > { %1634 = vmatpush1.msra.mxu0 %v1469_v22  ;;  %3480 = vmatpush1.msra.mxu1 %v1469_v22  ;;  %v3741_v22 = vpack.i.bf16 %v279_v4, %v278_v3  ;;  %v291_v3 = vld [vmem:[%s4340_s20 + $0xa] sm:$0xff] }
  0x43   : > { %1635 = vmatprep.subr.mxu0 %v4293_v49  ;;  %3449 = vmatprep.subr.mxu1 %v4293_v49  ;;  %v315_v4 = vld [vmem:[%s4340_s20 + $0x12a] sm:$0xff] }
  0x44   : > { %3647 = vrot.lane.b32.xlu1 %v3571_v35, %s4292_s22  ;;  %v4581_v35 = vld [vmem:[%s4340_s20 + $0x69] sm:$0xff]  ;;  %1636 = vmatpush1.msra.mxu0 %v1468_v31 }
  0x45   : > { %3642 = vrot.lane.b32.xlu0 %v3566_v28, %s4292_s22  ;;  %v4565_v28 = vpack.i.bf16 %v4548_v17, %v4545_v16  ;;  %3481 = vmatpush1.msra.mxu1 %v1468_v31  ;;  %v4671_v31 = vld [vmem:[%s4340_s20 + $0x169] sm:$0xff] }
  0x46   : > { %1637 = vmatprep.subr.mxu0 %v4293_v49  ;;  %3450 = vmatprep.subr.mxu1 %v4293_v49 }
  0x47   : > { %1638 = vmatpush1.msra.mxu0 %v1467_v37  ;;  %3482 = vmatpush1.msra.mxu1 %v1467_v37  ;;  %v4674_v37 = vld [vmem:[%s4340_s20 + $0x171] sm:$0xff] }
  0x48   : > { %3657 = vrot.lane.b32.xlu1 %v3581_v41, %s4292_s22  ;;  %v1466_v41 = vld [vmem:[%s6776_s1 + $0x10] sm:$0xff]  ;;  %1639 = vmatprep.subr.mxu0 %v4293_v49  ;;  %v3756_v43 = vpack.i.bf16 %v4674_v37, %v4671_v31 }
  0x49   : > { %3652 = vrot.lane.b32.xlu0 %v4424_v34, %s4292_s22  ;;  %v4578_v34 = vld [vmem:[%s4340_s20 + $0x61] sm:$0xff]  ;;  %3451 = vmatprep.subr.mxu1 %v4293_v49 }
  0x4a   : > { %v4598_v38 = vpack.i.bf16 %v4581_v35, %v4578_v34  ;;  %1640 = vmatpush1.msra.mxu0 %v1466_v41  ;;  %3483 = vmatpush1.msra.mxu1 %v1466_v41  ;;  %v1492_v41 = vld [vmem:[%s6776_s1 + $0xe0] sm:$0xff] }
  0x4b   : > { %1641 = vmatprep.subr.mxu0 %v4293_v49  ;;  %3452 = vmatprep.subr.mxu1 %v4293_v49 }
  0x4c   : > { %3667 = vrot.lane.b32.xlu1 %v3591_v47, %s4292_s22  ;;  %v270_v47 = vld [vmem:[%s4340_s20 + $0xc1] sm:$0xff] }
  0x4d   : > { %3662 = vrot.lane.b32.xlu0 %v4435_v40, %s4292_s22  ;;  %v269_v40 = vld [vmem:[%s4340_s20 + $0xb1] sm:$0xff]  ;;  %v4633_v52 = vpack.i.bf16 %v271_v48, %v270_v47  ;;  %v1489_v48 = vld [vmem:[%s6776_s1 + $0xc8] sm:$0xff] }
  0x4e   : > { %v4609_v42 = vpack.i.bf16 %v269_v40, %v268_v39  ;;  %v4677_v39 = vld [vmem:[%s4340_s20 + $0x151] sm:$0xff]  ;;  %v4680_v40 = vld [vmem:[%s4340_s20 + $0x159] sm:$0xff] }
  0x4f   : > { %v3751_v44 = vpack.i.bf16 %v4680_v40, %v4677_v39  ;;  %v1490_v47 = vld [vmem:[%s6776_s1 + $0xd0] sm:$0xff] }
  0x50   : > { %3677 = vrot.lane.b32.xlu1 %v3676_v62, %s4292_s22  ;;  %v3731_v62 = vpack.i.bf16 %v275_v59, %v274_v58  ;;  %v1485_v58 = vld [vmem:[%s6776_s1 + $0xa8] sm:$0xff]  ;;  %v292_v59 = vld [vmem:[%s4340_s20 + $0x1a] sm:$0xff] }
  0x51   : > { %3672 = vrot.lane.b32.xlu0 %v4446_v46, %s4292_s22  ;;  %s4294_s22 = smov 108   ;;  %v1465_v46 = vld [vmem:[%s6776_s1 + $0x8] sm:$0xff] }
  0x52   : > { %1642 = vmatpush1.msra.mxu0 %v1465_v46  ;;  %3484 = vmatpush1.msra.mxu1 %v1465_v46  ;;  %v1491_v46 = vld [vmem:[%s6776_s1 + $0xd8] sm:$0xff] }
  0x53   : > { %1643 = vmatprep.subr.mxu0 %v4293_v49  ;;  %3453 = vmatprep.subr.mxu1 %v4293_v49 }
  0x54   : > { %3687 = vrot.lane.b32.xlu1 %v4531_v7, %s4294_s22  ;;  %1644 = vmatpush1.msra.mxu0 %v1464_v51 }
  0x55   : > { %3682 = vrot.lane.b32.xlu0 %v3681_v9, %s4294_s22  ;;  %3485 = vmatpush1.msra.mxu1 %v1464_v51  ;;  %v1493_v9 = vld [vmem:[%s6776_s1 + $0xe8] sm:$0xff]  ;;  %v1488_v51 = vld [vmem:[%s6776_s1 + $0xc0] sm:$0xff] }
  0x56   : > { %1645 = vmatprep.subr.mxu0 %v4293_v49  ;;  %3454 = vmatprep.subr.mxu1 %v4293_v49 }
  0x57   : > { %1646 = vmatpush2.msra.mxu0 %v1495_v60  ;;  %3486 = vmatpush2.msra.mxu1 %v1495_v60  ;;  %v1483_v60 = vld [vmem:[%s6776_s1 + $0x98] sm:$0xff] }
  0x58   : > { %3697 = vrot.lane.b32.xlu1 %v4559_v23, %s4294_s22  ;;  %1647 = vmatprep.subr.mxu0 %v4293_v49 }
  0x59   : > { %3692 = vrot.lane.b32.xlu0 %v4565_v28, %s4294_s22  ;;  %3455 = vmatprep.subr.mxu1 %v4293_v49 }
  0x5a   : > { %1648 = vmatpush2.msra.mxu0 %v1494_v2  ;;  %3487 = vmatpush2.msra.mxu1 %v1494_v2 }
  0x5b   : > { %1649 = vmatprep.subr.mxu0 %v4293_v49  ;;  %3456 = vmatprep.subr.mxu1 %v4293_v49 }
  0x5c   : > { %3707 = vrot.lane.b32.xlu1 %v4589_v36, %s4294_s22  ;;  %1650 = vmatpush2.msra.mxu0 %v1493_v9 }
  0x5d   : > { %3702 = vrot.lane.b32.xlu0 %v4598_v38, %s4294_s22  ;;  %3488 = vmatpush2.msra.mxu1 %v1493_v9  ;;  %v3811_v9 = vpack.i.bf16 %v315_v4, %v291_v3  ;;  %v4859_v3 = vld [vmem:[%s4340_s20 + $0x189] sm:$0xff] }
  0x5e   : > { %1651 = vmatprep.subr.mxu0 %v4293_v49  ;;  %3457 = vmatprep.subr.mxu1 %v4293_v49 }
  0x5f   : > { %1652 = vmatpush2.msra.mxu0 %v1492_v41  ;;  %3489 = vmatpush2.msra.mxu1 %v1492_v41  ;;  %v1480_v41 = vld [vmem:[%s6776_s1 + $0x80] sm:$0xff] }
  0x60   : > { %3717 = vrot.lane.b32.xlu1 %v4609_v42, %s4294_s22  ;;  %1653 = vmatprep.subr.mxu0 %v4293_v49 }
  0x61   : > { %3712 = vrot.lane.b32.xlu0 %v4501_v57, %s4294_s22  ;;  %3458 = vmatprep.subr.mxu1 %v4293_v49 }
  0x62   : > { %1654 = vmatpush2.msra.mxu0 %v1491_v46  ;;  %3490 = vmatpush2.msra.mxu1 %v1491_v46  ;;  %v317_v46 = vld [vmem:[%s4340_s20 + $0x142] sm:$0xff] }
  0x63   : > { %1655 = vmatprep.subr.mxu0 %v4293_v49  ;;  %3459 = vmatprep.subr.mxu1 %v4293_v49 }
  0x64   : > { %3727 = vrot.lane.b32.xlu1 %v4626_v50, %s4294_s22  ;;  %1656 = vmatpush2.msra.mxu0 %v1490_v47 }
  0x65   : > { %3722 = vrot.lane.b32.xlu0 %v4633_v52, %s4294_s22  ;;  %3491 = vmatpush2.msra.mxu1 %v1490_v47 }
  0x66   : > { %1657 = vmatprep.subr.mxu0 %v4293_v49  ;;  %3460 = vmatprep.subr.mxu1 %v4293_v49 }
  0x67   : > { %1658 = vmatpush2.msra.mxu0 %v1489_v48  ;;  %3492 = vmatpush2.msra.mxu1 %v1489_v48 }
  0x68   : > { %3737 = vrot.lane.b32.xlu1 %v3736_v61, %s4294_s22  ;;  %1659 = vmatprep.subr.mxu0 %v4293_v49  ;;  %v3806_v61 = vpack.i.bf16 %v4680_v40, %v4548_v17 }
  0x69   : > { %3732 = vrot.lane.b32.xlu0 %v3731_v62, %s4294_s22  ;;  %3461 = vmatprep.subr.mxu1 %v4293_v49  ;;  %v3801_v62 = vpack.i.bf16 %v4677_v39, %v4653_v0  ;;  %v1481_v0 = vld [vmem:[%s6776_s1 + $0x88] sm:$0xff] }
  0x6a   : > { %1660 = vmatpush2.msra.mxu0 %v1488_v51  ;;  %3493 = vmatpush2.msra.mxu1 %v1488_v51 }
  0x6b   : > { %1661 = vmatprep.subr.mxu0 %v4293_v49  ;;  %3462 = vmatprep.subr.mxu1 %v4293_v49 }
  0x6c   : > { %3747 = vrot.lane.b32.xlu1 %v3746_v8, %s4294_s22  ;;  %v293_v8 = vld [vmem:[%s4340_s20 + $0x22] sm:$0xff] }
  0x6d   : > { %3742 = vrot.lane.b32.xlu0 %v3741_v22, %s4294_s22 }
  0x70   : > { %3757 = vrot.lane.b32.xlu1 %v3756_v43, %s4294_s22  ;;  %v3816_v43 = vpack.i.bf16 %v4671_v31, %v4539_v10  ;;  %v4809_v10 = vld [vmem:[%s4340_s20 + $0x32] sm:$0xff] }
  0x71   : > { %3752 = vrot.lane.b32.xlu0 %v3751_v44, %s4294_s22  ;;  %s4300_s22 = smov 64  }
  0x74   : > { %3767 = vrot.lane.b32.xlu1 %v4565_v28, %s4295_s25  ;;  %v3786_v28 = vpack.i.bf16 %v4650_v63, %v4492_v55  ;;  %v1486_v55 = vld [vmem:[%s6776_s1 + $0xb0] sm:$0xff] }
  0x75   : > { %3762 = vrot.lane.b32.xlu0 %v4531_v7, %s4295_s25  ;;  %v1487_v7 = vld [vmem:[%s6776_s1 + $0xb8] sm:$0xff]  ;;  %v1482_v63 = vld [vmem:[%s6776_s1 + $0x90] sm:$0xff] }
  0x76   : > { %1662 = vmatpush2.msra.mxu0 %v1487_v7  ;;  %3494 = vmatpush2.msra.mxu1 %v1487_v7 }
  0x77   : > { %1663 = vmatprep.subr.mxu0 %v4293_v49  ;;  %3463 = vmatprep.subr.mxu1 %v4293_v49 }
  0x78   : > { %3777 = vrot.lane.b32.xlu1 %v4598_v38, %s4295_s25  ;;  %v3796_v38 = vpack.i.bf16 %v314_v54, %v290_v53  ;;  %1664 = vmatpush2.msra.mxu0 %v1486_v55  ;;  %v318_v53 = vld [vmem:[%s4340_s20 + $0x152] sm:$0xff] }
  0x79   : > { %3772 = vrot.lane.b32.xlu0 %v4559_v23, %s4295_s25  ;;  %v3791_v23 = vpack.i.bf16 %v4677_v39, %v4545_v16  ;;  %3495 = vmatpush2.msra.mxu1 %v1486_v55  ;;  %v1484_v16 = vld [vmem:[%s6776_s1 + $0xa0] sm:$0xff]  ;;  %v3836_v55 = vpack.i.bf16 %v317_v46, %v293_v8 }
  0x7a   : > { %1665 = vmatprep.subr.mxu0 %v4293_v49  ;;  %3464 = vmatprep.subr.mxu1 %v4293_v49 }
  0x7b   : > { %1666 = vmatpush2.msra.mxu0 %v1485_v58  ;;  %3496 = vmatpush2.msra.mxu1 %v1485_v58 }
  0x7c   : > { %3787 = vrot.lane.b32.xlu1 %v3786_v28, %s4295_s25  ;;  %1667 = vmatprep.subr.mxu0 %v4293_v49 }
  0x7d   : > { %3782 = vrot.lane.b32.xlu0 %v4589_v36, %s4295_s25  ;;  %v316_v36 = vld [vmem:[%s4340_s20 + $0x13a] sm:$0xff]  ;;  %3465 = vmatprep.subr.mxu1 %v4293_v49 }
  0x7e   : > { %1668 = vmatpush2.msra.mxu0 %v1484_v16  ;;  %3497 = vmatpush2.msra.mxu1 %v1484_v16  ;;  %v3821_v48 = vpack.i.bf16 %v316_v36, %v292_v59  ;;  %v4839_v16 = vld [vmem:[%s4340_s20 + $0x3a] sm:$0xff] }
  0x7f   : > { %1669 = vmatprep.subr.mxu0 %v4293_v49  ;;  %3466 = vmatprep.subr.mxu1 %v4293_v49 }
  0x80   : > { %3797 = vrot.lane.b32.xlu1 %v3796_v38, %s4296_s7  ;;  %1670 = vmatpush2.msra.mxu0 %v1483_v60  ;;  %v3831_v38 = vpack.i.bf16 %v4674_v37, %v4542_v11  ;;  %v3846_v11 = vpack.i.bf16 %v318_v53, %v4809_v10 }
  0x81   : > { %3792 = vrot.lane.b32.xlu0 %v3791_v23, %s4297_s10  ;;  %3498 = vmatpush2.msra.mxu1 %v1483_v60 }
  0x82   : > { %1671 = vmatprep.subr.mxu0 %v4293_v49  ;;  %3467 = vmatprep.subr.mxu1 %v4293_v49 }
  0x83   : > { %1672 = vmatpush2.msra.mxu0 %v1482_v63  ;;  %3499 = vmatpush2.msra.mxu1 %v1482_v63  ;;  %v4856_v63 = vld [vmem:[%s4340_s20 + $0x16a] sm:$0xff] }
  0x84   : > { %1054 = vrot.lane.b32.xlu1 %v316_v36, %s4298_s13  ;;  %1673 = vmatprep.subr.mxu0 %v4293_v49  ;;  %v286_v36 = vld [vmem:[%s4340_s20 + $0x181] sm:$0xff] }
  0x85   : > { %1006 = vrot.lane.b32.xlu0 %v292_v59, %s4298_s13  ;;  %3468 = vmatprep.subr.mxu1 %v4293_v49  ;;  %v3841_v60 = vpack.i.bf16 %v286_v36, %v4578_v34 }
  0x86   : > { %v4772_v2 = vpop.permute.xlu1 %3532  ;;  %1674 = vmatpush2.msra.mxu0 %v1481_v0  ;;  %3500 = vmatpush2.msra.mxu1 %v1481_v0  ;;  %v4864_v0 = vld [vmem:[%s4340_s20 + $0x4a] sm:$0xff] }
  0x87   : > { %v4776_v17 = vpop.permute.xlu0 %3522  ;;  %1675 = vmatprep.subr.mxu0 %v4293_v49  ;;  %3469 = vmatprep.subr.mxu1 %v4293_v49  ;;  %v3826_v49 = vpack.i.bf16 %v4671_v31, %v4680_v40  ;;  %v319_v31 = vld [vmem:[%s4340_s20 + $0x15a] sm:$0xff] }
  0x88   : > { %3807 = vrot.lane.b32.xlu1 %v3806_v61, %s4297_s10  ;;  %1676 = vmatpush2.msra.mxu0 %v1480_v41 }
  0x89   : > { %3802 = vrot.lane.b32.xlu0 %v3801_v62, %s4295_s25  ;;  %3501 = vmatpush2.msra.mxu1 %v1480_v41  ;;  %v3851_v41 = vpack.i.bf16 %v286_v36, %v4674_v37  ;;  %v3861_v36 = vpack.i.bf16 %v319_v31, %v4839_v16 }
  0x8a   : > { %v4786_v22 = vpop.permute.xlu1 %3537 }
  0x8b   : > { %6823 = vst [vmem:[#allocation2_spill] sm:$0xff] %v4786_v22  ;;  %v4790_v39 = vpop.permute.xlu0 %3527  ;;  %v3540_v34 = vunpack.i.h.bf16 %v4786_v22 }
  0x8c   : > { %1008 = vrot.lane.b32.xlu1 %v293_v8, %s4298_s13 }
  0x8d   : > { %3812 = vrot.lane.b32.xlu0 %v3811_v9, %s4296_s7  ;;  %v3856_v9 = vpack.i.bf16 %v4859_v3, %v4581_v35  ;;  %v1208_v37 = vsel %vm1200_vm0, %v4344_v1, %v3540_v34 }
  0x8e   : > { %v4801_v44 = vpop.permute.xlu1 %3547 }
  0x8f   : > { %v4804_v47 = vpop.permute.xlu0 %3542 }
  0x90   : > { %3817 = vrot.lane.b32.xlu1 %v3816_v43, %s4297_s10  ;;  %v3550_v43 = vunpack.i.h.bf16 %v4801_v44 }
  0x91   : > { %1056 = vrot.lane.b32.xlu0 %v317_v46, %s4298_s13  ;;  %v3549_v46 = vunpack.i.l.bf16 %v4801_v44  ;;  %v4891_v44 = vld [vmem:[%s4340_s20 + $0x52] sm:$0xff] }
  0x92   : > { %v4811_v51 = vpop.permute.xlu1 %3557 }
  0x93   : > { %v4813_v28 = vpop.permute.xlu0 %3552  ;;  %v1211_v34 = vsel %vm1200_vm0, %v4368_v14, %v3549_v46 }
  0x94   : > { %1010 = vrot.lane.b32.xlu1 %v4809_v10, %s4298_s13  ;;  %v3554_v14 = vunpack.i.l.bf16 %v4813_v28 }
  0x95   : > { %3822 = vrot.lane.b32.xlu0 %v3821_v48, %s4296_s7  ;;  %v3544_v48 = vunpack.i.l.bf16 %v4804_v47 }
  0x96   : > { %v4820_v7 = vpop.permute.xlu1 %3567 }
  0x97   : > { %v4823_v54 = vpop.permute.xlu0 %3562  ;;  %v1209_v1 = vsel %vm1200_vm0, %v4350_v5, %v3544_v48 }
  0x98   : > { %3827 = vrot.lane.b32.xlu1 %v3826_v49, %s4295_s25  ;;  %v3565_v46 = vunpack.i.h.bf16 %v4823_v54 }
  0x99   : > { %1058 = vrot.lane.b32.xlu0 %v318_v53, %s4298_s13  ;;  %v288_v53 = vld [vmem:[%s4340_s20 + $0x199] sm:$0xff] }
  0x9a   : > { %v4829_v23 = vpop.permute.xlu1 %3577 }
  0x9b   : > { %v4831_v58 = vpop.permute.xlu0 %3572 }
  0x9c   : > { %3837 = vrot.lane.b32.xlu1 %v3836_v55, %s4296_s7  ;;  %v3545_v55 = vunpack.i.h.bf16 %v4804_v47  ;;  %v3555_v47 = vunpack.i.h.bf16 %v4813_v28 }
  0x9d   : > { %3832 = vrot.lane.b32.xlu0 %v3831_v38, %s4297_s10 }
  0x9e   : > { %v4836_v40 = vpop.permute.xlu1 %3587 }
  0x9f   : > { %v4842_v59 = vpop.permute.xlu0 %3582 }
  0xa0   : > { %1060 = vrot.lane.b32.xlu1 %v319_v31, %s4298_s13  ;;  %v1212_v31 = vsel %vm1200_vm0, %v4371_v15, %v3550_v43  ;;  %v3570_v15 = vunpack.i.h.bf16 %v4820_v7 }
  0xa1   : > { %1012 = vrot.lane.b32.xlu0 %v4839_v16, %s4298_s13 }
  0xa2   : > { %v4849_v61 = vpop.permute.xlu1 %3597 }
  0xa3   : > { %v4851_v62 = vpop.permute.xlu0 %3592 }
  0xa4   : > { %3847 = vrot.lane.b32.xlu1 %v3846_v11, %s4296_s7  ;;  %v3866_v11 = vpack.i.bf16 %v288_v53, %v4568_v29  ;;  %v3560_v29 = vunpack.i.h.bf16 %v4811_v51 }
  0xa5   : > { %3842 = vrot.lane.b32.xlu0 %v3841_v60, %s4297_s10 }
  0xa6   : > { %v4861_v4 = vpop.permute.xlu1 %3607 }
  0xa7   : > { %v4866_v8 = vpop.permute.xlu0 %3602 }
  0xa8   : > { %1062 = vrot.lane.b32.xlu1 %v4856_v63, %s4298_s13 }
  0xa9   : > { %1014 = vrot.lane.b32.xlu0 %v4864_v0, %s4298_s13 }
  0xaa   : > { %v4879_v49 = vpop.permute.xlu1 %3617 }
  0xab   : > { %6824 = vst [vmem:[#allocation3_spill] sm:$0xff] %v4879_v49  ;;  %v3620_v38 = vunpack.i.h.bf16 %v4879_v49  ;;  %v4884_v35 = vpop.permute.xlu0 %3612 }
  0xac   : > { %3857 = vrot.lane.b32.xlu1 %v3856_v9, %s4297_s10  ;;  %v3559_v9 = vunpack.i.l.bf16 %v4811_v51  ;;  %v3569_v51 = vunpack.i.l.bf16 %v4820_v7  ;;  %v4939_v7 = vld [vmem:[%s6776_s1 + $0x140] sm:$0xf] }
  0xad   : > { %3852 = vrot.lane.b32.xlu0 %v3851_v41, %s4295_s25  ;;  %v4898_v60 = vsel %vm1233_vm1, %v1208_v37, %v3620_v38  ;;  %v1210_v37 = vsel %vm1200_vm0, %v4353_v6, %v3545_v55  ;;  %v4927_v55 = vld [vmem:[%s4340_s20 + $0x172] sm:$0xff]  ;;  %3372 = vmatprep.subr.msk.mxu1 %vm1609_vm2, %v4939_v7 }
  0xae   : > { %v3628_v49 = vpop.permute.xlu1 %3627 }
  0xaf   : > { %v3630_v41 = vunpack.i.h.bf16 %v3628_v49  ;;  %v3629_v53 = vunpack.i.l.bf16 %v3628_v49  ;;  %v3623_v38 = vpop.permute.xlu0 %3622 }
  0xb0   : > { %v3625_v5 = vunpack.i.h.bf16 %v3623_v38  ;;  %v3624_v48 = vunpack.i.l.bf16 %v3623_v38  ;;  %1016 = vrot.lane.b32.xlu1 %v4891_v44, %s4298_s13 }
  0xb1   : > { %3862 = vrot.lane.b32.xlu0 %v3861_v36, %s4296_s7  ;;  %v4919_v43 = vsel %vm1233_vm1, %v1211_v34, %v3629_v53  ;;  %v4922_v6 = vsel %vm1233_vm1, %v1212_v31, %v3630_v41  ;;  %v3564_v36 = vunpack.i.l.bf16 %v4823_v54  ;;  %v1216_v54 = vsel %vm1200_vm0, %v4389_v21, %v3560_v29 }
  0xb2   : > { %v3638_v49 = vpop.permute.xlu1 %3637  ;;  %v4930_v28 = vsel %vm1233_vm1, %v1209_v1, %v3624_v48  ;;  %v4933_v38 = vsel %vm1233_vm1, %v1210_v37, %v3625_v5  ;;  %v1215_v1 = vsel %vm1200_vm0, %v4386_v20, %v3559_v9  ;;  %v4951_v37 = vld [vmem:[%s4340_s20 + $0x62] sm:$0xff]  ;;  %v1213_v5 = vsel %vm1200_vm0, %v4362_v12, %v3554_v14 }
  0xb3   : > { %v3640_v34 = vunpack.i.h.bf16 %v3638_v49  ;;  %v3639_v53 = vunpack.i.l.bf16 %v3638_v49  ;;  %v3633_v31 = vpop.permute.xlu0 %3632  ;;  %v1219_v12 = vsel %vm1200_vm0, %v4404_v26, %v3569_v51  ;;  %v289_v26 = vld [vmem:[%s4340_s20 + $0x1a1] sm:$0xff] }
  0xb4   : > { %v3635_v41 = vunpack.i.h.bf16 %v3633_v31  ;;  %v3634_v22 = vunpack.i.l.bf16 %v3633_v31  ;;  %3867 = vrot.lane.b32.xlu1 %v3866_v11, %s4297_s10  ;;  %v1214_v11 = vsel %vm1200_vm0, %v4365_v13, %v3555_v47  ;;  %v1220_v13 = vsel %vm1200_vm0, %v4407_v27, %v3570_v15 }
  0xb5   : > { %1064 = vrot.lane.b32.xlu0 %v4927_v55, %s4298_s13  ;;  %v4958_v48 = vsel %vm1233_vm1, %v1215_v1, %v3639_v53  ;;  %v4961_v49 = vsel %vm1233_vm1, %v1216_v54, %v3640_v34  ;;  %v1217_v34 = vsel %vm1200_vm0, %v4380_v18, %v3564_v36  ;;  %v3580_v53 = vunpack.i.h.bf16 %v4829_v23 }
  0xb6   : > { %v3648_v20 = vpop.permute.xlu1 %3647  ;;  %v4964_v21 = vsel %vm1233_vm1, %v1213_v5, %v3634_v22  ;;  %v4967_v9 = vsel %vm1233_vm1, %v1214_v11, %v3635_v41  ;;  %v1218_v22 = vsel %vm1200_vm0, %v4383_v19, %v3565_v46  ;;  %v3579_v31 = vunpack.i.l.bf16 %v4829_v23  ;;  %v322_v46 = vld [vmem:[%s4340_s20 + $0x182] sm:$0xff] }
  0xb7   : > { %v3650_v47 = vunpack.i.h.bf16 %v3648_v20  ;;  %v3649_v29 = vunpack.i.l.bf16 %v3648_v20  ;;  %v3643_v14 = vpop.permute.xlu0 %3642  ;;  %v3575_v27 = vunpack.i.h.bf16 %v4831_v58  ;;  %v3574_v15 = vunpack.i.l.bf16 %v4831_v58 }
  0xb8   : > { %v3645_v41 = vunpack.i.h.bf16 %v3643_v14  ;;  %v3644_v1 = vunpack.i.l.bf16 %v3643_v14  ;;  %1018 = vrot.lane.b32.xlu1 %v4951_v37, %s4298_s13  ;;  %v6825_v18 = vpack.i.bf16 %v4856_v63, %v4864_v0  ;;  %v3886_v63 = vpack.i.bf16 %v4927_v55, %v4891_v44 }
  0xb9   : > { %v4989_v19 = vsel %vm1233_vm1, %v1219_v12, %v3649_v29  ;;  %v4992_v23 = vsel %vm1233_vm1, %v1220_v13, %v3650_v47  ;;  %v3881_v20 = vpack.i.bf16 %v289_v26, %v4571_v30  ;;  %v6826_v13 = vpack.i.bf16 %v4495_v56, %v4859_v3 }
  0xba   : > { %3872 = vrot.lane.b32.xlu0 %v6825_v18, %s4296_s7  ;;  %v3658_v51 = vpop.permute.xlu1 %3657  ;;  %v4996_v36 = vsel %vm1233_vm1, %v1217_v34, %v3644_v1  ;;  %v4999_v54 = vsel %vm1233_vm1, %v1218_v22, %v3645_v41  ;;  %v1223_v47 = vsel %vm1200_vm0, %v4418_v32, %v3579_v31  ;;  %v1224_v14 = vsel %vm1200_vm0, %v4421_v33, %v3580_v53  ;;  %v5042_v31 = vld [vmem:[%s4340_s20 + $0x6a] sm:$0xff] }
  0xbb   : > { %v3660_v58 = vunpack.i.h.bf16 %v3658_v51  ;;  %v3659_v5 = vunpack.i.l.bf16 %v3658_v51  ;;  %v3653_v11 = vpop.permute.xlu0 %3652  ;;  %v1221_v30 = vsel %vm1200_vm0, %v4398_v24, %v3574_v15  ;;  %v1222_v55 = vsel %vm1200_vm0, %v4401_v25, %v3575_v27  ;;  %v5037_v25 = vld [vmem:[%s4340_s20 + $0x18a] sm:$0xff] }
  0xbc   : > { %v3655_v12 = vunpack.i.h.bf16 %v3653_v11  ;;  %v3654_v29 = vunpack.i.l.bf16 %v3653_v11  ;;  %3877 = vrot.lane.b32.xlu1 %v6826_v13, %s4295_s25  ;;  %v3600_v24 = vunpack.i.h.bf16 %v4849_v61  ;;  %v3896_v26 = vpack.i.bf16 %v5042_v31, %v4951_v37  ;;  %v5078_v11 = vld [vmem:[%s4340_s20 + $0x82] sm:$0xff] }
  0xbd   : > { %v5018_v34 = vsel %vm1233_vm1, %v1223_v47, %v3659_v5  ;;  %v5021_v56 = vsel %vm1233_vm1, %v1224_v14, %v3660_v58  ;;  %v5068_v58 = vld [vmem:[%s4340_s20 + $0x7a] sm:$0xff] }
  0xbe   : > { %1066 = vrot.lane.b32.xlu0 %v322_v46, %s4298_s13  ;;  %v5023_v3 = vpop.permute.xlu1 %3667  ;;  %v5026_v32 = vsel %vm1233_vm1, %v1221_v30, %v3654_v29  ;;  %v5029_v33 = vsel %vm1233_vm1, %v1222_v55, %v3655_v12  ;;  %v1232_v27 = vsel %vm1200_vm0, %v4442_v45, %v3600_v24  ;;  %v3906_v24 = vpack.i.bf16 %v5078_v11, %v5068_v58 }
  0xbf   : > { %v5031_v22 = vpop.permute.xlu0 %3662 }
  0xc0   : > { %3887 = vrot.lane.b32.xlu1 %v3886_v63, %s4296_s7 }
  0xc2   : > { %3882 = vrot.lane.b32.xlu0 %v3881_v20, %s4297_s10  ;;  %v5039_v53 = vpop.permute.xlu1 %3677 }
  0xc3   : > { %v3680_v41 = vunpack.i.h.bf16 %v5039_v53  ;;  %v5045_v1 = vpop.permute.xlu0 %3672 }
  0xc4   : > { %1068 = vrot.lane.b32.xlu1 %v5037_v25, %s4298_s13 }
  0xc5   : > { %v5056_v15 = vsel %vm1233_vm1, %v1232_v27, %v3680_v41 }
  0xc6   : > { %1020 = vrot.lane.b32.xlu0 %v5042_v31, %s4298_s13  ;;  %v5058_v18 = vpop.permute.xlu1 %3687 }
  0xc7   : > { %v5060_v51 = vpop.permute.xlu0 %3682 }
  0xc8   : > { %3897 = vrot.lane.b32.xlu1 %v3896_v26, %s4296_s7 }
  0xca   : > { %3892 = vrot.lane.b32.xlu0 %v4501_v57, %s4297_s10  ;;  %v5065_v46 = vpop.permute.xlu1 %3697 }
  0xcb   : > { %v6799_v45 = vunpack.i.h.bf16 %v5065_v46  ;;  %v5071_v5 = vpop.permute.xlu0 %3692 }
  0xcc   : > { %1104 = vrot.lane.b32.xlu1 %v4809_v10, %s4299_s26 }
  0xcd   : > { %v5084_v57 = vsel %vm1266_vm3, %v4898_v60, %v6799_v45 }
  0xce   : > { %1022 = vrot.lane.b32.xlu0 %v5068_v58, %s4298_s13  ;;  %v5086_v63 = vpop.permute.xlu1 %3707 }
  0xcf   : > { %v6784_v20 = vunpack.i.h.bf16 %v5086_v63  ;;  %v6789_v12 = vunpack.i.l.bf16 %v5086_v63  ;;  %v5090_v29 = vpop.permute.xlu0 %3702 }
  0xd0   : > { %v6790_v10 = vunpack.i.h.bf16 %v5090_v29  ;;  %v6797_v13 = vunpack.i.l.bf16 %v5090_v29  ;;  %1024 = vrot.lane.b32.xlu1 %v5078_v11, %s4298_s13 }
  0xd1   : > { %v5102_v60 = vsel %vm1266_vm3, %v4919_v43, %v6789_v12  ;;  %v5108_v47 = vsel %vm1266_vm3, %v4922_v6, %v6784_v20 }
  0xd2   : > { %1106 = vrot.lane.b32.xlu0 %v4839_v16, %s4299_s26  ;;  %6827 = vst [vmem:[#allocation4_spill] sm:$0xff] %v5108_v47  ;;  %v5110_v14 = vpop.permute.xlu1 %3717  ;;  %v5116_v30 = vsel %vm1266_vm3, %v4930_v28, %v6797_v13  ;;  %v5122_v16 = vsel %vm1266_vm3, %v4933_v38, %v6790_v10 }
  0xd3   : > { %6828 = vst [vmem:[#allocation5_spill] sm:$0xff] %v5110_v14  ;;  %v6783_v43 = vunpack.i.h.bf16 %v5110_v14  ;;  %v6782_v55 = vunpack.i.l.bf16 %v5110_v14  ;;  %v5126_v6 = vpop.permute.xlu0 %3712 }
  0xd4   : > { %6829 = vst [vmem:[#allocation6_spill] sm:$0xff] %v5126_v6  ;;  %v6785_v41 = vunpack.i.h.bf16 %v5126_v6  ;;  %v6786_v28 = vunpack.i.l.bf16 %v5126_v6  ;;  %1110 = vrot.lane.b32.xlu1 %v4891_v44, %s4299_s26 }
  0xd5   : > { %v5140_v38 = vsel %vm1266_vm3, %v4958_v48, %v6782_v55  ;;  %v5146_v26 = vsel %vm1266_vm3, %v4961_v49, %v6783_v43 }
  0xd6   : > { %1108 = vrot.lane.b32.xlu0 %v4864_v0, %s4299_s26  ;;  %6830 = vst [vmem:[#allocation7_spill] sm:$0xff] %v5140_v38  ;;  %6831 = vst [vmem:[#allocation8_spill] sm:$0xff] %v5146_v26  ;;  %v5148_v27 = vpop.permute.xlu1 %3727  ;;  %v5154_v0 = vsel %vm1266_vm3, %v4964_v21, %v6786_v28  ;;  %v5160_v44 = vsel %vm1266_vm3, %v4967_v9, %v6785_v41  ;;  %v302_v28 = vld [vmem:[%s4340_s20 + $0x92] sm:$0xff] }
  0xd7   : > { %6832 = vst [vmem:[#allocation9_spill] sm:$0xff] %v5148_v27  ;;  %6833 = vst [vmem:[#allocation10_spill] sm:$0xff] %v5154_v0  ;;  %v6788_v48 = vunpack.i.h.bf16 %v5148_v27  ;;  %v6787_v55 = vunpack.i.l.bf16 %v5148_v27  ;;  %v5164_v49 = vpop.permute.xlu0 %3722 }
  0xd8   : > { %6834 = vst [vmem:[#allocation11_spill] sm:$0xff] %v5160_v44  ;;  %6835 = vst [vmem:[#allocation12_spill] sm:$0xff] %v5164_v49  ;;  %v6791_v43 = vunpack.i.h.bf16 %v5164_v49  ;;  %v6792_v20 = vunpack.i.l.bf16 %v5164_v49  ;;  %3907 = vrot.lane.b32.xlu1 %v3906_v24, %s4296_s7 }
  0xd9   : > { %v5175_v21 = vsel %vm1266_vm3, %v4989_v19, %v6787_v55  ;;  %v5181_v9 = vsel %vm1266_vm3, %v4992_v23, %v6788_v48 }
  0xda   : > { %3902 = vrot.lane.b32.xlu0 %v4609_v42, %s4297_s10  ;;  %6836 = vst [vmem:[#allocation13_spill] sm:$0xff] %v5175_v21  ;;  %6837 = vst [vmem:[#allocation14_spill] sm:$0xff] %v5181_v9  ;;  %v5183_v41 = vpop.permute.xlu1 %3737  ;;  %v5190_v24 = vsel %vm1266_vm3, %v4996_v36, %v6792_v20  ;;  %v5196_v19 = vsel %vm1266_vm3, %v4999_v54, %v6791_v43  ;;  %v303_v36 = vld [vmem:[%s4340_s20 + $0x9a] sm:$0xff]  ;;  %v3584_v9 = vunpack.i.l.bf16 %v4842_v59  ;;  %v3604_v21 = vunpack.i.l.bf16 %v4866_v8 }
  0xdb   : > { %6838 = vst [vmem:[#allocation15_spill] sm:$0xff] %v5183_v41  ;;  %6839 = vst [vmem:[#allocation16_spill] sm:$0xff] %v5190_v24  ;;  %v6794_v55 = vunpack.i.h.bf16 %v5183_v41  ;;  %v6793_v23 = vunpack.i.l.bf16 %v5183_v41  ;;  %v5200_v48 = vpop.permute.xlu0 %3732  ;;  %v305_v41 = vld [vmem:[%s4340_s20 + $0xb2] sm:$0xff]  ;;  %v3664_v24 = vunpack.i.l.bf16 %v5031_v22 }
  0xdc   : > { %6840 = vst [vmem:[#allocation17_spill] sm:$0xff] %v5196_v19  ;;  %6841 = vst [vmem:[#allocation18_spill] sm:$0xff] %v5200_v48  ;;  %v6795_v12 = vunpack.i.h.bf16 %v5200_v48  ;;  %v6796_v10 = vunpack.i.l.bf16 %v5200_v48  ;;  %1112 = vrot.lane.b32.xlu1 %v4951_v37, %s4299_s26  ;;  %v218_v19 = vld [vmem:[%s4340_s20] sm:$0xff] }
  0xdd   : > { %v5212_v54 = vsel %vm1266_vm3, %v5018_v34, %v6793_v23  ;;  %v5218_v43 = vsel %vm1266_vm3, %v5021_v56, %v6794_v55 }
  0xde   : > { %1026 = vrot.lane.b32.xlu0 %v302_v28, %s4298_s13  ;;  %6842 = vst [vmem:[#allocation19_spill] sm:$0xff] %v5212_v54  ;;  %6843 = vst [vmem:[#allocation20_spill] sm:$0xff] %v5218_v43  ;;  %v5220_v20 = vpop.permute.xlu1 %3747  ;;  %v5226_v37 = vsel %vm1266_vm3, %v5026_v32, %v6796_v10  ;;  %v5232_v34 = vsel %vm1266_vm3, %v5029_v33, %v6795_v12  ;;  %v3921_v10 = vpack.i.bf16 %v303_v36, %v302_v28 }
  0xdf   : > { %6844 = vst [vmem:[#allocation21_spill] sm:$0xff] %v5226_v37  ;;  %6845 = vst [vmem:[#allocation22_spill] sm:$0xff] %v5232_v34  ;;  %v5234_v23 = vpop.permute.xlu0 %3742  ;;  %v3524_v43 = vunpack.i.l.bf16 %v4776_v17 }
  0xe0   : > { %1028 = vrot.lane.b32.xlu1 %v303_v36, %s4298_s13  ;;  %v3744_v34 = vunpack.i.l.bf16 %v5234_v23 }
  0xe1   : > { %v1201_v47 = vsel %vm1200_vm0, %v218_v19, %v3524_v43 }
  0xe2   : > { %1114 = vrot.lane.b32.xlu0 %v5042_v31, %s4299_s26  ;;  %v5239_v56 = vpop.permute.xlu1 %3757 }
  0xe3   : > { %v6798_v55 = vunpack.i.h.bf16 %v5239_v56  ;;  %v5242_v32 = vpop.permute.xlu0 %3752 }
  0xe4   : > { %3912 = vrot.lane.b32.xlu1 %v4609_v42, %s4295_s25  ;;  %v304_v42 = vld [vmem:[%s4340_s20 + $0xaa] sm:$0xff] }
  0xe5   : > { %v5252_v33 = vsel %vm1266_vm3, %v5056_v15, %v6798_v55 }
  0xe6   : > { %1116 = vrot.lane.b32.xlu0 %v5068_v58, %s4299_s26  ;;  %v5254_v12 = vpop.permute.xlu1 %3767 }
  0xe7   : > { %v5256_v31 = vpop.permute.xlu0 %3762 }
  0xe8   : > { %3917 = vrot.lane.b32.xlu1 %v4633_v52, %s4297_s10  ;;  %v3764_v45 = vunpack.i.l.bf16 %v5256_v31 }
  0xea   : > { %1118 = vrot.lane.b32.xlu0 %v5078_v11, %s4299_s26  ;;  %v5263_v58 = vpop.permute.xlu1 %3777 }
  0xeb   : > { %v5265_v13 = vpop.permute.xlu0 %3772 }
  0xec   : > { %1030 = vrot.lane.b32.xlu1 %v304_v42, %s4298_s13 }
  0xee   : > { %3922 = vrot.lane.b32.xlu0 %v3921_v10, %s4296_s7  ;;  %v5269_v15 = vpop.permute.xlu1 %3787  ;;  %v3684_v10 = vunpack.i.l.bf16 %v5060_v51 }
  0xef   : > { %v5271_v55 = vpop.permute.xlu0 %3782  ;;  %v3790_v11 = vunpack.i.h.bf16 %v5269_v15 }
  0xf0   : > { %1122 = vrot.lane.b32.xlu1 %v303_v36, %s4299_s26  ;;  %v1300_v49 = vsel %vm1299_vm4, %v3684_v10, %v3764_v45 }
  0xf2   : > { %1120 = vrot.lane.b32.xlu0 %v302_v28, %s4299_s26  ;;  %v3798_v54 = vpop.permute.xlu1 %3797 }
  0xf3   : > { %v3800_v37 = vunpack.i.h.bf16 %v3798_v54  ;;  %v3799_v36 = vunpack.i.l.bf16 %v3798_v54  ;;  %v3793_v48 = vpop.permute.xlu0 %3792  ;;  %v1324_v54 = vsel %vm1299_vm4, %v3744_v34, %v3790_v11 }
  0xf4   : > { %v3795_v27 = vunpack.i.h.bf16 %v3793_v48  ;;  %v3794_v28 = vunpack.i.l.bf16 %v3793_v48  ;;  %1124 = vrot.lane.b32.xlu1 %v304_v42, %s4299_s26  ;;  %v3936_v48 = vpack.i.bf16 %v305_v41, %v304_v42 }
  0xf6   : > { %1032 = vrot.lane.b32.xlu0 %v305_v41, %s4298_s13  ;;  %v5289_v26 = vpop.permute.xlu1 %1054  ;;  %v1333_v38 = vsel %vm1332_vm5, %v1300_v49, %v3794_v28  ;;  %v1357_v14 = vsel %vm1332_vm5, %v1324_v54, %v3795_v27  ;;  %v1234_v49 = vsel %vm1233_vm1, %v1201_v47, %v3604_v21  ;;  %v4252_v27 = vld [vmem:[%s4340_s20 + $0x120] sm:$0xff]  ;;  %v1503_v47 = vld [vmem:[%s6776_s1 + $0x138] sm:$0xff]  ;;  %v3605_v28 = vunpack.i.h.bf16 %v4866_v8 }
  0xf7   : > { %v5293_v44 = vpop.permute.xlu0 %1006  ;;  %v1366_v0 = vsel %vm1365_vm6, %v1333_v38, %v3799_v36  ;;  %v1390_v6 = vsel %vm1365_vm6, %v1357_v14, %v3800_v37  ;;  %v1225_v42 = vsel %vm1200_vm0, %v4252_v27, %v3584_v9  ;;  %v1267_v14 = vsel %vm1266_vm3, %v1234_v49, %v3684_v10  ;;  %v1502_v9 = vld [vmem:[%s6776_s1 + $0x130] sm:$0xff]  ;;  %v5328_v37 = vld [vmem:[%s4340_s20 + $0xc2] sm:$0xff] }
  0xf8   : > { %1126 = vrot.lane.b32.xlu1 %v305_v41, %s4299_s26  ;;  %v1399_v45 = vsel %vm1398_vm7, %v1366_v0, %v5293_v44  ;;  %v1423_v11 = vsel %vm1398_vm7, %v1390_v6, %v5289_v26  ;;  %v1258_v43 = vsel %vm1233_vm1, %v1225_v42, %v3664_v24  ;;  %v3765_v0 = vunpack.i.h.bf16 %v5256_v31  ;;  %v1501_v36 = vld [vmem:[%s6776_s1 + $0x128] sm:$0xff] }
  0xf9   : > { %1677 = vmatprep.mubr.f32.mxu0 %v1399_v45  ;;  %1797 = vmatprep.mubr.f32.mxu1 %v1423_v11  ;;  %v1291_v41 = vsel %vm1266_vm3, %v1258_v43, %v3744_v34  ;;  %v3525_v34 = vunpack.i.h.bf16 %v4776_v17  ;;  %v3685_v31 = vunpack.i.h.bf16 %v5060_v51  ;;  %v219_v17 = vld [vmem:[%s4340_s20 + $0x8] sm:$0xff]  ;;  %v1500_v11 = vld [vmem:[%s6776_s1 + $0x120] sm:$0xff] }
  0xfa   : > { %3927 = vrot.lane.b32.xlu0 %v4633_v52, %s4295_s25  ;;  %1678 = vmatmul.mubr.f32.vlgmr.msra.gmra.mxu0 %v1267_v14  ;;  %v3808_v38 = vpop.permute.xlu1 %3807  ;;  %v3745_v52 = vunpack.i.h.bf16 %v5234_v23  ;;  %v5354_v49 = vld [vmem:[%s4340_s20 + $0xca] sm:$0xff] }
  0xfb   : > { %1798 = vmatmul.mubr.f32.vlgmr.msra.gmra.mxu1 %v1291_v41  ;;  %v5314_v6 = vpop.permute.xlu0 %3802  ;;  %v3810_v24 = vunpack.i.h.bf16 %v3808_v38  ;;  %v3809_v19 = vunpack.i.l.bf16 %v3808_v38  ;;  %v1301_v51 = vsel %vm1299_vm4, %v3685_v31, %v3765_v0  ;;  %v1202_v43 = vsel %vm1200_vm0, %v219_v17, %v3525_v34  ;;  %v4253_v0 = vld [vmem:[%s4340_s20 + $0x128] sm:$0xff] }
  0xfc   : > { %v3804_v21 = vunpack.i.l.bf16 %v5314_v6  ;;  %3937 = vrot.lane.b32.xlu1 %v3936_v48, %s4296_s7  ;;  %3373 = vmatpush3.msk.msra.mxu1 %vm1609_vm2, %v4939_v7  ;;  %v3805_v34 = vunpack.i.h.bf16 %v5314_v6 }
  0xfd   : > { %3374 = vmatprep.subr.mxu1 %v1503_v47  ;;  %v1334_v8 = vsel %vm1332_vm5, %v1301_v51, %v3809_v19  ;;  %v3529_v51 = vunpack.i.l.bf16 %v4790_v39 }
  0xfe   : > { %3932 = vrot.lane.b32.xlu0 %v4626_v50, %s4297_s10  ;;  %v1325_v7 = vsel %vm1299_vm4, %v3745_v52, %v3804_v21  ;;  %v5335_v10 = vpop.permute.xlu1 %1008  ;;  %3375 = vmatpush3.msra.mxu1 %v1503_v47  ;;  %v3585_v50 = vunpack.i.h.bf16 %v4842_v59  ;;  %v3665_v59 = vunpack.i.h.bf16 %v5031_v22  ;;  %v1235_v47 = vsel %vm1233_vm1, %v1202_v43, %v3605_v28 }
  0xff   : > { %v3813_v54 = vpop.permute.xlu0 %3812  ;;  %3376 = vmatprep.subr.mxu1 %v1502_v9  ;;  %v1358_v27 = vsel %vm1332_vm5, %v1325_v7, %v3810_v24  ;;  %v4255_v24 = vld [vmem:[%s4340_s20 + $0xe1] sm:$0xff]  ;;  %v3769_v7 = vunpack.i.l.bf16 %v5254_v12 }
 0x100   : > { %v3815_v48 = vunpack.i.h.bf16 %v3813_v54  ;;  %v3814_v45 = vunpack.i.l.bf16 %v3813_v54  ;;  %1128 = vrot.lane.b32.xlu1 %v5328_v37, %s4299_s26  ;;  %3377 = vmatpush3.msra.mxu1 %v1502_v9  ;;  %v1226_v21 = vsel %vm1200_vm0, %v4253_v0, %v3585_v50  ;;  %v4254_v9 = vld [vmem:[%s4340_s20 + $0xd9] sm:$0xff] }
 0x101   : > { %3378 = vmatprep.subr.mxu1 %v1501_v36  ;;  %v3941_v19 = vpack.i.bf16 %v4255_v24, %v4254_v9  ;;  %v1499_v50 = vld [vmem:[%s6776_s1 + $0x118] sm:$0xff]  ;;  %v1259_v6 = vsel %vm1233_vm1, %v1226_v21, %v3665_v59  ;;  %v1498_v59 = vld [vmem:[%s6776_s1 + $0x110] sm:$0xff]  ;;  %v1497_v21 = vld [vmem:[%s6776_s1 + $0x108] sm:$0xff]  ;;  %v3669_v9 = vunpack.i.l.bf16 %v5023_v3 }
 0x102   : > { %1034 = vrot.lane.b32.xlu0 %v5328_v37, %s4298_s13  ;;  %v3818_v42 = vpop.permute.xlu1 %3817  ;;  %v1367_v14 = vsel %vm1365_vm6, %v1334_v8, %v3814_v45  ;;  %v1391_v41 = vsel %vm1365_vm6, %v1358_v27, %v3815_v48  ;;  %3379 = vmatpush3.msra.mxu1 %v1501_v36  ;;  %v1268_v36 = vsel %vm1266_vm3, %v1235_v47, %v3685_v31  ;;  %v3689_v31 = vunpack.i.l.bf16 %v5058_v18  ;;  %v5391_v27 = vld [vmem:[%s4340_s20 + $0xda] sm:$0xff] }
 0x103   : > { %v5360_v22 = vpop.permute.xlu0 %1056  ;;  %v1400_v38 = vsel %vm1398_vm7, %v1367_v14, %v5335_v10  ;;  %3380 = vmatprep.subr.mxu1 %v1500_v11  ;;  %v3820_v54 = vunpack.i.h.bf16 %v3818_v42  ;;  %v3819_v17 = vunpack.i.l.bf16 %v3818_v42  ;;  %v3749_v48 = vunpack.i.l.bf16 %v5220_v20 }
 0x104   : > { %1682 = vmatprep.mubr.f32.mxu0 %v1400_v38  ;;  %1036 = vrot.lane.b32.xlu1 %v5354_v49, %s4298_s13  ;;  %v1424_v28 = vsel %vm1398_vm7, %v1391_v41, %v5360_v22  ;;  %v1292_v45 = vsel %vm1266_vm3, %v1259_v6, %v3745_v52  ;;  %v3589_v42 = vunpack.i.l.bf16 %v4836_v40  ;;  %v3609_v14 = vunpack.i.l.bf16 %v4861_v4  ;;  %v4256_v41 = vld [vmem:[%s4340_s20 + $0xf1] sm:$0xff]  ;;  %v4257_v38 = vld [vmem:[%s4340_s20 + $0xf9] sm:$0xff] }
 0x105   : > { %1683 = vmatmul.mubr.f32.gmra.mxu0 %v1268_v36  ;;  %1802 = vmatprep.mubr.f32.mxu1 %v1424_v28  ;;  %v5400_v23 = vpack.i.bf16 %v4257_v38, %v4256_v41  ;;  %v1302_v52 = vsel %vm1299_vm4, %v3689_v31, %v3769_v7  ;;  %v5417_v36 = vld [vmem:[%s4340_s20 + $0xe2] sm:$0xff]  ;;  %v4258_v28 = vld [vmem:[%s4340_s20 + $0x18] sm:$0xff] }
 0x106   : > { %1130 = vrot.lane.b32.xlu0 %v5354_v49, %s4299_s26  ;;  %v5388_v8 = vpop.permute.xlu1 %1010  ;;  %3381 = vmatpush3.msra.mxu1 %v1500_v11  ;;  %v1326_v11 = vsel %vm1299_vm4, %v3749_v48, %v3805_v34  ;;  %v1335_v24 = vsel %vm1332_vm5, %v1302_v52, %v3819_v17  ;;  %v4259_v41 = vld [vmem:[%s4340_s20 + $0x138] sm:$0xff]  ;;  %v1496_v38 = vld [vmem:[%s6776_s1 + $0x100] sm:$0xff]  ;;  %v3770_v52 = vunpack.i.h.bf16 %v5254_v12  ;;  %v3690_v12 = vunpack.i.h.bf16 %v5058_v18 }
 0x107   : > { %1803 = vmatmul.mubr.f32.gmra.mxu1 %v1292_v45  ;;  %v3823_v43 = vpop.permute.xlu0 %3822  ;;  %3382 = vmatprep.subr.mxu1 %v1499_v50  ;;  %v1359_v7 = vsel %vm1332_vm5, %v1326_v11, %v3820_v54  ;;  %v3670_v18 = vunpack.i.h.bf16 %v5023_v3 }
 0x108   : > { %v3825_v47 = vunpack.i.h.bf16 %v3823_v43  ;;  %v3824_v0 = vunpack.i.l.bf16 %v3823_v43  ;;  %3942 = vrot.lane.b32.xlu1 %v3941_v19, %s4295_s25  ;;  %3383 = vmatpush3.msra.mxu1 %v1499_v50  ;;  %v1203_v50 = vsel %vm1200_vm0, %v4258_v28, %v3529_v51 }
 0x109   : > { %3384 = vmatprep.subr.mxu1 %v1498_v59  ;;  %v1236_v54 = vsel %vm1233_vm1, %v1203_v50, %v3609_v14  ;;  %v3951_v14 = vpack.i.bf16 %v5354_v49, %v5328_v37 }
 0x10a   : > { %1132 = vrot.lane.b32.xlu0 %v5391_v27, %s4299_s26  ;;  %v5413_v34 = vpop.permute.xlu1 %3827  ;;  %v1368_v19 = vsel %vm1365_vm6, %v1335_v24, %v3824_v0  ;;  %v1392_v6 = vsel %vm1365_vm6, %v1359_v7, %v3825_v47  ;;  %3385 = vmatpush3.msra.mxu1 %v1498_v59  ;;  %v1269_v43 = vsel %vm1266_vm3, %v1236_v54, %v3689_v31  ;;  %v3530_v47 = vunpack.i.h.bf16 %v4790_v39  ;;  %v4260_v54 = vld [vmem:[%s4340_s20 + $0x20] sm:$0xff] }
 0x10b   : > { %v5422_v45 = vpop.permute.xlu0 %1058  ;;  %v1401_v17 = vsel %vm1398_vm7, %v1368_v19, %v5388_v8  ;;  %3386 = vmatprep.subr.mxu1 %v1497_v21  ;;  %v1227_v59 = vsel %vm1200_vm0, %v4259_v41, %v3589_v42  ;;  %v3829_v11 = vunpack.i.l.bf16 %v5413_v34  ;;  %v3750_v24 = vunpack.i.h.bf16 %v5220_v20 }
 0x10c   : > { %1687 = vmatprep.mubr.f32.mxu0 %v1401_v17  ;;  %3947 = vrot.lane.b32.xlu1 %v5400_v23, %s4297_s10  ;;  %v1425_v51 = vsel %vm1398_vm7, %v1392_v6, %v5422_v45  ;;  %v1260_v31 = vsel %vm1233_vm1, %v1227_v59, %v3669_v9  ;;  %v3590_v19 = vunpack.i.h.bf16 %v4836_v40  ;;  %v3610_v9 = vunpack.i.h.bf16 %v4861_v4  ;;  %v5459_v40 = vld [vmem:[%s4340_s20 + $0xf2] sm:$0xff] }
 0x10d   : > { %1688 = vmatmul.mubr.f32.gmra.mxu0 %v1269_v43  ;;  %1807 = vmatprep.mubr.f32.mxu1 %v1425_v51  ;;  %v1293_v42 = vsel %vm1266_vm3, %v1260_v31, %v3749_v48  ;;  %v1303_v20 = vsel %vm1299_vm4, %v3690_v12, %v3770_v52  ;;  %v1327_v48 = vsel %vm1299_vm4, %v3750_v24, %v3829_v11  ;;  %v3830_v11 = vunpack.i.h.bf16 %v5413_v34 }
 0x10e   : > { %1134 = vrot.lane.b32.xlu0 %v5417_v36, %s4299_s26  ;;  %v3838_v0 = vpop.permute.xlu1 %3837  ;;  %3387 = vmatpush3.msra.mxu1 %v1497_v21  ;;  %v1204_v43 = vsel %vm1200_vm0, %v4260_v54, %v3530_v47  ;;  %v3754_v34 = vunpack.i.l.bf16 %v5242_v32 }
 0x10f   : > { %1808 = vmatmul.mubr.f32.gmra.mxu1 %v1293_v42  ;;  %v3840_v37 = vunpack.i.h.bf16 %v3838_v0  ;;  %v3839_v49 = vunpack.i.l.bf16 %v3838_v0  ;;  %v3833_v7 = vpop.permute.xlu0 %3832  ;;  %3388 = vmatprep.subr.mxu1 %v1496_v38  ;;  %v1237_v59 = vsel %vm1233_vm1, %v1204_v43, %v3610_v9  ;;  %v3534_v42 = vunpack.i.l.bf16 %v4772_v2 }
 0x110   : > { %v3835_v39 = vunpack.i.h.bf16 %v3833_v7  ;;  %v3834_v28 = vunpack.i.l.bf16 %v3833_v7  ;;  %1038 = vrot.lane.b32.xlu1 %v5391_v27, %s4298_s13  ;;  %3389 = vmatpush3.msra.mxu1 %v1496_v38  ;;  %v4261_v38 = vld [vmem:[%s4340_s20 + $0x140] sm:$0xff]  ;;  %v1270_v31 = vsel %vm1266_vm3, %v1237_v59, %v3690_v12  ;;  %v3694_v7 = vunpack.i.l.bf16 %v5071_v5  ;;  %v4262_v59 = vld [vmem:[%s4340_s20 + $0x30] sm:$0xff] }
 0x111   : > { %v1228_v52 = vsel %vm1200_vm0, %v4261_v38, %v3590_v19  ;;  %v1205_v38 = vsel %vm1200_vm0, %v4262_v59, %v3534_v42 }
 0x112   : > { %3952 = vrot.lane.b32.xlu0 %v3951_v14, %s4296_s7  ;;  %v5456_v21 = vpop.permute.xlu1 %1060  ;;  %v1336_v4 = vsel %vm1332_vm5, %v1303_v20, %v3834_v28  ;;  %v1360_v50 = vsel %vm1332_vm5, %v1327_v48, %v3835_v39  ;;  %v3774_v14 = vunpack.i.l.bf16 %v5265_v13  ;;  %v1261_v47 = vsel %vm1233_vm1, %v1228_v52, %v3670_v18 }
 0x113   : > { %v5463_v6 = vpop.permute.xlu0 %1012  ;;  %v1369_v17 = vsel %vm1365_vm6, %v1336_v4, %v3839_v49  ;;  %v1393_v3 = vsel %vm1365_vm6, %v1360_v50, %v3840_v37  ;;  %v1294_v0 = vsel %vm1266_vm3, %v1261_v47, %v3750_v24  ;;  %v5487_v49 = vld [vmem:[%s4340_s20 + $0xfa] sm:$0xff]  ;;  %v3594_v39 = vunpack.i.l.bf16 %v4851_v62 }
 0x114   : > { %1040 = vrot.lane.b32.xlu1 %v5417_v36, %s4298_s13  ;;  %v1402_v51 = vsel %vm1398_vm7, %v1369_v17, %v5463_v6  ;;  %v1426_v41 = vsel %vm1398_vm7, %v1393_v3, %v5456_v21  ;;  %v3614_v28 = vunpack.i.l.bf16 %v4884_v35  ;;  %v3674_v24 = vunpack.i.l.bf16 %v5045_v1  ;;  %v5503_v17 = vld [vmem:[%s4340_s20 + $0x10a] sm:$0xff] }
 0x115   : > { %1692 = vmatprep.mubr.f32.mxu0 %v1402_v51  ;;  %1812 = vmatprep.mubr.f32.mxu1 %v1426_v41  ;;  %v1304_v48 = vsel %vm1299_vm4, %v3694_v7, %v3774_v14  ;;  %v1328_v4 = vsel %vm1299_vm4, %v3754_v34, %v3830_v11 }
 0x116   : > { %1136 = vrot.lane.b32.xlu0 %v5459_v40, %s4299_s26  ;;  %1693 = vmatmul.mubr.f32.gmra.mxu0 %v1270_v31  ;;  %v3848_v37 = vpop.permute.xlu1 %3847  ;;  %v1238_v11 = vsel %vm1233_vm1, %v1205_v38, %v3614_v28  ;;  %v4263_v31 = vld [vmem:[%s4340_s20 + $0x150] sm:$0xff] }
 0x117   : > { %1813 = vmatmul.mubr.f32.gmra.mxu1 %v1294_v0  ;;  %v3850_v19 = vunpack.i.h.bf16 %v3848_v37  ;;  %v3849_v9 = vunpack.i.l.bf16 %v3848_v37  ;;  %v3843_v12 = vpop.permute.xlu0 %3842  ;;  %v1229_v47 = vsel %vm1200_vm0, %v4263_v31, %v3594_v39  ;;  %v1271_v42 = vsel %vm1266_vm3, %v1238_v11, %v3694_v7 }
 0x118   : > { %v3845_v18 = vunpack.i.h.bf16 %v3843_v12  ;;  %v3844_v20 = vunpack.i.l.bf16 %v3843_v12  ;;  %1042 = vrot.lane.b32.xlu1 %v5459_v40, %s4298_s13  ;;  %v1262_v0 = vsel %vm1233_vm1, %v1229_v47, %v3674_v24  ;;  %v3755_v12 = vunpack.i.h.bf16 %v5242_v32  ;;  %v4265_v24 = vld [vmem:[%s4340_s20 + $0x111] sm:$0xff] }
 0x119   : > { %v1295_v37 = vsel %vm1266_vm3, %v1262_v0, %v3754_v34  ;;  %v3775_v39 = vunpack.i.h.bf16 %v5265_v13  ;;  %v3966_v7 = vpack.i.bf16 %v5417_v36, %v5391_v27  ;;  %v4264_v34 = vld [vmem:[%s4340_s20 + $0x109] sm:$0xff]  ;;  %v3535_v32 = vunpack.i.h.bf16 %v4772_v2 }
 0x11a   : > { %1138 = vrot.lane.b32.xlu0 %v5487_v49, %s4299_s26  ;;  %v5500_v50 = vpop.permute.xlu1 %1062  ;;  %v1337_v3 = vsel %vm1332_vm5, %v1304_v48, %v3844_v20  ;;  %v1361_v54 = vsel %vm1332_vm5, %v1328_v4, %v3845_v18  ;;  %v5540_v48 = vpack.i.bf16 %v4265_v24, %v4264_v34  ;;  %v3695_v13 = vunpack.i.h.bf16 %v5071_v5  ;;  %v6846_v24 = vld [vmem:[#allocation2_spill] sm:$0xff] }
 0x11b   : > { %v5507_v43 = vpop.permute.xlu0 %1014  ;;  %v1370_v51 = vsel %vm1365_vm6, %v1337_v3, %v3849_v9  ;;  %v1394_v41 = vsel %vm1365_vm6, %v1361_v54, %v3850_v19  ;;  %v3595_v4 = vunpack.i.h.bf16 %v4851_v62  ;;  %v3615_v3 = vunpack.i.h.bf16 %v4884_v35 }
 0x11c   : > { %3957 = vrot.lane.b32.xlu1 %v5400_v23, %s4295_s25  ;;  %v1403_v52 = vsel %vm1398_vm7, %v1370_v51, %v5507_v43  ;;  %v1427_v14 = vsel %vm1398_vm7, %v1394_v41, %v5500_v50  ;;  %v5527_v23 = vld [vmem:[%s4340_s20 + $0x112] sm:$0xff]  ;;  %v1305_v51 = vsel %vm1299_vm4, %v3695_v13, %v3775_v39  ;;  %v3675_v2 = vunpack.i.h.bf16 %v5045_v1  ;;  %v4268_v39 = vld [vmem:[%s4340_s20 + $0x122] sm:$0xff] }
 0x11d   : > { %1697 = vmatprep.mubr.f32.mxu0 %v1403_v52  ;;  %1817 = vmatprep.mubr.f32.mxu1 %v1427_v14  ;;  %v4266_v52 = vld [vmem:[%s4340_s20 + $0x38] sm:$0xff] }
 0x11e   : > { %1140 = vrot.lane.b32.xlu0 %v5503_v17, %s4299_s26  ;;  %1698 = vmatmul.mubr.f32.gmra.mxu0 %v1271_v42  ;;  %v3858_v19 = vpop.permute.xlu1 %3857  ;;  %v1206_v14 = vsel %vm1200_vm0, %v4266_v52, %v3535_v32  ;;  %v4267_v42 = vld [vmem:[%s4340_s20 + $0x158] sm:$0xff]  ;;  %v3699_v32 = vunpack.i.l.bf16 %v5065_v46 }
 0x11f   : > { %1818 = vmatmul.mubr.f32.gmra.mxu1 %v1295_v37  ;;  %v3853_v9 = vpop.permute.xlu0 %3852  ;;  %v3860_v18 = vunpack.i.h.bf16 %v3858_v19  ;;  %v3859_v20 = vunpack.i.l.bf16 %v3858_v19  ;;  %v1239_v47 = vsel %vm1233_vm1, %v1206_v14, %v3615_v3  ;;  %v1230_v0 = vsel %vm1200_vm0, %v4267_v42, %v3595_v4 }
 0x120   : > { %v3854_v28 = vunpack.i.l.bf16 %v3853_v9  ;;  %1142 = vrot.lane.b32.xlu1 %v5527_v23, %s4299_s26  ;;  %v3779_v37 = vunpack.i.l.bf16 %v5263_v58  ;;  %v3855_v19 = vunpack.i.h.bf16 %v3853_v9  ;;  %v1263_v34 = vsel %vm1233_vm1, %v1230_v0, %v3675_v2 }
 0x121   : > { %v1338_v5 = vsel %vm1332_vm5, %v1305_v51, %v3859_v20  ;;  %v3539_v9 = vunpack.i.l.bf16 %v6846_v24  ;;  %v3599_v3 = vunpack.i.l.bf16 %v4849_v61 }
 0x122   : > { %1044 = vrot.lane.b32.xlu0 %v5487_v49, %s4298_s13  ;;  %v1329_v27 = vsel %vm1299_vm4, %v3755_v12, %v3854_v28  ;;  %v5545_v36 = vpop.permute.xlu1 %1016 }
 0x123   : > { %v3863_v54 = vpop.permute.xlu0 %3862  ;;  %v1362_v62 = vsel %vm1332_vm5, %v1329_v27, %v3860_v18  ;;  %v3759_v27 = vunpack.i.l.bf16 %v5239_v56 }
 0x124   : > { %v3865_v41 = vunpack.i.h.bf16 %v3863_v54  ;;  %v3864_v59 = vunpack.i.l.bf16 %v3863_v54  ;;  %3967 = vrot.lane.b32.xlu1 %v3966_v7, %s4296_s7  ;;  %v1272_v7 = vsel %vm1266_vm3, %v1239_v47, %v3695_v13  ;;  %v1296_v13 = vsel %vm1266_vm3, %v1263_v34, %v3755_v12  ;;  %v6847_v54 = vld [vmem:[#allocation3_spill] sm:$0xff] }
 0x125   : > { %v3619_v51 = vunpack.i.l.bf16 %v6847_v54  ;;  %v1330_v2 = vsel %vm1299_vm4, %v3759_v27, %v3855_v19  ;;  %v3679_v12 = vunpack.i.l.bf16 %v5039_v53 }
 0x126   : > { %3962 = vrot.lane.b32.xlu0 %v5540_v48, %s4297_s10  ;;  %v3868_v38 = vpop.permute.xlu1 %3867  ;;  %v1371_v35 = vsel %vm1365_vm6, %v1338_v5, %v3864_v59  ;;  %v1395_v11 = vsel %vm1365_vm6, %v1362_v62, %v3865_v41  ;;  %v1306_v59 = vsel %vm1299_vm4, %v3699_v32, %v3779_v37  ;;  %v4271_v37 = vld [vmem:[%s4340_s20 + $0x13a] sm:$0xff] }
 0x127   : > { %v5560_v31 = vpop.permute.xlu0 %1064  ;;  %v1404_v1 = vsel %vm1398_vm7, %v1371_v35, %v5545_v36  ;;  %v3870_v18 = vunpack.i.h.bf16 %v3868_v38  ;;  %v3869_v20 = vunpack.i.l.bf16 %v3868_v38  ;;  %v4269_v38 = vld [vmem:[%s4340_s20 + $0x12a] sm:$0xff] }
 0x128   : > { %1702 = vmatprep.mubr.f32.mxu0 %v1404_v1  ;;  %1144 = vrot.lane.b32.xlu1 %v4268_v39, %s4299_s26  ;;  %v1428_v28 = vsel %vm1398_vm7, %v1395_v11, %v5560_v31  ;;  %v4270_v11 = vld [vmem:[%s4340_s20 + $0x48] sm:$0xff] }
 0x129   : > { %1703 = vmatmul.mubr.f32.gmra.mxu0 %v1272_v7  ;;  %1822 = vmatprep.mubr.f32.mxu1 %v1428_v28  ;;  %v1339_v61 = vsel %vm1332_vm5, %v1306_v59, %v3869_v20  ;;  %v1363_v35 = vsel %vm1332_vm5, %v1330_v2, %v3870_v18  ;;  %v1207_v1 = vsel %vm1200_vm0, %v4270_v11, %v3539_v9  ;;  %v4272_v28 = vld [vmem:[%s4340_s20 + $0x168] sm:$0xff]  ;;  %v3780_v20 = vunpack.i.h.bf16 %v5263_v58 }
 0x12a   : > { %1046 = vrot.lane.b32.xlu0 %v5503_v17, %s4298_s13  ;;  %v5580_v4 = vpop.permute.xlu1 %1018  ;;  %1823 = vmatmul.mubr.f32.gmra.mxu1 %v1296_v13  ;;  %v1240_v0 = vsel %vm1233_vm1, %v1207_v1, %v3619_v51  ;;  %v1231_v18 = vsel %vm1200_vm0, %v4272_v28, %v3599_v3  ;;  %v4273_v58 = vld [vmem:[%s4340_s20 + $0x121] sm:$0xff]  ;;  %v4274_v59 = vld [vmem:[%s4340_s20 + $0x129] sm:$0xff]  ;;  %v3784_v11 = vunpack.i.l.bf16 %v5271_v55  ;;  %v3981_v1 = vpack.i.bf16 %v5487_v49, %v5459_v40 }
 0x12b   : > { %v1273_v19 = vsel %vm1266_vm3, %v1240_v0, %v3699_v32  ;;  %v1264_v24 = vsel %vm1233_vm1, %v1231_v18, %v3679_v12  ;;  %v3976_v2 = vpack.i.bf16 %v4274_v59, %v4273_v58  ;;  %v4276_v18 = vld [vmem:[%s4340_s20 + $0x152] sm:$0xff]  ;;  %v6850_v40 = vunpack.i.l.bf16 %v5090_v29 }
 0x12c   : > { %v3873_v41 = vpop.permute.xlu0 %3872  ;;  %1146 = vrot.lane.b32.xlu1 %v4269_v38, %s4299_s26  ;;  %v1297_v9 = vsel %vm1266_vm3, %v1264_v24, %v3759_v27 }
 0x12d   : > { %v3875_v5 = vunpack.i.h.bf16 %v3873_v41  ;;  %v3874_v62 = vunpack.i.l.bf16 %v3873_v41 }
 0x12e   : > { %1048 = vrot.lane.b32.xlu0 %v5527_v23, %s4298_s13  ;;  %v5593_v52 = vpop.permute.xlu1 %3877 }
 0x12f   : > { %v1372_v14 = vsel %vm1365_vm6, %v1339_v61, %v3874_v62  ;;  %v1396_v47 = vsel %vm1365_vm6, %v1363_v35, %v3875_v5  ;;  %v3879_v34 = vunpack.i.l.bf16 %v5593_v52  ;;  %v6849_v62 = vunpack.i.h.bf16 %v5239_v56 }
 0x130   : > { %v5599_v42 = vpop.permute.xlu0 %1066  ;;  %v1405_v53 = vsel %vm1398_vm7, %v1372_v14, %v5580_v4  ;;  %1148 = vrot.lane.b32.xlu1 %v4271_v37, %s4299_s26 }
 0x131   : > { %1707 = vmatprep.mubr.f32.mxu0 %v1405_v53  ;;  %v1429_v7 = vsel %vm1398_vm7, %v1396_v47, %v5599_v42  ;;  %v1331_v27 = vsel %vm1299_vm4, %v6849_v62, %v3879_v34  ;;  %v4275_v47 = vld [vmem:[%s4340_s20 + $0x142] sm:$0xff]  ;;  %v3785_v53 = vunpack.i.h.bf16 %v5271_v55  ;;  %v1308_v55 = vsel %vm1299_vm4, %v6850_v40, %v3784_v11  ;;  %v324_v11 = vld [vmem:[%s4340_s20 + $0x19a] sm:$0xff] }
 0x132   : > { %1050 = vrot.lane.b32.xlu0 %v4268_v39, %s4298_s13  ;;  %1708 = vmatmul.mubr.f32.gmra.mxu0 %v1273_v19  ;;  %v3888_v32 = vpop.permute.xlu1 %3887  ;;  %v6848_v39 = vunpack.i.h.bf16 %v5065_v46 }
 0x133   : > { %1827 = vmatprep.mubr.f32.mxu1 %v1429_v7  ;;  %v3890_v13 = vunpack.i.h.bf16 %v3888_v32  ;;  %v3889_v54 = vunpack.i.l.bf16 %v3888_v32 }
 0x134   : > { %1828 = vmatmul.mubr.f32.gmra.mxu1 %v1297_v9  ;;  %v3883_v51 = vpop.permute.xlu0 %3882  ;;  %1052 = vrot.lane.b32.xlu1 %v4269_v38, %s4298_s13  ;;  %v1307_v5 = vsel %vm1299_vm4, %v6848_v39, %v3780_v20  ;;  %v4279_v39 = vld [vmem:[%s4340_s20 + $0x172] sm:$0xff] }
 0x135   : > { %v3885_v3 = vunpack.i.h.bf16 %v3883_v51  ;;  %v3884_v41 = vunpack.i.l.bf16 %v3883_v51  ;;  %v4278_v51 = vld [vmem:[%s4340_s20 + $0x15a] sm:$0xff] }
 0x136   : > { %3972 = vrot.lane.b32.xlu0 %v5540_v48, %s4295_s25  ;;  %v5627_v12 = vpop.permute.xlu1 %1068 }
 0x137   : > { %v1340_v61 = vsel %vm1332_vm5, %v1307_v5, %v3884_v41  ;;  %v1364_v38 = vsel %vm1332_vm5, %v1331_v27, %v3885_v3  ;;  %v4281_v5 = vld [vmem:[%s4340_s20 + $0x141] sm:$0xff] }
 0x138   : > { %v5631_v35 = vpop.permute.xlu0 %1020  ;;  %v1373_v14 = vsel %vm1365_vm6, %v1340_v61, %v3889_v54  ;;  %v1397_v46 = vsel %vm1365_vm6, %v1364_v38, %v3890_v13  ;;  %3977 = vrot.lane.b32.xlu1 %v3976_v2, %s4297_s10  ;;  %v4277_v54 = vld [vmem:[%s4340_s20 + $0x16a] sm:$0xff] }
 0x139   : > { %v1406_v56 = vsel %vm1398_vm7, %v1373_v14, %v5631_v35  ;;  %v1430_v48 = vsel %vm1398_vm7, %v1397_v46, %v5627_v12 }
 0x13a   : > { %1150 = vrot.lane.b32.xlu0 %v4275_v47, %s4299_s26  ;;  %1712 = vmatprep.mubr.f32.mxu0 %v1406_v56  ;;  %v3898_v0 = vpop.permute.xlu1 %3897 }
 0x13b   : > { %1832 = vmatprep.mubr.f32.mxu1 %v1430_v48  ;;  %1713 = vmatmul.mubr.f32.gmra.mxu0 %v5084_v57  ;;  %v3899_v37 = vunpack.i.l.bf16 %v3898_v0  ;;  %v6851_v57 = vunpack.i.h.bf16 %v5090_v29  ;;  %v3900_v49 = vunpack.i.h.bf16 %v3898_v0  ;;  %v4282_v48 = vld [vmem:[%s4340_s20 + $0x182] sm:$0xff] }
 0x13c   : > { %1833 = vmatmul.mubr.f32.gmra.mxu1 %v5252_v33  ;;  %v3893_v19 = vpop.permute.xlu0 %3892  ;;  %1152 = vrot.lane.b32.xlu1 %v4276_v18, %s4299_s26  ;;  %v325_v18 = vld [vmem:[%s4340_s20 + $0x1a2] sm:$0xff] }
 0x13d   : > { %v3895_v7 = vunpack.i.h.bf16 %v3893_v19  ;;  %v3894_v28 = vunpack.i.l.bf16 %v3893_v19  ;;  %v1309_v33 = vsel %vm1299_vm4, %v6851_v57, %v3785_v53 }
 0x13e   : > { %3982 = vrot.lane.b32.xlu0 %v3981_v1, %s4296_s7  ;;  %v1105_v20 = vpop.permute.xlu1 %1104 }
 0x13f   : > { %v1341_v34 = vsel %vm1332_vm5, %v1308_v55, %v3894_v28  ;;  %v1432_v24 = vsel %vm1431_vm8, %v5293_v44, %v1105_v20  ;;  %v1342_v13 = vsel %vm1332_vm5, %v1309_v33, %v3895_v7 }
 0x140   : > { %v5660_v9 = vpop.permute.xlu0 %1022  ;;  %v1374_v32 = vsel %vm1365_vm6, %v1341_v34, %v3899_v37  ;;  %1156 = vrot.lane.b32.xlu1 %v4277_v54, %s4299_s26  ;;  %3390 = vmatprep.mubr.msk.f32.mxu1 %vm1512_vm9, %v1432_v24  ;;  %v1375_v3 = vsel %vm1365_vm6, %v1342_v13, %v3900_v49 }
 0x141   : > { %v1407_v29 = vsel %vm1398_vm7, %v1374_v32, %v5660_v9 }
 0x142   : > { %1154 = vrot.lane.b32.xlu0 %v4278_v51, %s4299_s26  ;;  %1717 = vmatprep.mubr.f32.mxu0 %v1407_v29  ;;  %v5672_v44 = vpop.permute.xlu1 %1024 }
 0x143   : > { %1718 = vmatmul.mubr.f32.gmra.mxu0 %v5116_v30  ;;  %v1408_v58 = vsel %vm1398_vm7, %v1375_v3, %v5672_v44  ;;  %v4280_v30 = vld [vmem:[%s4340_s20 + $0x139] sm:$0xff] }
 0x144   : > { %v1107_v41 = vpop.permute.xlu0 %1106  ;;  %1158 = vrot.lane.b32.xlu1 %v4279_v39, %s4299_s26  ;;  %1722 = vmatprep.mubr.f32.mxu0 %v1408_v58  ;;  %v3991_v62 = vpack.i.bf16 %v4281_v5, %v4280_v30  ;;  %v6855_v39 = vld [vmem:[#allocation6_spill] sm:$0xff] }
 0x145   : > { %v1433_v59 = vsel %vm1431_vm8, %v5335_v10, %v1107_v41  ;;  %v6856_v30 = vunpack.i.l.bf16 %v6855_v39 }
 0x146   : > { %3987 = vrot.lane.b32.xlu0 %v3976_v2, %s4295_s25  ;;  %3391 = vmatmul.mubr.msk.f32.vlgmr.msra.gmra.mxu1 %vm1512_vm9, %v1433_v59  ;;  %v1111_v27 = vpop.permute.xlu1 %1110  ;;  %v3789_v2 = vunpack.i.l.bf16 %v5269_v15  ;;  %s3329_s25 = sshll.u32 %s6928_s16, 8 }
 0x147   : > { %1723 = vmatmul.mubr.f32.gmra.mxu0 %v5122_v16  ;;  %v1435_v61 = vsel %vm1431_vm8, %v5463_v6, %v1111_v27  ;;  %v3880_v16 = vunpack.i.h.bf16 %v5593_v52  ;;  %v6853_v52 = vunpack.i.h.bf16 %v5086_v63  ;;  %s5725_s24 = scalar_lea.vmem %s6778_s3, %s3329_s25  ;;  %s6634_s28 = scalar_lea.vmem %s6779_s4, %s3329_s25 }
 0x148   : > { %v1109_v38 = vpop.permute.xlu0 %1108  ;;  %952 = vrot.lane.b32.xlu1 %v5503_v17, %s4296_s7  ;;  %v6852_v17 = vunpack.i.l.bf16 %v5086_v63  ;;  %v2288_v20 = vld [vmem:[%s5725_s24 + $0x8] sm:$0xff]  ;;  %v2290_v13 = vld [vmem:[%s5725_s24 + $0x18] sm:$0xff] }
 0x149   : > { %v1434_v10 = vsel %vm1431_vm8, %v5388_v8, %v1109_v38  ;;  %v1311_v1 = vsel %vm1299_vm4, %v6853_v52, %v3880_v16  ;;  %v2292_v58 = vld [vmem:[%s5725_s24 + $0x28] sm:$0xff] }
 0x14a   : > { %3992 = vrot.lane.b32.xlu0 %v3991_v62, %s4297_s10  ;;  %3393 = vmatprep.mubr.msk.f32.mxu1 %vm1512_vm9, %v1434_v10  ;;  %v3908_v6 = vpop.permute.xlu1 %3907  ;;  %v1310_v15 = vsel %vm1299_vm4, %v6852_v17, %v3789_v2  ;;  %v6857_v17 = vunpack.i.h.bf16 %v6855_v39 }
 0x14b   : > { %3394 = vmatmul.mubr.msk.f32.gmra.mxu1 %vm1512_vm9, %v1435_v61  ;;  %v3909_v14 = vunpack.i.l.bf16 %v3908_v6  ;;  %v3910_v47 = vunpack.i.h.bf16 %v3908_v6  ;;  %v2295_v61 = vld [vmem:[%s5725_s24 + $0x40] sm:$0xff] }
 0x14c   : > { %v3903_v46 = vpop.permute.xlu0 %3902  ;;  %1162 = vrot.lane.b32.xlu1 %v5037_v25, %s4299_s26 }
 0x14d   : > { %v3905_v56 = vunpack.i.h.bf16 %v3903_v46  ;;  %v3904_v8 = vunpack.i.l.bf16 %v3903_v46 }
 0x14e   : > { %1160 = vrot.lane.b32.xlu0 %v4282_v48, %s4299_s26  ;;  %v1113_v53 = vpop.permute.xlu1 %1112  ;;  %v6858_v48 = vld [vmem:[#allocation10_spill] sm:$0xff] }
 0x14f   : > { %v1343_v0 = vsel %vm1332_vm5, %v1310_v15, %v3904_v8  ;;  %v1436_v25 = vsel %vm1431_vm8, %v5507_v43, %v1113_v53  ;;  %v1344_v7 = vsel %vm1332_vm5, %v1311_v1, %v3905_v56  ;;  %v2287_v43 = vld [vmem:[%s5725_s24] sm:$0xff]  ;;  %v2294_v56 = vld [vmem:[%s5725_s24 + $0x38] sm:$0xff]  ;;  %v2296_v53 = vld [vmem:[%s5725_s24 + $0x48] sm:$0xff] }
 0x150   : > { %v5712_v37 = vpop.permute.xlu0 %1026  ;;  %v1376_v19 = vsel %vm1365_vm6, %v1343_v0, %v3909_v14  ;;  %1164 = vrot.lane.b32.xlu1 %v324_v11, %s4299_s26  ;;  %3396 = vmatprep.mubr.msk.f32.mxu1 %vm1512_vm9, %v1436_v25  ;;  %v1377_v40 = vsel %vm1365_vm6, %v1344_v7, %v3910_v47  ;;  %v6859_v25 = vld [vmem:[#allocation11_spill] sm:$0xff] }
 0x151   : > { %v1409_v63 = vsel %vm1398_vm7, %v1376_v19, %v5712_v37 }
 0x152   : > { %954 = vrot.lane.b32.xlu0 %v5527_v23, %s4296_s7  ;;  %1727 = vmatprep.mubr.f32.mxu0 %v1409_v63  ;;  %v5731_v28 = vpop.permute.xlu1 %1028  ;;  %v6854_v23 = vld [vmem:[#allocation4_spill] sm:$0xff]  ;;  %v2298_v63 = vld [vmem:[%s5725_s24 + $0x58] sm:$0xff] }
 0x153   : > { %1728 = vmatmul.mubr.f32.gmra.mxu0 %v5102_v60  ;;  %v1410_v57 = vsel %vm1398_vm7, %v1377_v40, %v5731_v28  ;;  %v2289_v60 = vld [vmem:[%s5725_s24 + $0x10] sm:$0xff] }
 0x154   : > { %v1115_v55 = vpop.permute.xlu0 %1114  ;;  %1732 = vmatprep.mubr.f32.mxu0 %v1410_v57  ;;  %2351 = vrot.lane.b32.xlu1 %v2287_v43, %s4299_s26  ;;  %v2299_v43 = vld [vmem:[%s5725_s24 + $0x60] sm:$0xff] }
 0x155   : > { %v1437_v33 = vsel %vm1431_vm8, %v5545_v36, %v1115_v55  ;;  %v2291_v36 = vld [vmem:[%s5725_s24 + $0x20] sm:$0xff] }
 0x156   : > { %1166 = vrot.lane.b32.xlu0 %v325_v18, %s4299_s26  ;;  %3397 = vmatmul.mubr.msk.f32.gmra.mxu1 %vm1512_vm9, %v1437_v33  ;;  %v3913_v49 = vpop.permute.xlu1 %3912 }
 0x157   : > { %1733 = vmatmul.mubr.f32.gmra.mxu0 %v6854_v23  ;;  %v3914_v29 = vunpack.i.l.bf16 %v3913_v49 }
 0x158   : > { %v1117_v34 = vpop.permute.xlu0 %1116  ;;  %2355 = vrot.lane.b32.xlu1 %v2289_v60, %s4299_s26  ;;  %v2300_v60 = vld [vmem:[%s5725_s24 + $0x68] sm:$0xff] }
 0x159   : > { %v1438_v24 = vsel %vm1431_vm8, %v5580_v4, %v1117_v34  ;;  %v2293_v4 = vld [vmem:[%s5725_s24 + $0x30] sm:$0xff]  ;;  %v1312_v5 = vsel %vm1299_vm4, %v6856_v30, %v3914_v29  ;;  %v2303_v30 = vld [vmem:[%s5725_s24 + $0x80] sm:$0xff] }
 0x15a   : > { %3399 = vmatprep.mubr.msk.f32.mxu1 %vm1512_vm9, %v1438_v24  ;;  %2353 = vrot.lane.b32.xlu0 %v2288_v20, %s4299_s26  ;;  %v3918_v32 = vpop.permute.xlu1 %3917 }
 0x15b   : > { %v3919_v3 = vunpack.i.l.bf16 %v3918_v32  ;;  %v3920_v38 = vunpack.i.h.bf16 %v3918_v32 }
 0x15c   : > { %v1119_v54 = vpop.permute.xlu0 %1118  ;;  %2359 = vrot.lane.b32.xlu1 %v2291_v36, %s4299_s26 }
 0x15d   : > { %v1439_v51 = vsel %vm1431_vm8, %v5631_v35, %v1119_v54  ;;  %v3915_v35 = vunpack.i.h.bf16 %v3913_v49  ;;  %v1345_v27 = vsel %vm1332_vm5, %v1312_v5, %v3919_v3  ;;  %v6863_v5 = vld [vmem:[#allocation7_spill] sm:$0xff] }
 0x15e   : > { %3400 = vmatmul.mubr.msk.f32.gmra.mxu1 %vm1512_vm9, %v1439_v51  ;;  %2357 = vrot.lane.b32.xlu0 %v2290_v13, %s4299_s26  ;;  %v1031_v41 = vpop.permute.xlu1 %1030 }
 0x15f   : > { %v1313_v15 = vsel %vm1299_vm4, %v6857_v17, %v3915_v35 }
 0x160   : > { %v3923_v59 = vpop.permute.xlu0 %3922  ;;  %2363 = vrot.lane.b32.xlu1 %v2293_v4, %s4299_s26  ;;  %v1346_v52 = vsel %vm1332_vm5, %v1313_v15, %v3920_v38  ;;  %v2308_v15 = vld [vmem:[%s5725_s24 + $0xa8] sm:$0xff] }
 0x161   : > { %v3924_v62 = vunpack.i.l.bf16 %v3923_v59  ;;  %v3925_v16 = vunpack.i.h.bf16 %v3923_v59  ;;  %v2301_v59 = vld [vmem:[%s5725_s24 + $0x70] sm:$0xff] }
 0x162   : > { %2361 = vrot.lane.b32.xlu0 %v2292_v58, %s4299_s26  ;;  %v1123_v10 = vpop.permute.xlu1 %1122  ;;  %v2302_v58 = vld [vmem:[%s5725_s24 + $0x78] sm:$0xff] }
 0x163   : > { %v1378_v2 = vsel %vm1365_vm6, %v1345_v27, %v3924_v62  ;;  %v1441_v6 = vsel %vm1431_vm8, %v5672_v44, %v1123_v10  ;;  %v2297_v44 = vld [vmem:[%s5725_s24 + $0x50] sm:$0xff]  ;;  %v1379_v47 = vsel %vm1365_vm6, %v1346_v52, %v3925_v16 }
 0x164   : > { %v1121_v14 = vpop.permute.xlu0 %1120  ;;  %v1411_v46 = vsel %vm1398_vm7, %v1378_v2, %v1031_v41  ;;  %2367 = vrot.lane.b32.xlu1 %v2295_v61, %s4299_s26  ;;  %v2304_v61 = vld [vmem:[%s5725_s24 + $0x88] sm:$0xff]  ;;  %v6864_v10 = vld [vmem:[#allocation8_spill] sm:$0xff] }
 0x165   : > { %v1440_v8 = vsel %vm1431_vm8, %v5660_v9, %v1121_v14  ;;  %1737 = vmatprep.mubr.f32.mxu0 %v1411_v46  ;;  %v2305_v46 = vld [vmem:[%s5725_s24 + $0x90] sm:$0xff] }
 0x166   : > { %1738 = vmatmul.mubr.f32.gmra.mxu0 %v6858_v48  ;;  %3402 = vmatprep.mubr.msk.f32.mxu1 %vm1512_vm9, %v1440_v8  ;;  %v1125_v11 = vpop.permute.xlu1 %1124  ;;  %v2307_v8 = vld [vmem:[%s5725_s24 + $0xa0] sm:$0xff] }
 0x167   : > { %3403 = vmatmul.mubr.msk.f32.gmra.mxu1 %vm1512_vm9, %v1441_v6  ;;  %2365 = vrot.lane.b32.xlu0 %v2294_v56, %s4299_s26  ;;  %v1442_v9 = vsel %vm1431_vm8, %v5712_v37, %v1125_v11  ;;  %v2306_v6 = vld [vmem:[%s5725_s24 + $0x98] sm:$0xff] }
 0x168   : > { %v1033_v1 = vpop.permute.xlu0 %1032  ;;  %3405 = vmatprep.mubr.msk.f32.mxu1 %vm1512_vm9, %v1442_v9  ;;  %2371 = vrot.lane.b32.xlu1 %v2297_v44, %s4299_s26 }
 0x169   : > { %v1412_v0 = vsel %vm1398_vm7, %v1379_v47, %v1033_v1 }
 0x16a   : > { %1742 = vmatprep.mubr.f32.mxu0 %v1412_v0  ;;  %v1127_v19 = vpop.permute.xlu1 %1126  ;;  %v2309_v0 = vld [vmem:[%s5725_s24 + $0xb0] sm:$0xff] }
 0x16b   : > { %1743 = vmatmul.mubr.f32.gmra.mxu0 %v6859_v25  ;;  %2369 = vrot.lane.b32.xlu0 %v2296_v53, %s4299_s26  ;;  %v1443_v37 = vsel %vm1431_vm8, %v5731_v28, %v1127_v19  ;;  %v6860_v28 = vld [vmem:[#allocation5_spill] sm:$0xff]  ;;  %v6865_v25 = vld [vmem:[#allocation12_spill] sm:$0xff] }
 0x16c   : > { %v3928_v7 = vpop.permute.xlu0 %3927  ;;  %3406 = vmatmul.mubr.msk.f32.gmra.mxu1 %vm1512_vm9, %v1443_v37  ;;  %2375 = vrot.lane.b32.xlu1 %v2299_v43, %s4299_s26  ;;  %v6861_v20 = vunpack.i.l.bf16 %v6860_v28  ;;  %v6862_v24 = vunpack.i.h.bf16 %v6860_v28  ;;  %v2310_v53 = vld [vmem:[%s5725_s24 + $0xb8] sm:$0xff]  ;;  %v6866_v19 = vunpack.i.l.bf16 %v6865_v25 }
 0x16d   : > { %v3929_v18 = vunpack.i.l.bf16 %v3928_v7  ;;  %v3930_v40 = vunpack.i.h.bf16 %v3928_v7  ;;  %v6867_v7 = vunpack.i.h.bf16 %v6865_v25  ;;  %v6873_v25 = vld [vmem:[#allocation13_spill] sm:$0xff] }
 0x16e   : > { %v3938_v55 = vpop.permute.xlu1 %3937 }
 0x16f   : > { %2373 = vrot.lane.b32.xlu0 %v2298_v63, %s4299_s26  ;;  %v3939_v57 = vunpack.i.l.bf16 %v3938_v55  ;;  %v1314_v34 = vsel %vm1299_vm4, %v6861_v20, %v3929_v18  ;;  %v1315_v36 = vsel %vm1299_vm4, %v6862_v24, %v3930_v40  ;;  %v3940_v32 = vunpack.i.h.bf16 %v3938_v55  ;;  %v2312_v20 = vld [vmem:[%s5725_s24 + $0xc8] sm:$0xff]  ;;  %v2311_v24 = vld [vmem:[%s5725_s24 + $0xc0] sm:$0xff] }
 0x170   : > { %v3933_v33 = vpop.permute.xlu0 %3932  ;;  %2379 = vrot.lane.b32.xlu1 %v2301_v59, %s4299_s26  ;;  %v2316_v59 = vld [vmem:[%s5725_s24 + $0xe8] sm:$0xff] }
 0x171   : > { %v3935_v23 = vunpack.i.h.bf16 %v3933_v33  ;;  %v3934_v49 = vunpack.i.l.bf16 %v3933_v33 }
 0x172   : > { %v1129_v13 = vpop.permute.xlu1 %1128 }
 0x173   : > { %v1347_v54 = vsel %vm1332_vm5, %v1314_v34, %v3934_v49  ;;  %2377 = vrot.lane.b32.xlu0 %v2300_v60, %s4299_s26  ;;  %v1444_v29 = vsel %vm1431_vm8, %v1031_v41, %v1129_v13  ;;  %v1348_v4 = vsel %vm1332_vm5, %v1315_v36, %v3935_v23  ;;  %v6868_v36 = vld [vmem:[#allocation16_spill] sm:$0xff] }
 0x174   : > { %v1035_v51 = vpop.permute.xlu0 %1034  ;;  %v1380_v3 = vsel %vm1365_vm6, %v1347_v54, %v3939_v57  ;;  %3408 = vmatprep.mubr.msk.f32.mxu1 %vm1512_vm9, %v1444_v29  ;;  %v1381_v62 = vsel %vm1365_vm6, %v1348_v4, %v3940_v32  ;;  %2383 = vrot.lane.b32.xlu1 %v2303_v30, %s4299_s26  ;;  %v2314_v54 = vld [vmem:[%s5725_s24 + $0xd8] sm:$0xff]  ;;  %v2315_v30 = vld [vmem:[%s5725_s24 + $0xe0] sm:$0xff] }
 0x175   : > { %v1413_v39 = vsel %vm1398_vm7, %v1380_v3, %v1035_v51  ;;  %v6869_v3 = vld [vmem:[#allocation17_spill] sm:$0xff] }
 0x176   : > { %1747 = vmatprep.mubr.f32.mxu0 %v1413_v39  ;;  %v1037_v41 = vpop.permute.xlu1 %1036 }
 0x177   : > { %1748 = vmatmul.mubr.f32.gmra.mxu0 %v6863_v5  ;;  %2381 = vrot.lane.b32.xlu0 %v2302_v58, %s4299_s26  ;;  %v1414_v27 = vsel %vm1398_vm7, %v1381_v62, %v1037_v41  ;;  %v2318_v62 = vld [vmem:[%s5725_s24 + $0xf8] sm:$0xff] }
 0x178   : > { %v1131_v35 = vpop.permute.xlu0 %1130  ;;  %1752 = vmatprep.mubr.f32.mxu0 %v1414_v27  ;;  %2387 = vrot.lane.b32.xlu1 %v2305_v46, %s4299_s26  ;;  %v2317_v27 = vld [vmem:[%s5725_s24 + $0xf0] sm:$0xff] }
 0x179   : > { %v1445_v38 = vsel %vm1431_vm8, %v1033_v1, %v1131_v35 }
 0x17a   : > { %3409 = vmatmul.mubr.msk.f32.gmra.mxu1 %vm1512_vm9, %v1445_v38  ;;  %v3943_v2 = vpop.permute.xlu1 %3942 }
 0x17b   : > { %1753 = vmatmul.mubr.f32.gmra.mxu0 %v6864_v10  ;;  %2385 = vrot.lane.b32.xlu0 %v2304_v61, %s4299_s26  ;;  %v3945_v48 = vunpack.i.h.bf16 %v3943_v2  ;;  %v3944_v44 = vunpack.i.l.bf16 %v3943_v2 }
 0x17c   : > { %v1133_v16 = vpop.permute.xlu0 %1132  ;;  %2391 = vrot.lane.b32.xlu1 %v2307_v8, %s4299_s26 }
 0x17d   : > { %v1446_v14 = vsel %vm1431_vm8, %v1035_v51, %v1133_v16  ;;  %v1316_v37 = vsel %vm1299_vm4, %v6866_v19, %v3944_v44  ;;  %v1317_v63 = vsel %vm1299_vm4, %v6867_v7, %v3945_v48  ;;  %v2313_v51 = vld [vmem:[%s5725_s24 + $0xd0] sm:$0xff] }
 0x17e   : > { %3411 = vmatprep.mubr.msk.f32.mxu1 %vm1512_vm9, %v1446_v14  ;;  %v3948_v56 = vpop.permute.xlu1 %3947 }
 0x17f   : > { %2389 = vrot.lane.b32.xlu0 %v2306_v6, %s4299_s26  ;;  %v3950_v52 = vunpack.i.h.bf16 %v3948_v56  ;;  %v3949_v9 = vunpack.i.l.bf16 %v3948_v56  ;;  %v6870_v56 = vld [vmem:[#allocation9_spill] sm:$0xff] }
 0x180   : > { %v1135_v17 = vpop.permute.xlu0 %1134  ;;  %2395 = vrot.lane.b32.xlu1 %v2309_v0, %s4299_s26  ;;  %v6871_v8 = vunpack.i.l.bf16 %v6870_v56 }
 0x181   : > { %v1447_v11 = vsel %vm1431_vm8, %v1037_v41, %v1135_v17  ;;  %v1349_v40 = vsel %vm1332_vm5, %v1316_v37, %v3949_v9  ;;  %v1350_v55 = vsel %vm1332_vm5, %v1317_v63, %v3950_v52 }
 0x182   : > { %3412 = vmatmul.mubr.msk.f32.gmra.mxu1 %vm1512_vm9, %v1447_v11  ;;  %v1039_v1 = vpop.permute.xlu1 %1038 }
 0x183   : > { %2393 = vrot.lane.b32.xlu0 %v2308_v15, %s4299_s26  ;;  %v6872_v15 = vunpack.i.h.bf16 %v6870_v56 }
 0x184   : > { %v3953_v47 = vpop.permute.xlu0 %3952  ;;  %2399 = vrot.lane.b32.xlu1 %v2311_v24, %s4299_s26 }
 0x185   : > { %v3955_v43 = vunpack.i.h.bf16 %v3953_v47  ;;  %v3954_v18 = vunpack.i.l.bf16 %v3953_v47 }
 0x186   : > { %v1041_v57 = vpop.permute.xlu1 %1040 }
 0x187   : > { %v1382_v33 = vsel %vm1365_vm6, %v1349_v40, %v3954_v18  ;;  %v1383_v60 = vsel %vm1365_vm6, %v1350_v55, %v3955_v43  ;;  %2397 = vrot.lane.b32.xlu0 %v2310_v53, %s4299_s26  ;;  %v6874_v43 = vld [vmem:[#allocation14_spill] sm:$0xff] }
 0x188   : > { %v1137_v23 = vpop.permute.xlu0 %1136  ;;  %v1415_v49 = vsel %vm1398_vm7, %v1382_v33, %v1039_v1  ;;  %v1416_v28 = vsel %vm1398_vm7, %v1383_v60, %v1041_v57  ;;  %2403 = vrot.lane.b32.xlu1 %v2313_v51, %s4299_s26 }
 0x189   : > { %v1448_v34 = vsel %vm1431_vm8, %v1039_v1, %v1137_v23  ;;  %1757 = vmatprep.mubr.f32.mxu0 %v1415_v49 }
 0x18a   : > { %1758 = vmatmul.mubr.f32.gmra.mxu0 %v6868_v36  ;;  %3414 = vmatprep.mubr.msk.f32.mxu1 %vm1512_vm9, %v1448_v34  ;;  %v1043_v32 = vpop.permute.xlu1 %1042 }
 0x18b   : > { %1762 = vmatprep.mubr.f32.mxu0 %v1416_v28  ;;  %2401 = vrot.lane.b32.xlu0 %v2312_v20, %s4299_s26 }
 0x18c   : > { %v1139_v13 = vpop.permute.xlu0 %1138  ;;  %2407 = vrot.lane.b32.xlu1 %v2315_v30, %s4299_s26 }
 0x18d   : > { %v1449_v29 = vsel %vm1431_vm8, %v1041_v57, %v1139_v13 }
 0x18e   : > { %1763 = vmatmul.mubr.f32.gmra.mxu0 %v6869_v3  ;;  %3415 = vmatmul.mubr.msk.f32.gmra.mxu1 %vm1512_vm9, %v1449_v29  ;;  %v3958_v4 = vpop.permute.xlu1 %3957 }
 0x18f   : > { %2405 = vrot.lane.b32.xlu0 %v2314_v54, %s4299_s26  ;;  %v3960_v61 = vunpack.i.h.bf16 %v3958_v4  ;;  %v3959_v38 = vunpack.i.l.bf16 %v3958_v4  ;;  %v6875_v54 = vld [vmem:[#allocation18_spill] sm:$0xff] }
 0x190   : > { %v1141_v58 = vpop.permute.xlu0 %1140  ;;  %2411 = vrot.lane.b32.xlu1 %v2317_v27, %s4299_s26  ;;  %v6876_v29 = vunpack.i.l.bf16 %v6875_v54  ;;  %v6877_v3 = vunpack.i.h.bf16 %v6875_v54 }
 0x191   : > { %v1450_v39 = vsel %vm1431_vm8, %v1043_v32, %v1141_v58  ;;  %v1318_v17 = vsel %vm1299_vm4, %v6871_v8, %v3959_v38  ;;  %v1319_v48 = vsel %vm1299_vm4, %v6872_v15, %v3960_v61  ;;  %v6878_v38 = vld [vmem:[#allocation21_spill] sm:$0xff] }
 0x192   : > { %3417 = vmatprep.mubr.msk.f32.mxu1 %vm1512_vm9, %v1450_v39  ;;  %v1143_v5 = vpop.permute.xlu1 %1142 }
 0x193   : > { %2409 = vrot.lane.b32.xlu0 %v2316_v59, %s4299_s26 }
 0x194   : > { %v1045_v41 = vpop.permute.xlu0 %1044 }
 0x195   : > { %v1451_v35 = vsel %vm1431_vm8, %v1045_v41, %v1143_v5 }
 0x196   : > { %3418 = vmatmul.mubr.msk.f32.gmra.mxu1 %vm1512_vm9, %v1451_v35  ;;  %v3968_v10 = vpop.permute.xlu1 %3967 }
 0x197   : > { %2413 = vrot.lane.b32.xlu0 %v2318_v62, %s4299_s26  ;;  %v3970_v2 = vunpack.i.h.bf16 %v3968_v10  ;;  %v3969_v16 = vunpack.i.l.bf16 %v3968_v10 }
 0x198   : > { %v3963_v6 = vpop.permute.xlu0 %3962 }
 0x199   : > { %v3965_v14 = vunpack.i.h.bf16 %v3963_v6  ;;  %v3964_v46 = vunpack.i.l.bf16 %v3963_v6 }
 0x19a   : > { %v1145_v44 = vpop.permute.xlu1 %1144 }
 0x19b   : > { %v1351_v11 = vsel %vm1332_vm5, %v1318_v17, %v3964_v46  ;;  %v1352_v52 = vsel %vm1332_vm5, %v1319_v48, %v3965_v14  ;;  %v6879_v14 = vld [vmem:[#allocation22_spill] sm:$0xff]  ;;  %v6880_v48 = vld [vmem:[#allocation15_spill] sm:$0xff] }
 0x19c   : > { %v1047_v9 = vpop.permute.xlu0 %1046  ;;  %v1384_v1 = vsel %vm1365_vm6, %v1351_v11, %v3969_v16  ;;  %v1385_v47 = vsel %vm1365_vm6, %v1352_v52, %v3970_v2 }
 0x19d   : > { %v1417_v53 = vsel %vm1398_vm7, %v1384_v1, %v1043_v32  ;;  %v1452_v0 = vsel %vm1431_vm8, %v1047_v9, %v1145_v44  ;;  %v1418_v37 = vsel %vm1398_vm7, %v1385_v47, %v1045_v41  ;;  %v6881_v44 = vunpack.i.l.bf16 %v6880_v48 }
 0x19e   : > { %1767 = vmatprep.mubr.f32.mxu0 %v1417_v53  ;;  %3420 = vmatprep.mubr.msk.f32.mxu1 %vm1512_vm9, %v1452_v0  ;;  %v1147_v19 = vpop.permute.xlu1 %1146 }
 0x19f   : > { %1768 = vmatmul.mubr.f32.gmra.mxu0 %v6873_v25 }
 0x1a0   : > { %v1049_v7 = vpop.permute.xlu0 %1048  ;;  %1772 = vmatprep.mubr.f32.mxu0 %v1418_v37 }
 0x1a1   : > { %v1453_v63 = vsel %vm1431_vm8, %v1049_v7, %v1147_v19 }
 0x1a2   : > { %3421 = vmatmul.mubr.msk.f32.gmra.mxu1 %vm1512_vm9, %v1453_v63  ;;  %v1149_v18 = vpop.permute.xlu1 %1148 }
 0x1a3   : > { %1773 = vmatmul.mubr.f32.gmra.mxu0 %v6874_v43  ;;  %v6883_v43 = vunpack.i.h.bf16 %v6880_v48 }
 0x1a4   : > { %v1051_v40 = vpop.permute.xlu0 %1050 }
 0x1a5   : > { %v1454_v55 = vsel %vm1431_vm8, %v1051_v40, %v1149_v18 }
 0x1a6   : > { %3423 = vmatprep.mubr.msk.f32.mxu1 %vm1512_vm9, %v1454_v55  ;;  %v5901_v57 = vpop.permute.xlu1 %1052 }
 0x1a8   : > { %v3973_v33 = vpop.permute.xlu0 %3972 }
 0x1a9   : > { %v3975_v49 = vunpack.i.h.bf16 %v3973_v33  ;;  %v3974_v28 = vunpack.i.l.bf16 %v3973_v33 }
 0x1aa   : > { %v3978_v60 = vpop.permute.xlu1 %3977 }
 0x1ab   : > { %v3980_v34 = vunpack.i.h.bf16 %v3978_v60  ;;  %v3979_v24 = vunpack.i.l.bf16 %v3978_v60  ;;  %v1320_v51 = vsel %vm1299_vm4, %v6876_v29, %v3974_v28  ;;  %v1321_v4 = vsel %vm1299_vm4, %v6877_v3, %v3975_v49  ;;  %v6884_v28 = vld [vmem:[#allocation20_spill] sm:$0xff] }
 0x1ac   : > { %v1151_v23 = vpop.permute.xlu0 %1150 }
 0x1ad   : > { %v1455_v20 = vsel %vm1431_vm8, %v5901_v57, %v1151_v23  ;;  %v1353_v39 = vsel %vm1332_vm5, %v1320_v51, %v3979_v24  ;;  %v1354_v30 = vsel %vm1332_vm5, %v1321_v4, %v3980_v34 }
 0x1ae   : > { %3424 = vmatmul.mubr.msk.f32.gmra.mxu1 %vm1512_vm9, %v1455_v20  ;;  %v1153_v36 = vpop.permute.xlu1 %1152 }
 0x1af   : > { %v1456_v32 = vsel %vm1431_vm8, %v5289_v26, %v1153_v36 }
 0x1b0   : > { %v3983_v13 = vpop.permute.xlu0 %3982  ;;  %3426 = vmatprep.mubr.msk.f32.mxu1 %vm1512_vm9, %v1456_v32 }
 0x1b1   : > { %v3985_v58 = vunpack.i.h.bf16 %v3983_v13  ;;  %v3984_v59 = vunpack.i.l.bf16 %v3983_v13 }
 0x1b2   : > { %v1157_v5 = vpop.permute.xlu1 %1156 }
 0x1b3   : > { %v1386_v26 = vsel %vm1365_vm6, %v1353_v39, %v3984_v59  ;;  %v1387_v41 = vsel %vm1365_vm6, %v1354_v30, %v3985_v58  ;;  %v1458_v62 = vsel %vm1431_vm8, %v5422_v45, %v1157_v5 }
 0x1b4   : > { %v1155_v35 = vpop.permute.xlu0 %1154  ;;  %v1419_v27 = vsel %vm1398_vm7, %v1386_v26, %v1047_v9  ;;  %v1420_v10 = vsel %vm1398_vm7, %v1387_v41, %v1049_v7  ;;  %v6882_v7 = vld [vmem:[#allocation19_spill] sm:$0xff] }
 0x1b5   : > { %v1457_v61 = vsel %vm1431_vm8, %v5360_v22, %v1155_v35  ;;  %1777 = vmatprep.mubr.f32.mxu0 %v1419_v27 }
 0x1b6   : > { %1778 = vmatmul.mubr.f32.gmra.mxu0 %v6878_v38  ;;  %3427 = vmatmul.mubr.msk.f32.gmra.mxu1 %vm1512_vm9, %v1457_v61  ;;  %v1159_v2 = vpop.permute.xlu1 %1158 }
 0x1b7   : > { %1782 = vmatprep.mubr.f32.mxu0 %v1420_v10  ;;  %3429 = vmatprep.mubr.msk.f32.mxu1 %vm1512_vm9, %v1458_v62  ;;  %v1459_v45 = vsel %vm1431_vm8, %v5456_v21, %v1159_v2 }
 0x1b8   : > { %v3988_v16 = vpop.permute.xlu0 %3987 }
 0x1b9   : > { %v3989_v6 = vunpack.i.l.bf16 %v3988_v16  ;;  %v3990_v21 = vunpack.i.h.bf16 %v3988_v16 }
 0x1ba   : > { %1783 = vmatmul.mubr.f32.gmra.mxu0 %v6879_v14  ;;  %3430 = vmatmul.mubr.msk.f32.gmra.mxu1 %vm1512_vm9, %v1459_v45  ;;  %v5932_v22 = vpop.f32.mrf.mxu0  ;;  %v953_v46 = vpop.permute.xlu1 %952  ;;  %v5980_v45 = vld [vmem:[%s6777_s2] ss:$0 sm:$0xff] }
 0x1bb   : > { %v5934_v56 = vpop.f32.mrf.mxu1  ;;  %v1322_v11 = vsel %vm1299_vm4, %v6881_v44, %v3989_v6 }
 0x1bc   : > { %v3993_v8 = vpop.permute.xlu0 %3992  ;;  %v1681_v15 = vpop.f32.mrf.mxu0 }
 0x1bd   : > { %v3994_v17 = vunpack.i.l.bf16 %v3993_v8  ;;  %v1801_v52 = vpop.f32.mrf.mxu1  ;;  %v3995_v47 = vunpack.i.h.bf16 %v3993_v8 }
 0x1be   : > { %v1163_v9 = vpop.permute.xlu1 %1162 }
 0x1bf   : > { %v1355_v1 = vsel %vm1332_vm5, %v1322_v11, %v3994_v17  ;;  %v1461_v53 = vsel %vm1431_vm8, %v5560_v31, %v1163_v9  ;;  %v1323_v31 = vsel %vm1299_vm4, %v6883_v43, %v3990_v21 }
 0x1c0   : > { %v1161_v0 = vpop.permute.xlu0 %1160  ;;  %v1388_v25 = vsel %vm1365_vm6, %v1355_v1, %v953_v46  ;;  %v1680_v46 = vadd.f32 %v5980_v45, %v5932_v22 }
 0x1c1   : > { %v1460_v19 = vsel %vm1431_vm8, %v5500_v50, %v1161_v0  ;;  %v1421_v37 = vsel %vm1398_vm7, %v1388_v25, %v1051_v40  ;;  %v1356_v50 = vsel %vm1332_vm5, %v1323_v31, %v3995_v47 }
 0x1c2   : > { %1787 = vmatprep.mubr.f32.mxu0 %v1421_v37  ;;  %3432 = vmatprep.mubr.msk.f32.mxu1 %vm1512_vm9, %v1460_v19  ;;  %v1165_v63 = vpop.permute.xlu1 %1164 }
 0x1c3   : > { %1788 = vmatmul.mubr.f32.gmra.mxu0 %v6882_v7  ;;  %3433 = vmatmul.mubr.msk.f32.gmra.mxu1 %vm1512_vm9, %v1461_v53  ;;  %v1462_v18 = vsel %vm1431_vm8, %v5599_v42, %v1165_v63 }
 0x1c4   : > { %v955_v55 = vpop.permute.xlu0 %954  ;;  %3435 = vmatprep.mubr.msk.f32.mxu1 %vm1512_vm9, %v1462_v18 }
 0x1c5   : > { %v1389_v40 = vsel %vm1365_vm6, %v1356_v50, %v955_v55  ;;  %v1684_v33 = vpop.f32.mrf.mxu0 }
 0x1c6   : > { %v1422_v60 = vsel %vm1398_vm7, %v1389_v40, %v5901_v57  ;;  %v1685_v16 = vadd.f32 %v5980_v45, %v1684_v33 }
 0x1c7   : > { %1792 = vmatprep.mubr.f32.mxu0 %v1422_v60  ;;  %v5959_v23 = vpop.f32.mrf.mxu1  ;;  %v1686_v20 = vpop.f32.mrf.mxu0 }
 0x1c8   : > { %v1167_v49 = vpop.permute.xlu0 %1166  ;;  %1793 = vmatmul.mubr.f32.gmra.mxu0 %v6884_v28 }
 0x1c9   : > { %v1463_v42 = vsel %vm1431_vm8, %v5627_v12, %v1167_v49  ;;  %v1806_v34 = vpop.f32.mrf.mxu1 }
 0x1ca   : > { %3436 = vmatmul.mubr.msk.f32.gmra.mxu1 %vm1512_vm9, %v1463_v42 }
 0x1cd   : > { %v1689_v24 = vpop.f32.mrf.mxu0 }
 0x1ce   : > { %v1690_v21 = vadd.f32 %v5980_v45, %v1689_v24 }
 0x1cf   : > { %v5965_v36 = vpop.f32.mrf.mxu1  ;;  %v1691_v32 = vpop.f32.mrf.mxu0 }
 0x1d1   : > { %v1811_v13 = vpop.f32.mrf.mxu1 }
 0x1d6   : > { %v1694_v54 = vpop.f32.mrf.mxu0 }
 0x1d7   : > { %v5967_v57 = vpop.f32.mrf.mxu1  ;;  %v1695_v11 = vadd.f32 %v5980_v45, %v1694_v54 }
 0x1d8   : > { %v1696_v29 = vpop.f32.mrf.mxu0 }
 0x1d9   : > { %v1816_v51 = vpop.f32.mrf.mxu1 }
 0x1de   : > { %v1699_v3 = vpop.f32.mrf.mxu0 }
 0x1df   : > { %v5969_v4 = vpop.f32.mrf.mxu1  ;;  %v1700_v31 = vadd.f32 %v5980_v45, %v1699_v3 }
 0x1e0   : > { %v1701_v58 = vpop.f32.mrf.mxu0 }
 0x1e1   : > { %v1821_v59 = vpop.f32.mrf.mxu1 }
 0x1e9   : > { %v1704_v12 = vpop.f32.mrf.mxu0 }
 0x1ea   : > { %v5971_v39 = vpop.f32.mrf.mxu1  ;;  %v1705_v53 = vadd.f32 %v5980_v45, %v1704_v12 }
 0x1eb   : > { %v1706_v30 = vpop.f32.mrf.mxu0 }
 0x1ec   : > { %v1826_v5 = vpop.f32.mrf.mxu1 }
 0x1f2   : > { %v1709_v26 = vpop.f32.mrf.mxu0 }
 0x1f3   : > { %v1710_v49 = vadd.f32 %v5980_v45, %v1709_v26 }
 0x1f4   : > { %v5973_v41 = vpop.f32.mrf.mxu1  ;;  %v1711_v62 = vpop.f32.mrf.mxu0 }
 0x1f6   : > { %v1831_v35 = vpop.f32.mrf.mxu1 }
 0x1fb   : > { %v1714_v27 = vpop.f32.mrf.mxu0 }
 0x1fc   : > { %v5975_v61 = vpop.f32.mrf.mxu1  ;;  %v1715_v40 = vadd.f32 %v5980_v45, %v1714_v27 }
 0x1fd   : > { %v1716_v38 = vpop.f32.mrf.mxu0 }
 0x1fe   : > { %v1836_v10 = vpop.f32.mrf.mxu1 }
 0x203   : > { %v1719_v2 = vpop.f32.mrf.mxu0 }
 0x204   : > { %v1720_v3 = vadd.f32 %v5980_v45, %v1719_v2 }
 0x205   : > { %v1721_v6 = vpop.f32.mrf.mxu0 }
 0x206   : > { %v3392_v14 = vpop.f32.mrf.mxu1 }
 0x207   : > { %v5985_v8 = vadd.f32 %v3392_v14, %v1685_v16  ;;  %v1724_v17 = vpop.f32.mrf.mxu0 }
 0x208   : > { %v1904_v15 = vpop.f32.mrf.mxu1  ;;  %v1725_v24 = vadd.f32 %v5980_v45, %v1724_v17 }
 0x209   : > { %3996 = vtanh.f32 %v5985_v8  ;;  %v5988_v48 = vadd.f32 %v1904_v15, %v1680_v46  ;;  %v1726_v44 = vpop.f32.mrf.mxu0 }
 0x20b   : > { %v3395_v52 = vpop.f32.mrf.mxu1  ;;  %3998 = vtanh.f32 %v5988_v48 }
 0x20c   : > { %v5993_v9 = vadd.f32 %v3395_v52, %v1695_v11 }
 0x20d   : > { %v1914_v1 = vpop.f32.mrf.mxu1 }
 0x20e   : > { %4000 = vtanh.f32 %v5993_v9  ;;  %v5996_v22 = vadd.f32 %v1914_v1, %v1690_v21 }
 0x210   : > { %4002 = vtanh.f32 %v5996_v22 }
 0x213   : > { %v1729_v47 = vpop.f32.mrf.mxu0 }
 0x214   : > { %v1730_v38 = vadd.f32 %v5980_v45, %v1729_v47 }
 0x215   : > { %v1731_v0 = vpop.f32.mrf.mxu0 }
 0x216   : > { %v3997_v25 = vpop.eup %3996  ;;  %v3398_v19 = vpop.f32.mrf.mxu1 }
 0x217   : > { %v6000_v37 = vadd.f32 %v3398_v19, %v1705_v53  ;;  %v1734_v7 = vpop.f32.mrf.mxu0  ;;  %2513 = vrot.lane.b32.xlu0 %v3997_v25, %s4299_s26 }
 0x218   : > { %v1924_v63 = vpop.f32.mrf.mxu1  ;;  %v3999_v43 = vpop.eup %3998  ;;  %v1735_v12 = vadd.f32 %v5980_v45, %v1734_v7 }
 0x219   : > { %4004 = vtanh.f32 %v6000_v37  ;;  %v1736_v18 = vpop.f32.mrf.mxu0  ;;  %2511 = vrot.lane.b32.xlu1 %v3999_v43, %s4299_s26  ;;  %v6006_v50 = vadd.f32 %v1924_v63, %v1700_v31 }
 0x21b   : > { %v4001_v55 = vpop.eup %4000  ;;  %4006 = vtanh.f32 %v6006_v50 }
 0x21c   : > { %2517 = vrot.lane.b32.xlu0 %v4001_v55, %s4299_s26 }
 0x21d   : > { %v4003_v33 = vpop.eup %4002 }
 0x21e   : > { %v3401_v60 = vpop.f32.mrf.mxu1  ;;  %2515 = vrot.lane.b32.xlu1 %v4003_v33, %s4299_s26  ;;  %v6060_v33 = vpop.permute.xlu1 %2351 }
 0x21f   : > { %v6012_v28 = vadd.f32 %v3401_v60, %v1715_v40 }
 0x220   : > { %v1934_v42 = vpop.f32.mrf.mxu1 }
 0x221   : > { %4008 = vtanh.f32 %v6012_v28  ;;  %v6016_v20 = vadd.f32 %v1934_v42, %v1710_v49 }
 0x223   : > { %4010 = vtanh.f32 %v6016_v20 }
 0x226   : > { %v4005_v34 = vpop.eup %4004  ;;  %v1739_v32 = vpop.f32.mrf.mxu0 }
 0x227   : > { %v3404_v13 = vpop.f32.mrf.mxu1  ;;  %2521 = vrot.lane.b32.xlu0 %v4005_v34, %s4299_s26  ;;  %v1740_v21 = vadd.f32 %v5980_v45, %v1739_v32 }
 0x228   : > { %v6021_v54 = vadd.f32 %v3404_v13, %v1725_v24  ;;  %v1741_v29 = vpop.f32.mrf.mxu0  ;;  %v4007_v59 = vpop.eup %4006 }
 0x229   : > { %v1944_v51 = vpop.f32.mrf.mxu1  ;;  %2519 = vrot.lane.b32.xlu1 %v4007_v59, %s4299_s26 }
 0x22a   : > { %4012 = vtanh.f32 %v6021_v54  ;;  %v6026_v30 = vadd.f32 %v1944_v51, %v1720_v3 }
 0x22b   : > { %v1744_v58 = vpop.f32.mrf.mxu0 }
 0x22c   : > { %v3407_v26 = vpop.f32.mrf.mxu1  ;;  %4014 = vtanh.f32 %v6026_v30  ;;  %v1745_v14 = vadd.f32 %v5980_v45, %v1744_v58  ;;  %v6071_v58 = vpop.permute.xlu1 %2355 }
 0x22d   : > { %v1746_v5 = vpop.f32.mrf.mxu0  ;;  %v6029_v35 = vadd.f32 %v3407_v26, %v1735_v12 }
 0x22e   : > { %v4009_v62 = vpop.eup %4008  ;;  %v1954_v27 = vpop.f32.mrf.mxu1 }
 0x22f   : > { %2525 = vrot.lane.b32.xlu0 %v4009_v62, %s4299_s26  ;;  %4016 = vtanh.f32 %v6029_v35  ;;  %v6035_v2 = vadd.f32 %v1954_v27, %v1730_v38  ;;  %v6077_v5 = vpop.permute.xlu0 %2353 }
 0x230   : > { %v4011_v10 = vpop.eup %4010  ;;  %v6075_v12 = vpop.permute.xlu1 %2359 }
 0x231   : > { %2523 = vrot.lane.b32.xlu1 %v4011_v10, %s4299_s26  ;;  %4018 = vtanh.f32 %v6035_v2 }
 0x233   : > { %v6081_v27 = vpop.permute.xlu0 %2357 }
 0x234   : > { %v6079_v26 = vpop.permute.xlu1 %2363 }
 0x237   : > { %v4013_v16 = vpop.eup %4012  ;;  %v1749_v6 = vpop.f32.mrf.mxu0 }
 0x238   : > { %2529 = vrot.lane.b32.xlu0 %v4013_v16, %s4299_s26  ;;  %v1750_v7 = vadd.f32 %v5980_v45, %v1749_v6  ;;  %v6083_v16 = vpop.permute.xlu1 %2367 }
 0x239   : > { %v1751_v46 = vpop.f32.mrf.mxu0  ;;  %v4015_v52 = vpop.eup %4014 }
 0x23a   : > { %v3410_v17 = vpop.f32.mrf.mxu1  ;;  %2527 = vrot.lane.b32.xlu1 %v4015_v52, %s4299_s26 }
 0x23b   : > { %v6041_v15 = vadd.f32 %v3410_v17, %v1745_v14  ;;  %v1754_v44 = vpop.f32.mrf.mxu0 }
 0x23c   : > { %v1964_v11 = vpop.f32.mrf.mxu1  ;;  %v4017_v47 = vpop.eup %4016  ;;  %v1755_v0 = vadd.f32 %v5980_v45, %v1754_v44 }
 0x23d   : > { %v1756_v1 = vpop.f32.mrf.mxu0  ;;  %4020 = vtanh.f32 %v6041_v15  ;;  %v6046_v53 = vadd.f32 %v1964_v11, %v1740_v21  ;;  %2533 = vrot.lane.b32.xlu0 %v4017_v47, %s4299_s26  ;;  %v6090_v11 = vpop.permute.xlu0 %2361 }
 0x23e   : > { %v4019_v19 = vpop.eup %4018  ;;  %v6092_v21 = vpop.permute.xlu1 %2371 }
 0x23f   : > { %4022 = vtanh.f32 %v6046_v53  ;;  %2531 = vrot.lane.b32.xlu1 %v4019_v19, %s4299_s26 }
 0x242   : > { %v3413_v25 = vpop.f32.mrf.mxu1  ;;  %v6100_v19 = vpop.permute.xlu1 %2375 }
 0x243   : > { %v6052_v63 = vadd.f32 %v3413_v25, %v1755_v0  ;;  %v6098_v25 = vpop.permute.xlu0 %2365 }
 0x244   : > { %v1974_v43 = vpop.f32.mrf.mxu1 }
 0x245   : > { %4024 = vtanh.f32 %v6052_v63  ;;  %v6056_v31 = vadd.f32 %v1974_v43, %v1750_v7 }
 0x246   : > { %v6105_v43 = vpop.permute.xlu1 %2379 }
 0x247   : > { %4026 = vtanh.f32 %v6056_v31  ;;  %v6103_v7 = vpop.permute.xlu0 %2369 }
 0x24a   : > { %v1759_v18 = vpop.f32.mrf.mxu0  ;;  %v4021_v55 = vpop.eup %4020 }
 0x24b   : > { %2537 = vrot.lane.b32.xlu0 %v4021_v55, %s4299_s26  ;;  %v1760_v42 = vadd.f32 %v5980_v45, %v1759_v18  ;;  %v6107_v55 = vpop.permute.xlu0 %2373 }
 0x24c   : > { %v1761_v40 = vpop.f32.mrf.mxu0  ;;  %v4023_v24 = vpop.eup %4022 }
 0x24d   : > { %2535 = vrot.lane.b32.xlu1 %v4023_v24, %s4299_s26 }
 0x24e   : > { %v1764_v60 = vpop.f32.mrf.mxu0  ;;  %v3416_v49 = vpop.f32.mrf.mxu1 }
 0x24f   : > { %v1765_v34 = vadd.f32 %v5980_v45, %v1764_v60 }
 0x250   : > { %v1766_v32 = vpop.f32.mrf.mxu0  ;;  %v1984_v13 = vpop.f32.mrf.mxu1 }
 0x251   : > { %v6065_v29 = vadd.f32 %v3416_v49, %v1765_v34  ;;  %v6067_v51 = vadd.f32 %v1984_v13, %v1760_v42  ;;  %v6109_v49 = vpop.permute.xlu1 %2383  ;;  %v6112_v42 = vpop.permute.xlu0 %2377 }
 0x252   : > { %v4025_v3 = vpop.eup %4024  ;;  %6885 = vst [vmem:[#allocation2_spill] sm:$0xff] %v6109_v49 }
 0x253   : > { %4028 = vtanh.f32 %v6065_v29  ;;  %2541 = vrot.lane.b32.xlu0 %v4025_v3, %s4299_s26 }
 0x254   : > { %4030 = vtanh.f32 %v6067_v51  ;;  %v4027_v59 = vpop.eup %4026 }
 0x255   : > { %2539 = vrot.lane.b32.xlu1 %v4027_v59, %s4299_s26  ;;  %v6115_v13 = vpop.permute.xlu0 %2381 }
 0x256   : > { %v3419_v62 = vpop.f32.mrf.mxu1 }
 0x258   : > { %v1994_v46 = vpop.f32.mrf.mxu1 }
 0x25f   : > { %v1769_v38 = vpop.f32.mrf.mxu0 }
 0x260   : > { %v4029_v10 = vpop.eup %4028  ;;  %v1770_v6 = vadd.f32 %v5980_v45, %v1769_v38 }
 0x261   : > { %v4031_v14 = vpop.eup %4030  ;;  %v1771_v17 = vpop.f32.mrf.mxu0  ;;  %2545 = vrot.lane.b32.xlu0 %v4029_v10, %s4299_s26 }
 0x262   : > { %v6087_v44 = vadd.f32 %v1994_v46, %v1770_v6  ;;  %2543 = vrot.lane.b32.xlu1 %v4031_v14, %s4299_s26  ;;  %v3422_v18 = vpop.f32.mrf.mxu1 }
 0x263   : > { %v1774_v52 = vpop.f32.mrf.mxu0 }
 0x264   : > { %4032 = vtanh.f32 %v6087_v44  ;;  %v1775_v1 = vadd.f32 %v5980_v45, %v1774_v52  ;;  %v2004_v60 = vpop.f32.mrf.mxu1 }
 0x265   : > { %v1776_v47 = vpop.f32.mrf.mxu0 }
 0x266   : > { %v6096_v0 = vadd.f32 %v3419_v62, %v1775_v1  ;;  %v6118_v62 = vpop.permute.xlu1 %2387  ;;  %v6126_v47 = vpop.permute.xlu0 %2385 }
 0x267   : > { %6886 = vst [vmem:[#allocation3_spill] sm:$0xff] %v6118_v62  ;;  %6887 = vst [vmem:[#allocation4_spill] sm:$0xff] %v6126_v47 }
 0x268   : > { %4034 = vtanh.f32 %v6096_v0 }
 0x26e   : > { %v3425_v34 = vpop.f32.mrf.mxu1 }
 0x270   : > { %v2014_v3 = vpop.f32.mrf.mxu1 }
 0x271   : > { %v4033_v40 = vpop.eup %4032 }
 0x272   : > { %2547 = vrot.lane.b32.xlu1 %v4033_v40, %s4299_s26  ;;  %v6128_v40 = vpop.permute.xlu1 %2391 }
 0x273   : > { %6888 = vst [vmem:[#allocation6_spill] sm:$0xff] %v6128_v40  ;;  %v3297_v40 = vmul.f32 -1.442695, %v5996_v22 }
 0x275   : > { %v4035_v24 = vpop.eup %4034 }
 0x276   : > { %v1779_v32 = vpop.f32.mrf.mxu0  ;;  %2549 = vrot.lane.b32.xlu0 %v4035_v24, %s4299_s26  ;;  %v3428_v6 = vpop.f32.mrf.mxu1  ;;  %v3295_v24 = vmul.f32 -1.442695, %v5988_v48 }
 0x277   : > { %v1780_v59 = vadd.f32 %v5980_v45, %v1779_v32 }
 0x278   : > { %v1781_v38 = vpop.f32.mrf.mxu0  ;;  %v2024_v52 = vpop.f32.mrf.mxu1 }
 0x279   : > { %v6120_v10 = vadd.f32 %v2004_v60, %v1780_v59  ;;  %v6134_v59 = vpop.permute.xlu0 %2389  ;;  %v6136_v38 = vpop.permute.xlu1 %2395 }
 0x27a   : > { %v1784_v14 = vpop.f32.mrf.mxu0  ;;  %v6132_v60 = vpop.f32.mrf.mxu1  ;;  %6889 = vst [vmem:[#allocation10_spill] sm:$0xff] %v6136_v38 }
 0x27b   : > { %4036 = vtanh.f32 %v6120_v10  ;;  %v1785_v46 = vadd.f32 %v5980_v45, %v1784_v14 }
 0x27c   : > { %v1786_v17 = vpop.f32.mrf.mxu0 }
 0x27d   : > { %v6124_v1 = vadd.f32 %v3422_v18, %v1785_v46  ;;  %v2034_v18 = vpop.f32.mrf.mxu1  ;;  %v1800_v17 = vadd.f32 %v5980_v45, %v5934_v56  ;;  %v6153_v56 = vpop.permute.xlu0 %2393 }
 0x27e   : > { %6890 = vst [vmem:[#allocation11_spill] sm:$0xff] %v6153_v56 }
 0x27f   : > { %4038 = vtanh.f32 %v6124_v1  ;;  %v6146_v47 = vadd.f32 %v2024_v52, %v1800_v17 }
 0x280   : > { %4040 = vpow2.f32 %v3295_v24  ;;  %v1810_v24 = vadd.f32 %v5980_v45, %v5965_v36 }
 0x282   : > { %v6160_v17 = vadd.f32 %v2034_v18, %v1810_v24 }
 0x283   : > { %v1789_v32 = vpop.f32.mrf.mxu0  ;;  %v6144_v48 = vpop.f32.mrf.mxu1 }
 0x284   : > { %v1790_v14 = vadd.f32 %v5980_v45, %v1789_v32  ;;  %v3299_v32 = vmul.f32 -1.442695, %v6006_v50 }
 0x285   : > { %v1791_v46 = vpop.f32.mrf.mxu0  ;;  %v2044_v52 = vpop.f32.mrf.mxu1 }
 0x286   : > { %v6142_v62 = vadd.f32 %v2014_v3, %v1790_v14  ;;  %v3296_v3 = vmul.f32 -1.442695, %v5985_v8  ;;  %v6156_v14 = vpop.permute.xlu1 %2399 }
 0x288   : > { %v4037_v49 = vpop.eup %4036  ;;  %4042 = vtanh.f32 %v6142_v62  ;;  %v1794_v38 = vpop.f32.mrf.mxu0 }
 0x289   : > { %2551 = vrot.lane.b32.xlu1 %v4037_v49, %s4299_s26  ;;  %4044 = vpow2.f32 %v3297_v40  ;;  %v1795_v46 = vadd.f32 %v5980_v45, %v1794_v38  ;;  %v3298_v49 = vmul.f32 -1.442695, %v5993_v9  ;;  %v1820_v40 = vadd.f32 %v5980_v45, %v5969_v4  ;;  %v6169_v38 = vpop.permute.xlu0 %2397 }
 0x28a   : > { %v1796_v22 = vpop.f32.mrf.mxu0  ;;  %4046 = vtanh.f32 %v6146_v47  ;;  %v3437_v36 = vpop.f32.mrf.mxu1  ;;  %6891 = vst [vmem:[#allocation5_spill] sm:$0xff] %v6169_v38  ;;  %v1805_v9 = vadd.f32 %v5980_v45, %v5959_v23 }
 0x28b   : > { %4048 = vpow2.f32 %v3299_v32  ;;  %v3301_v22 = vmul.f32 -1.442695, %v6016_v20  ;;  %v6167_v8 = vadd.f32 %v3425_v34, %v1795_v46  ;;  %v6172_v18 = vadd.f32 %v2044_v52, %v1820_v40  ;;  %v6177_v4 = vpop.permute.xlu1 %2403 }
 0x28c   : > { %v4039_v50 = vpop.eup %4038  ;;  %4050 = vpow2.f32 %v3296_v3  ;;  %v3300_v32 = vmul.f32 -1.442695, %v6000_v37  ;;  %v2054_v20 = vpop.f32.mrf.mxu1  ;;  %v1830_v34 = vadd.f32 %v5980_v45, %v5973_v41  ;;  %v3303_v3 = vmul.f32 -1.442695, %v6026_v30 }
 0x28d   : > { %2553 = vrot.lane.b32.xlu0 %v4039_v50, %s4299_s26  ;;  %4052 = vtanh.f32 %v6160_v17  ;;  %v4041_v24 = vpop.eup %4040  ;;  %v6182_v46 = vadd.f32 %v3428_v6, %v1805_v9  ;;  %v1815_v37 = vadd.f32 %v5980_v45, %v5967_v57  ;;  %v3305_v41 = vmul.f32 -1.442695, %v6035_v2 }
 0x28e   : > { %4054 = vpow2.f32 %v3298_v49  ;;  %v6186_v23 = vadd.f32 %v2054_v20, %v1830_v34  ;;  %v2159_v50 = vadd.f32 1.0, %v4041_v24  ;;  %v6191_v49 = vpop.permute.xlu0 %2401  ;;  %v1825_v2 = vadd.f32 %v5980_v45, %v5971_v39 }
 0x28f   : > { %4056 = vpow2.f32 %v3301_v22  ;;  %v6196_v6 = vadd.f32 %v6132_v60, %v1815_v37  ;;  %v6198_v40 = vpop.permute.xlu1 %2407  ;;  %v3302_v22 = vmul.f32 -1.442695, %v6012_v28  ;;  %v3304_v28 = vmul.f32 -1.442695, %v6021_v54 }
 0x290   : > { %4058 = vtanh.f32 %v6167_v8  ;;  %v6207_v60 = vadd.f32 %v6144_v48, %v1825_v2  ;;  %v1835_v39 = vadd.f32 %v5980_v45, %v5975_v61  ;;  %v3306_v61 = vmul.f32 -1.442695, %v6029_v35 }
 0x291   : > { %4060 = vtanh.f32 %v6172_v18  ;;  %v3308_v35 = vmul.f32 -1.442695, %v6041_v15  ;;  %v3310_v15 = vmul.f32 -1.442695, %v6052_v63 }
 0x292   : > { %4062 = vpow2.f32 %v3300_v32  ;;  %v6210_v24 = vpop.permute.xlu0 %2405 }
 0x293   : > { %4064 = vpow2.f32 %v3303_v3 }
 0x294   : > { %4066 = vtanh.f32 %v6182_v46 }
 0x295   : > { %v4043_v52 = vpop.eup %4042  ;;  %4068 = vtanh.f32 %v6186_v23 }
 0x296   : > { %2555 = vrot.lane.b32.xlu1 %v4043_v52, %s4299_s26  ;;  %v4045_v30 = vpop.eup %4044  ;;  %4070 = vrcp.f32 %v2159_v50  ;;  %v6214_v52 = vpop.permute.xlu1 %2411  ;;  %v3307_v50 = vmul.f32 -1.442695, %v6046_v53 }
 0x297   : > { %v4047_v57 = vpop.eup %4046  ;;  %v2161_v32 = vadd.f32 1.0, %v4045_v30  ;;  %4072 = vpow2.f32 %v3305_v41  ;;  %6892 = vst [vmem:[#allocation7_spill] sm:$0xff] %v6214_v52  ;;  %v6219_v41 = vadd.f32 %v3437_v36, %v1835_v39  ;;  %v6223_v53 = vpop.permute.xlu0 %2409  ;;  %v3309_v36 = vmul.f32 -1.442695, %v6056_v31 }
 0x298   : > { %v4049_v9 = vpop.eup %4048  ;;  %4074 = vtanh.f32 %v6196_v6  ;;  %6893 = vst [vmem:[#allocation8_spill] sm:$0xff] %v6223_v53 }
 0x299   : > { %v4051_v20 = vpop.eup %4050  ;;  %4076 = vpow2.f32 %v3302_v22  ;;  %v2163_v3 = vadd.f32 1.0, %v4049_v9 }
 0x29a   : > { %2559 = vrot.lane.b32.xlu1 %v4047_v57, %s4299_s26  ;;  %v4053_v34 = vpop.eup %4052  ;;  %4078 = vrcp.f32 %v2161_v32  ;;  %v2160_v30 = vadd.f32 1.0, %v4051_v20  ;;  %v2512_v9 = vpop.permute.xlu1 %2511 }
 0x29b   : > { %v4055_v37 = vpop.eup %4054  ;;  %4080 = vtanh.f32 %v6207_v60 }
 0x29c   : > { %v4057_v48 = vpop.eup %4056  ;;  %4082 = vpow2.f32 %v3304_v28  ;;  %v2162_v20 = vadd.f32 1.0, %v4055_v37 }
 0x29d   : > { %v4059_v54 = vpop.eup %4058  ;;  %4084 = vrcp.f32 %v2163_v3  ;;  %v2165_v57 = vadd.f32 1.0, %v4057_v48  ;;  %v6233_v48 = vpop.permute.xlu0 %2413 }
 0x29e   : > { %2563 = vrot.lane.b32.xlu1 %v4053_v34, %s4299_s26  ;;  %v4061_v22 = vpop.eup %4060  ;;  %2557 = vrot.lane.b32.xlu0 %v4059_v54, %s4299_s26  ;;  %4086 = vpow2.f32 %v3307_v50  ;;  %6894 = vst [vmem:[#allocation12_spill] sm:$0xff] %v6233_v48 }
 0x29f   : > { %v4063_v45 = vpop.eup %4062  ;;  %4088 = vtanh.f32 %v6219_v41 }
 0x2a0   : > { %v4065_v2 = vpop.eup %4064  ;;  %4090 = vrcp.f32 %v2160_v30  ;;  %v2164_v50 = vadd.f32 1.0, %v4063_v45  ;;  %v2516_v30 = vpop.permute.xlu1 %2515 }
 0x2a1   : > { %v4067_v32 = vpop.eup %4066  ;;  %4092 = vpow2.f32 %v3306_v61  ;;  %v2167_v39 = vadd.f32 1.0, %v4065_v2 }
 0x2a2   : > { %2567 = vrot.lane.b32.xlu1 %v4061_v22, %s4299_s26  ;;  %v4069_v28 = vpop.eup %4068  ;;  %2561 = vrot.lane.b32.xlu0 %v4067_v32, %s4299_s26  ;;  %4094 = vrcp.f32 %v2165_v57 }
 0x2a3   : > { %v6230_v34 = vpop.eup %4070  ;;  %4096 = vpow2.f32 %v3309_v36 }
 0x2a4   : > { %v4073_v3 = vpop.eup %4072  ;;  %4098 = vrcp.f32 %v2162_v20  ;;  %v2607_v37 = vmul.f32 %v6230_v34, %v2512_v9  ;;  %v3312_v9 = vmul.f32 -1.442695, %v6065_v29  ;;  %v2520_v32 = vpop.permute.xlu1 %2519  ;;  %v3311_v20 = vmul.f32 -1.442695, %v6067_v51 }
 0x2a5   : > { %v4075_v31 = vpop.eup %4074  ;;  %4100 = vpow2.f32 %v3308_v35  ;;  %v2169_v22 = vadd.f32 1.0, %v4073_v3 }
 0x2a6   : > { %2571 = vrot.lane.b32.xlu1 %v4069_v28, %s4299_s26  ;;  %v4077_v54 = vpop.eup %4076  ;;  %2565 = vrot.lane.b32.xlu0 %v4075_v31, %s4299_s26  ;;  %4102 = vrcp.f32 %v2167_v39  ;;  %v2514_v28 = vpop.permute.xlu0 %2513 }
 0x2a7   : > { %v6239_v61 = vpop.eup %4078  ;;  %4104 = vrcp.f32 %v2164_v50  ;;  %v2166_v45 = vadd.f32 1.0, %v4077_v54 }
 0x2a8   : > { %v4081_v57 = vpop.eup %4080  ;;  %v2609_v2 = vmul.f32 %v6239_v61, %v2516_v30  ;;  %4106 = vpow2.f32 %v3310_v15  ;;  %v2524_v29 = vpop.permute.xlu1 %2523 }
 0x2a9   : > { %v4083_v36 = vpop.eup %4082  ;;  %4108 = vrcp.f32 %v2169_v22 }
 0x2aa   : > { %2671 = vrot.lane.b32.xlu1 %v2607_v37, %s4299_s26  ;;  %2569 = vrot.lane.b32.xlu0 %v4081_v57, %s4299_s26  ;;  %v6244_v63 = vpop.eup %4084  ;;  %4110 = vrcp.f32 %v2166_v45  ;;  %v2168_v50 = vadd.f32 1.0, %v4083_v36  ;;  %v2518_v22 = vpop.permute.xlu0 %2517 }
 0x2ab   : > { %v4087_v35 = vpop.eup %4086  ;;  %v2611_v3 = vmul.f32 %v6244_v63, %v2520_v32  ;;  %4112 = vpow2.f32 %v3312_v9 }
 0x2ac   : > { %v4089_v39 = vpop.eup %4088  ;;  %v2171_v54 = vadd.f32 1.0, %v4087_v35  ;;  %4114 = vpow2.f32 %v3311_v20  ;;  %v2528_v36 = vpop.permute.xlu1 %2527 }
 0x2ad   : > { %v6249_v31 = vpop.eup %4090  ;;  %4116 = vrcp.f32 %v2168_v50 }
 0x2ae   : > { %2675 = vrot.lane.b32.xlu1 %v2609_v2, %s4299_s26  ;;  %2573 = vrot.lane.b32.xlu0 %v4089_v39, %s4299_s26  ;;  %v4093_v37 = vpop.eup %4092  ;;  %v2608_v15 = vmul.f32 %v6249_v31, %v2514_v28  ;;  %4118 = vrcp.f32 %v2171_v54  ;;  %v2522_v35 = vpop.permute.xlu0 %2521 }
 0x2af   : > { %v6253_v51 = vpop.eup %4094  ;;  %v2170_v2 = vadd.f32 1.0, %v4093_v37 }
 0x2b0   : > { %v4097_v30 = vpop.eup %4096  ;;  %v2613_v57 = vmul.f32 %v6253_v51, %v2524_v29 }
 0x2b1   : > { %v6257_v45 = vpop.eup %4098  ;;  %v2173_v20 = vadd.f32 1.0, %v4097_v30  ;;  %4120 = vrcp.f32 %v2170_v2  ;;  %v2532_v29 = vpop.permute.xlu1 %2531 }
 0x2b2   : > { %2679 = vrot.lane.b32.xlu1 %v2611_v3, %s4299_s26  ;;  %2673 = vrot.lane.b32.xlu0 %v2608_v15, %s4299_s26  ;;  %v4101_v9 = vpop.eup %4100  ;;  %v2610_v28 = vmul.f32 %v6257_v45, %v2518_v22  ;;  %v2526_v30 = vpop.permute.xlu0 %2525 }
 0x2b3   : > { %v6261_v32 = vpop.eup %4102  ;;  %v2172_v50 = vadd.f32 1.0, %v4101_v9  ;;  %4122 = vrcp.f32 %v2173_v20 }
 0x2b4   : > { %v2615_v39 = vmul.f32 %v6261_v32, %v2528_v36  ;;  %v6265_v3 = vpop.eup %4104 }
 0x2b5   : > { %v4107_v37 = vpop.eup %4106  ;;  %v2612_v15 = vmul.f32 %v6265_v3, %v2522_v35  ;;  %4124 = vrcp.f32 %v2172_v50 }
 0x2b6   : > { %2683 = vrot.lane.b32.xlu1 %v2613_v57, %s4299_s26  ;;  %2677 = vrot.lane.b32.xlu0 %v2610_v28, %s4299_s26  ;;  %v6269_v54 = vpop.eup %4108  ;;  %v2174_v36 = vadd.f32 1.0, %v4107_v37  ;;  %v3313_v28 = vmul.f32 -1.442695, %v6087_v44  ;;  %v2530_v20 = vpop.permute.xlu0 %2529  ;;  %v3314_v37 = vmul.f32 -1.442695, %v6096_v0 }
 0x2b7   : > { %v2617_v22 = vmul.f32 %v6269_v54, %v2532_v29  ;;  %v6273_v57 = vpop.eup %4110 }
 0x2b8   : > { %v4113_v2 = vpop.eup %4112  ;;  %4126 = vrcp.f32 %v2174_v36 }
 0x2b9   : > { %v4115_v9 = vpop.eup %4114  ;;  %v2176_v35 = vadd.f32 1.0, %v4113_v2  ;;  %4128 = vpow2.f32 %v3313_v28 }
 0x2ba   : > { %2687 = vrot.lane.b32.xlu1 %v2615_v39, %s4299_s26  ;;  %2681 = vrot.lane.b32.xlu0 %v2612_v15, %s4299_s26  ;;  %v2614_v39 = vmul.f32 %v6273_v57, %v2526_v30  ;;  %v6280_v29 = vpop.eup %4116  ;;  %v2175_v38 = vadd.f32 1.0, %v4115_v9  ;;  %v2534_v48 = vpop.permute.xlu0 %2533 }
 0x2bb   : > { %v6282_v50 = vpop.eup %4118  ;;  %v2616_v15 = vmul.f32 %v6280_v29, %v2530_v20  ;;  %4130 = vrcp.f32 %v2176_v35 }
 0x2bc   : > { %4132 = vrcp.f32 %v2175_v38 }
 0x2bd   : > { %4134 = vpow2.f32 %v3314_v37 }
 0x2be   : > { %2691 = vrot.lane.b32.xlu1 %v2617_v22, %s4299_s26  ;;  %2685 = vrot.lane.b32.xlu0 %v2614_v39, %s4299_s26  ;;  %v6288_v30 = vpop.eup %4120  ;;  %v2538_v0 = vpop.permute.xlu0 %2537 }
 0x2bf   : > { %v2536_v22 = vpop.permute.xlu1 %2535  ;;  %v2618_v36 = vmul.f32 %v6288_v30, %v2534_v48 }
 0x2c0   : > { %v2619_v44 = vmul.f32 %v6282_v50, %v2536_v22  ;;  %v6292_v2 = vpop.eup %4122 }
 0x2c2   : > { %2689 = vrot.lane.b32.xlu0 %v2616_v15, %s4299_s26  ;;  %2695 = vrot.lane.b32.xlu1 %v2619_v44, %s4299_s26  ;;  %v6296_v39 = vpop.eup %4124 }
 0x2c3   : > { %v2620_v20 = vmul.f32 %v6296_v39, %v2538_v0 }
 0x2c5   : > { %v2542_v38 = vpop.permute.xlu0 %2541  ;;  %v6301_v35 = vpop.eup %4126 }
 0x2c6   : > { %2693 = vrot.lane.b32.xlu0 %v2618_v36, %s4299_s26  ;;  %v2622_v48 = vmul.f32 %v6301_v35, %v2542_v38  ;;  %v4129_v37 = vpop.eup %4128 }
 0x2c7   : > { %v2540_v9 = vpop.permute.xlu1 %2539  ;;  %v2177_v44 = vadd.f32 1.0, %v4129_v37 }
 0x2c8   : > { %v2621_v28 = vmul.f32 %v6292_v2, %v2540_v9  ;;  %v6305_v15 = vpop.eup %4130 }
 0x2c9   : > { %v6307_v22 = vpop.eup %4132  ;;  %4136 = vrcp.f32 %v2177_v44 }
 0x2ca   : > { %2699 = vrot.lane.b32.xlu1 %v2621_v28, %s4299_s26  ;;  %2697 = vrot.lane.b32.xlu0 %v2620_v20, %s4299_s26  ;;  %v4135_v9 = vpop.eup %4134  ;;  %v3315_v20 = vmul.f32 -1.442695, %v6120_v10 }
 0x2cb   : > { %v2178_v38 = vadd.f32 1.0, %v4135_v9 }
 0x2cc   : > { %4138 = vpow2.f32 %v3315_v20  ;;  %v3320_v20 = vmul.f32 -1.442695, %v6182_v46 }
 0x2cd   : > { %4140 = vrcp.f32 %v2178_v38 }
 0x2ce   : > { %2701 = vrot.lane.b32.xlu0 %v2622_v48, %s4299_s26 }
 0x2d3   : > { %v2546_v36 = vpop.permute.xlu0 %2545 }
 0x2d4   : > { %v2624_v0 = vmul.f32 %v6305_v15, %v2546_v36  ;;  %v2544_v28 = vpop.permute.xlu1 %2543  ;;  %v3319_v36 = vmul.f32 -1.442695, %v6146_v47  ;;  %v3323_v47 = vmul.f32 -1.442695, %v6172_v18  ;;  %v3324_v18 = vmul.f32 -1.442695, %v6207_v60 }
 0x2d5   : > { %v2623_v53 = vmul.f32 %v6307_v22, %v2544_v28 }
 0x2d6   : > { %2705 = vrot.lane.b32.xlu0 %v2624_v0, %s4299_s26  ;;  %v6314_v48 = vpop.eup %4136  ;;  %4142 = vpow2.f32 %v3319_v36  ;;  %v3317_v0 = vmul.f32 -1.442695, %v6142_v62 }
 0x2d7   : > { %2703 = vrot.lane.b32.xlu1 %v2623_v53, %s4299_s26  ;;  %v3321_v53 = vmul.f32 -1.442695, %v6160_v17  ;;  %v3316_v17 = vmul.f32 -1.442695, %v6124_v1  ;;  %v3318_v1 = vmul.f32 -1.442695, %v6167_v8 }
 0x2d9   : > { %v4139_v52 = vpop.eup %4138 }
 0x2da   : > { %v6319_v28 = vpop.eup %4140  ;;  %v2179_v9 = vadd.f32 1.0, %v4139_v52  ;;  %v3325_v52 = vmul.f32 -1.442695, %v6186_v23 }
 0x2dc   : > { %4144 = vrcp.f32 %v2179_v9 }
 0x2dd   : > { %4146 = vpow2.f32 %v3321_v53 }
 0x2de   : > { %4148 = vpow2.f32 %v3317_v0 }
 0x2df   : > { %4150 = vpow2.f32 %v3320_v20  ;;  %v3326_v20 = vmul.f32 -1.442695, %v6219_v41 }
 0x2e0   : > { %4152 = vpow2.f32 %v3323_v47 }
 0x2e3   : > { %v4143_v38 = vpop.eup %4142 }
 0x2e4   : > { %v2548_v37 = vpop.permute.xlu1 %2547  ;;  %v2183_v36 = vadd.f32 1.0, %v4143_v38 }
 0x2e5   : > { %v2625_v56 = vmul.f32 %v6314_v48, %v2548_v37 }
 0x2e7   : > { %2707 = vrot.lane.b32.xlu1 %v2625_v56, %s4299_s26  ;;  %v3322_v56 = vmul.f32 -1.442695, %v6196_v6 }
 0x2e8   : > { %v2550_v10 = vpop.permute.xlu0 %2549 }
 0x2e9   : > { %v2626_v44 = vmul.f32 %v6319_v28, %v2550_v10  ;;  %4154 = vpow2.f32 %v3322_v56  ;;  %v6330_v37 = vpop.eup %4144 }
 0x2ea   : > { %4156 = vpow2.f32 %v3325_v52  ;;  %v4147_v10 = vpop.eup %4146 }
 0x2eb   : > { %2709 = vrot.lane.b32.xlu0 %v2626_v44, %s4299_s26  ;;  %4158 = vpow2.f32 %v3316_v17  ;;  %v2185_v6 = vadd.f32 1.0, %v4147_v10  ;;  %v4149_v23 = vpop.eup %4148 }
 0x2ec   : > { %4160 = vrcp.f32 %v2183_v36  ;;  %v4151_v44 = vpop.eup %4150  ;;  %v2181_v9 = vadd.f32 1.0, %v4149_v23 }
 0x2ed   : > { %4162 = vpow2.f32 %v3324_v18  ;;  %v4153_v53 = vpop.eup %4152  ;;  %v2184_v0 = vadd.f32 1.0, %v4151_v44 }
 0x2ee   : > { %4164 = vrcp.f32 %v2185_v6  ;;  %v2187_v56 = vadd.f32 1.0, %v4153_v53 }
 0x2ef   : > { %4166 = vpow2.f32 %v3318_v1 }
 0x2f0   : > { %4168 = vrcp.f32 %v2181_v9 }
 0x2f1   : > { %4170 = vrcp.f32 %v2184_v0 }
 0x2f2   : > { %4172 = vpow2.f32 %v3326_v20 }
 0x2f3   : > { %4174 = vrcp.f32 %v2187_v56 }
 0x2f6   : > { %v4155_v47 = vpop.eup %4154 }
 0x2f7   : > { %v4157_v60 = vpop.eup %4156  ;;  %v2186_v38 = vadd.f32 1.0, %v4155_v47 }
 0x2f8   : > { %v4159_v17 = vpop.eup %4158  ;;  %v2189_v36 = vadd.f32 1.0, %v4157_v60 }
 0x2f9   : > { %4176 = vrcp.f32 %v2186_v38 }
 0x2fa   : > { %4178 = vrcp.f32 %v2189_v36 }
 0x2fb   : > { %v2552_v62 = vpop.permute.xlu1 %2551 }
 0x2fc   : > { %v2627_v46 = vmul.f32 %v6330_v37, %v2552_v62  ;;  %v6337_v62 = vpop.eup %4160 }
 0x2fd   : > { %v4163_v18 = vpop.eup %4162 }
 0x2fe   : > { %2711 = vrot.lane.b32.xlu1 %v2627_v46, %s4299_s26  ;;  %v2180_v46 = vadd.f32 1.0, %v4159_v17  ;;  %v6341_v6 = vpop.eup %4164  ;;  %v2188_v1 = vadd.f32 1.0, %v4163_v18 }
 0x2ff   : > { %v2554_v41 = vpop.permute.xlu0 %2553  ;;  %v4167_v9 = vpop.eup %4166 }
 0x300   : > { %4180 = vrcp.f32 %v2180_v46  ;;  %v6345_v0 = vpop.eup %4168  ;;  %v2182_v60 = vadd.f32 1.0, %v4167_v9 }
 0x301   : > { %v6348_v56 = vpop.eup %4170  ;;  %4182 = vrcp.f32 %v2188_v1 }
 0x302   : > { %v4173_v38 = vpop.eup %4172  ;;  %4184 = vrcp.f32 %v2182_v60 }
 0x303   : > { %v6351_v36 = vpop.eup %4174  ;;  %v2190_v18 = vadd.f32 1.0, %v4173_v38 }
 0x305   : > { %4186 = vrcp.f32 %v2190_v18  ;;  %v2451_v18 = vmul.f32 %v6244_v63, %v6075_v12 }
 0x308   : > { %v2556_v52 = vpop.permute.xlu1 %2555 }
 0x309   : > { %v2629_v47 = vmul.f32 %v6345_v0, %v2556_v52  ;;  %v6356_v52 = vpop.eup %4176 }
 0x30a   : > { %v6361_v1 = vpop.eup %4178 }
 0x30c   : > { %v2560_v8 = vpop.permute.xlu1 %2559 }
 0x30d   : > { %v2631_v10 = vmul.f32 %v6337_v62, %v2560_v8  ;;  %v6368_v60 = vpop.eup %4180 }
 0x30f   : > { %2719 = vrot.lane.b32.xlu1 %v2631_v10, %s4299_s26 }
 0x310   : > { %v2564_v23 = vpop.permute.xlu1 %2563  ;;  %v2558_v53 = vpop.permute.xlu0 %2557 }
 0x311   : > { %v2633_v44 = vmul.f32 %v6341_v6, %v2564_v23  ;;  %v2447_v23 = vmul.f32 %v6230_v34, %v6060_v33  ;;  %v2449_v33 = vmul.f32 %v6239_v61, %v6071_v58 }
 0x313   : > { %2723 = vrot.lane.b32.xlu1 %v2633_v44, %s4299_s26 }
 0x314   : > { %v2568_v20 = vpop.permute.xlu1 %2567  ;;  %v2562_v17 = vpop.permute.xlu0 %2561 }
 0x315   : > { %v2632_v8 = vmul.f32 %v6348_v56, %v2562_v17  ;;  %v2635_v46 = vmul.f32 %v6351_v36, %v2568_v20 }
 0x317   : > { %2715 = vrot.lane.b32.xlu1 %v2629_v47, %s4299_s26  ;;  %2721 = vrot.lane.b32.xlu0 %v2632_v8, %s4299_s26  ;;  %v2628_v8 = vmul.f32 %v6368_v60, %v2554_v41  ;;  %v2448_v41 = vmul.f32 %v6249_v31, %v6077_v5  ;;  %v2450_v5 = vmul.f32 %v6257_v45, %v6081_v27 }
 0x318   : > { %v2572_v10 = vpop.permute.xlu1 %2571  ;;  %v2566_v44 = vpop.permute.xlu0 %2565  ;;  %v2452_v27 = vmul.f32 %v6265_v3, %v6090_v11  ;;  %v2454_v11 = vmul.f32 %v6273_v57, %v6098_v25 }
 0x319   : > { %v2634_v9 = vmul.f32 %v6356_v52, %v2566_v44  ;;  %v2637_v17 = vmul.f32 %v6361_v1, %v2572_v10  ;;  %v6378_v10 = vpop.eup %4182 }
 0x31b   : > { %2727 = vrot.lane.b32.xlu1 %v2635_v46, %s4299_s26  ;;  %2725 = vrot.lane.b32.xlu0 %v2634_v9, %s4299_s26 }
 0x31c   : > { %v2672_v47 = vpop.permute.xlu1 %2671  ;;  %v2570_v38 = vpop.permute.xlu0 %2569 }
 0x31d   : > { %v6365_v20 = vadd.f32 %v2672_v47, %v2447_v23  ;;  %v2636_v58 = vmul.f32 %v6378_v10, %v2570_v38 }
 0x31f   : > { %4188 = vtanh.f32 %v6365_v20  ;;  %2731 = vrot.lane.b32.xlu1 %v2637_v17, %s4299_s26  ;;  %2713 = vrot.lane.b32.xlu0 %v2628_v8, %s4299_s26  ;;  %v6389_v17 = vpop.eup %4184 }
 0x320   : > { %v2676_v46 = vpop.permute.xlu1 %2675  ;;  %v2574_v23 = vpop.permute.xlu0 %2573  ;;  %v2630_v12 = vmul.f32 %v6389_v17, %v2558_v53 }
 0x321   : > { %v6375_v44 = vadd.f32 %v2676_v46, %v2449_v33  ;;  %v2453_v33 = vmul.f32 %v6253_v51, %v6079_v26  ;;  %v2455_v26 = vmul.f32 %v6261_v32, %v6083_v16  ;;  %v2457_v16 = vmul.f32 %v6269_v54, %v6092_v21 }
 0x323   : > { %4190 = vtanh.f32 %v6375_v44  ;;  %2729 = vrot.lane.b32.xlu0 %v2636_v58, %s4299_s26  ;;  %v6403_v58 = vpop.eup %4186 }
 0x324   : > { %v2680_v9 = vpop.permute.xlu1 %2679  ;;  %v2674_v8 = vpop.permute.xlu0 %2673 }
 0x325   : > { %v6384_v47 = vadd.f32 %v2680_v9, %v2451_v18  ;;  %v6395_v46 = vadd.f32 %v2674_v8, %v2448_v41  ;;  %v2638_v41 = vmul.f32 %v6403_v58, %v2574_v23 }
 0x327   : > { %4192 = vtanh.f32 %v6384_v47  ;;  %2717 = vrot.lane.b32.xlu0 %v2630_v12, %s4299_s26 }
 0x328   : > { %v2684_v38 = vpop.permute.xlu1 %2683  ;;  %4194 = vtanh.f32 %v6395_v46  ;;  %v2678_v9 = vpop.permute.xlu0 %2677 }
 0x329   : > { %v6397_v18 = vadd.f32 %v2684_v38, %v2453_v33  ;;  %v6409_v33 = vadd.f32 %v2678_v9, %v2450_v5 }
 0x32b   : > { %4196 = vtanh.f32 %v6397_v18  ;;  %2733 = vrot.lane.b32.xlu0 %v2638_v41, %s4299_s26 }
 0x32c   : > { %v4189_v53 = vpop.eup %4188  ;;  %v2688_v8 = vpop.permute.xlu1 %2687  ;;  %4198 = vtanh.f32 %v6409_v33 }
 0x32d   : > { %v6411_v38 = vadd.f32 %v2688_v8, %v2455_v26  ;;  %2863 = vrot.lane.b32.xlu1 %v4189_v53, %s4299_s26  ;;  %v2682_v12 = vpop.permute.xlu0 %2681  ;;  %v2456_v8 = vmul.f32 %v6280_v29, %v6103_v7  ;;  %v2458_v7 = vmul.f32 %v6288_v30, %v6107_v55  ;;  %v2460_v55 = vmul.f32 %v6296_v39, %v6112_v42 }
 0x32e   : > { %v6421_v5 = vadd.f32 %v2682_v12, %v2452_v27 }
 0x32f   : > { %4200 = vtanh.f32 %v6411_v38 }
 0x330   : > { %v4191_v23 = vpop.eup %4190  ;;  %v2692_v26 = vpop.permute.xlu1 %2691  ;;  %4202 = vtanh.f32 %v6421_v5 }
 0x331   : > { %v6423_v9 = vadd.f32 %v2692_v26, %v2457_v16  ;;  %2867 = vrot.lane.b32.xlu1 %v4191_v23, %s4299_s26  ;;  %v2686_v53 = vpop.permute.xlu0 %2685  ;;  %v2459_v16 = vmul.f32 %v6282_v50, %v6100_v19 }
 0x332   : > { %v6430_v41 = vadd.f32 %v2686_v53, %v2454_v11 }
 0x333   : > { %4204 = vtanh.f32 %v6423_v9 }
 0x334   : > { %v4193_v21 = vpop.eup %4192  ;;  %6895 = vst [vmem:[#allocation16_spill] sm:$0xff] %v6430_v41  ;;  %4206 = vtanh.f32 %v6430_v41  ;;  %v2696_v26 = vpop.permute.xlu1 %2695 }
 0x335   : > { %2871 = vrot.lane.b32.xlu1 %v4193_v21, %s4299_s26  ;;  %v4195_v27 = vpop.eup %4194  ;;  %v2690_v25 = vpop.permute.xlu0 %2689  ;;  %v6441_v11 = vadd.f32 %v2696_v26, %v2459_v16 }
 0x336   : > { %v6438_v23 = vadd.f32 %v2690_v25, %v2456_v8  ;;  %2865 = vrot.lane.b32.xlu0 %v4195_v27, %s4299_s26  ;;  %v2461_v8 = vmul.f32 %v6292_v2, %v6105_v43  ;;  %v2462_v43 = vmul.f32 %v6301_v35, %v6115_v13 }
 0x338   : > { %v4197_v12 = vpop.eup %4196  ;;  %6896 = vst [vmem:[#allocation17_spill] sm:$0xff] %v6438_v23  ;;  %4208 = vtanh.f32 %v6438_v23 }
 0x339   : > { %2875 = vrot.lane.b32.xlu1 %v4197_v12, %s4299_s26  ;;  %v4199_v53 = vpop.eup %4198  ;;  %4210 = vtanh.f32 %v6441_v11  ;;  %v2694_v19 = vpop.permute.xlu0 %2693 }
 0x33a   : > { %v6450_v25 = vadd.f32 %v2694_v19, %v2458_v7  ;;  %2869 = vrot.lane.b32.xlu0 %v4199_v53, %s4299_s26 }
 0x33c   : > { %v4201_v21 = vpop.eup %4200  ;;  %v2700_v27 = vpop.permute.xlu1 %2699  ;;  %4212 = vtanh.f32 %v6450_v25 }
 0x33d   : > { %2879 = vrot.lane.b32.xlu1 %v4201_v21, %s4299_s26  ;;  %v6457_v16 = vadd.f32 %v2700_v27, %v2461_v8  ;;  %v4203_v12 = vpop.eup %4202  ;;  %v2698_v26 = vpop.permute.xlu0 %2697  ;;  %v6897_v21 = vld [vmem:[#allocation4_spill] sm:$0xff] }
 0x33e   : > { %v6459_v41 = vadd.f32 %v2698_v26, %v2460_v55  ;;  %2873 = vrot.lane.b32.xlu0 %v4203_v12, %s4299_s26  ;;  %v2464_v8 = vmul.f32 %v6305_v15, %v6897_v21  ;;  %v6898_v55 = vld [vmem:[#allocation2_spill] sm:$0xff] }
 0x33f   : > { %4214 = vtanh.f32 %v6457_v16 }
 0x340   : > { %v4205_v23 = vpop.eup %4204  ;;  %4216 = vtanh.f32 %v6459_v41 }
 0x341   : > { %2883 = vrot.lane.b32.xlu1 %v4205_v23, %s4299_s26  ;;  %v4207_v42 = vpop.eup %4206  ;;  %v2702_v7 = vpop.permute.xlu0 %2701  ;;  %v2463_v23 = vmul.f32 %v6307_v22, %v6898_v55 }
 0x342   : > { %v6467_v53 = vadd.f32 %v2702_v7, %v2462_v43  ;;  %2877 = vrot.lane.b32.xlu0 %v4207_v42, %s4299_s26 }
 0x344   : > { %4218 = vtanh.f32 %v6467_v53 }
 0x345   : > { %v4209_v19 = vpop.eup %4208 }
 0x346   : > { %v4211_v27 = vpop.eup %4210  ;;  %2881 = vrot.lane.b32.xlu0 %v4209_v19, %s4299_s26 }
 0x347   : > { %2887 = vrot.lane.b32.xlu1 %v4211_v27, %s4299_s26  ;;  %v6899_v27 = vld [vmem:[#allocation3_spill] sm:$0xff] }
 0x348   : > { %v2706_v13 = vpop.permute.xlu0 %2705  ;;  %v2465_v55 = vmul.f32 %v6314_v48, %v6899_v27 }
 0x349   : > { %v6477_v12 = vadd.f32 %v2706_v13, %v2464_v8  ;;  %v2704_v26 = vpop.permute.xlu1 %2703  ;;  %v4213_v42 = vpop.eup %4212 }
 0x34a   : > { %v6479_v43 = vadd.f32 %v2704_v26, %v2463_v23  ;;  %2885 = vrot.lane.b32.xlu0 %v4213_v42, %s4299_s26  ;;  %v2466_v42 = vmul.f32 %v6319_v28, %v6134_v59 }
 0x34b   : > { %4220 = vtanh.f32 %v6477_v12 }
 0x34c   : > { %4222 = vtanh.f32 %v6479_v43  ;;  %v4215_v7 = vpop.eup %4214 }
 0x34d   : > { %2891 = vrot.lane.b32.xlu1 %v4215_v7, %s4299_s26  ;;  %v4217_v21 = vpop.eup %4216 }
 0x34e   : > { %2889 = vrot.lane.b32.xlu0 %v4217_v21, %s4299_s26 }
 0x351   : > { %v4219_v19 = vpop.eup %4218 }
 0x352   : > { %2893 = vrot.lane.b32.xlu0 %v4219_v19, %s4299_s26 }
 0x358   : > { %v4221_v8 = vpop.eup %4220 }
 0x359   : > { %v4223_v23 = vpop.eup %4222  ;;  %2897 = vrot.lane.b32.xlu0 %v4221_v8, %s4299_s26  ;;  %v2708_v13 = vpop.permute.xlu1 %2707  ;;  %v6901_v8 = vld [vmem:[#allocation6_spill] sm:$0xff] }
 0x35a   : > { %v6490_v26 = vadd.f32 %v2708_v13, %v2465_v55  ;;  %2895 = vrot.lane.b32.xlu1 %v4223_v23, %s4299_s26  ;;  %v2467_v55 = vmul.f32 %v6330_v37, %v6901_v8 }
 0x35c   : > { %4224 = vtanh.f32 %v6490_v26 }
 0x35d   : > { %v2710_v7 = vpop.permute.xlu0 %2709 }
 0x35e   : > { %v6496_v21 = vadd.f32 %v2710_v7, %v2466_v42  ;;  %v2471_v42 = vmul.f32 %v6337_v62, %v6156_v14 }
 0x360   : > { %6900 = vst [vmem:[#allocation9_spill] sm:$0xff] %v6496_v21  ;;  %4226 = vtanh.f32 %v6496_v21 }
 0x369   : > { %v4225_v19 = vpop.eup %4224 }
 0x36a   : > { %2899 = vrot.lane.b32.xlu1 %v4225_v19, %s4299_s26  ;;  %v2473_v19 = vmul.f32 %v6341_v6, %v6177_v4  ;;  %v2475_v4 = vmul.f32 %v6351_v36, %v6198_v40 }
 0x36d   : > { %v4227_v27 = vpop.eup %4226 }
 0x36e   : > { %2901 = vrot.lane.b32.xlu0 %v4227_v27, %s4299_s26 }
 0x370   : > { %v2712_v23 = vpop.permute.xlu1 %2711 }
 0x371   : > { %v6503_v13 = vadd.f32 %v2712_v23, %v2467_v55  ;;  %v6904_v55 = vld [vmem:[#allocation10_spill] sm:$0xff] }
 0x372   : > { %v2469_v23 = vmul.f32 %v6345_v0, %v6904_v55  ;;  %v2474_v55 = vmul.f32 %v6356_v52, %v6210_v24 }
 0x373   : > { %6902 = vst [vmem:[#allocation13_spill] sm:$0xff] %v6503_v13  ;;  %4228 = vtanh.f32 %v6503_v13 }
 0x380   : > { %v4229_v59 = vpop.eup %4228 }
 0x381   : > { %v2720_v7 = vpop.permute.xlu1 %2719  ;;  %2903 = vrot.lane.b32.xlu1 %v4229_v59, %s4299_s26  ;;  %v2472_v59 = vmul.f32 %v6348_v56, %v6191_v49  ;;  %v6907_v49 = vld [vmem:[#allocation7_spill] sm:$0xff] }
 0x382   : > { %v6509_v21 = vadd.f32 %v2720_v7, %v2471_v42 }
 0x384   : > { %4230 = vtanh.f32 %v6509_v21 }
 0x385   : > { %v2724_v27 = vpop.permute.xlu1 %2723 }
 0x386   : > { %v6514_v8 = vadd.f32 %v2724_v27, %v2473_v19 }
 0x388   : > { %6903 = vst [vmem:[#allocation14_spill] sm:$0xff] %v6514_v8  ;;  %4232 = vtanh.f32 %v6514_v8 }
 0x389   : > { %v2716_v13 = vpop.permute.xlu1 %2715  ;;  %v2722_v42 = vpop.permute.xlu0 %2721 }
 0x38a   : > { %v6519_v14 = vadd.f32 %v2716_v13, %v2469_v23  ;;  %v6526_v7 = vadd.f32 %v2722_v42, %v2472_v59  ;;  %v2477_v23 = vmul.f32 %v6361_v1, %v6907_v49  ;;  %v6910_v42 = vld [vmem:[#allocation11_spill] sm:$0xff] }
 0x38b   : > { %v2468_v24 = vmul.f32 %v6368_v60, %v6910_v42 }
 0x38c   : > { %6905 = vst [vmem:[#allocation18_spill] sm:$0xff] %v6519_v14  ;;  %4234 = vtanh.f32 %v6519_v14 }
 0x38d   : > { %v2728_v19 = vpop.permute.xlu1 %2727  ;;  %4236 = vtanh.f32 %v6526_v7  ;;  %v2726_v13 = vpop.permute.xlu0 %2725 }
 0x38e   : > { %v6528_v27 = vadd.f32 %v2728_v19, %v2475_v4  ;;  %v6536_v8 = vadd.f32 %v2726_v13, %v2474_v55  ;;  %v6912_v55 = vld [vmem:[#allocation8_spill] sm:$0xff] }
 0x38f   : > { %v2476_v13 = vmul.f32 %v6378_v10, %v6912_v55 }
 0x390   : > { %6906 = vst [vmem:[#allocation21_spill] sm:$0xff] %v6528_v27  ;;  %4238 = vtanh.f32 %v6528_v27  ;;  %6908 = vst [vmem:[#allocation22_spill] sm:$0xff] %v6536_v8 }
 0x391   : > { %v4231_v14 = vpop.eup %4230  ;;  %v2732_v40 = vpop.permute.xlu1 %2731  ;;  %4240 = vtanh.f32 %v6536_v8 }
 0x392   : > { %v6538_v59 = vadd.f32 %v2732_v40, %v2477_v23  ;;  %2911 = vrot.lane.b32.xlu1 %v4231_v14, %s4299_s26  ;;  %v2714_v4 = vpop.permute.xlu0 %2713 }
 0x393   : > { %v6545_v27 = vadd.f32 %v2714_v4, %v2468_v24  ;;  %v6914_v24 = vld [vmem:[#allocation12_spill] sm:$0xff] }
 0x394   : > { %6909 = vst [vmem:[#allocation15_spill] sm:$0xff] %v6538_v59  ;;  %4242 = vtanh.f32 %v6538_v59  ;;  %v2478_v4 = vmul.f32 %v6403_v58, %v6914_v24 }
 0x395   : > { %v4233_v19 = vpop.eup %4232  ;;  %6911 = vst [vmem:[#allocation19_spill] sm:$0xff] %v6545_v27  ;;  %4244 = vtanh.f32 %v6545_v27 }
 0x396   : > { %2915 = vrot.lane.b32.xlu1 %v4233_v19, %s4299_s26  ;;  %v2730_v49 = vpop.permute.xlu0 %2729 }
 0x397   : > { %v6551_v23 = vadd.f32 %v2730_v49, %v2476_v13  ;;  %v6915_v13 = vld [vmem:[#allocation5_spill] sm:$0xff] }
 0x398   : > { %v2470_v49 = vmul.f32 %v6389_v17, %v6915_v13 }
 0x399   : > { %v4235_v14 = vpop.eup %4234  ;;  %6913 = vst [vmem:[#allocation20_spill] sm:$0xff] %v6551_v23  ;;  %4246 = vtanh.f32 %v6551_v23 }
 0x39a   : > { %2907 = vrot.lane.b32.xlu1 %v4235_v14, %s4299_s26  ;;  %v4237_v40 = vpop.eup %4236  ;;  %v2718_v42 = vpop.permute.xlu0 %2717 }
 0x39b   : > { %2913 = vrot.lane.b32.xlu0 %v4237_v40, %s4299_s26  ;;  %v6565_v23 = vadd.f32 %v2718_v42, %v2470_v49 }
 0x39d   : > { %v4239_v59 = vpop.eup %4238 }
 0x39e   : > { %2919 = vrot.lane.b32.xlu1 %v4239_v59, %s4299_s26  ;;  %v4241_v55 = vpop.eup %4240  ;;  %v2734_v27 = vpop.permute.xlu0 %2733 }
 0x39f   : > { %v2864_v19 = vpop.permute.xlu1 %2863  ;;  %v6561_v14 = vadd.f32 %v2734_v27, %v2478_v4  ;;  %2917 = vrot.lane.b32.xlu0 %v4241_v55, %s4299_s26 }
 0x3a0   : > { %v2959_v24 = vmul.f32 %v6230_v34, %v2864_v19 }
 0x3a1   : > { %v4243_v8 = vpop.eup %4242  ;;  %4248 = vtanh.f32 %v6561_v14 }
 0x3a2   : > { %2923 = vrot.lane.b32.xlu1 %v4243_v8, %s4299_s26  ;;  %v4245_v40 = vpop.eup %4244  ;;  %4250 = vtanh.f32 %v6565_v23 }
 0x3a3   : > { %v2868_v59 = vpop.permute.xlu1 %2867  ;;  %2905 = vrot.lane.b32.xlu0 %v4245_v40, %s4299_s26 }
 0x3a4   : > { %v2961_v55 = vmul.f32 %v6239_v61, %v2868_v59 }
 0x3a6   : > { %3023 = vrot.lane.b32.xlu1 %v2959_v24, %s4300_s22  ;;  %v4247_v4 = vpop.eup %4246 }
 0x3a7   : > { %v2872_v27 = vpop.permute.xlu1 %2871  ;;  %2921 = vrot.lane.b32.xlu0 %v4247_v4, %s4299_s26 }
 0x3a8   : > { %v2866_v8 = vpop.permute.xlu0 %2865  ;;  %v2963_v13 = vmul.f32 %v6244_v63, %v2872_v27 }
 0x3a9   : > { %v2960_v63 = vmul.f32 %v6249_v31, %v2866_v8 }
 0x3aa   : > { %3027 = vrot.lane.b32.xlu1 %v2961_v55, %s4300_s22 }
 0x3ab   : > { %v2876_v42 = vpop.permute.xlu1 %2875 }
 0x3ac   : > { %v2870_v34 = vpop.permute.xlu0 %2869  ;;  %v2965_v40 = vmul.f32 %v6253_v51, %v2876_v42 }
 0x3ad   : > { %v2962_v51 = vmul.f32 %v6257_v45, %v2870_v34 }
 0x3ae   : > { %3031 = vrot.lane.b32.xlu1 %v2963_v13, %s4300_s22  ;;  %v4249_v49 = vpop.eup %4248 }
 0x3af   : > { %v2880_v19 = vpop.permute.xlu1 %2879  ;;  %2925 = vrot.lane.b32.xlu0 %v4249_v49, %s4299_s26  ;;  %v4251_v61 = vpop.eup %4250 }
 0x3b0   : > { %v2874_v24 = vpop.permute.xlu0 %2873  ;;  %v2967_v59 = vmul.f32 %v6261_v32, %v2880_v19 }
 0x3b1   : > { %v2964_v19 = vmul.f32 %v6265_v3, %v2874_v24 }
 0x3b2   : > { %3035 = vrot.lane.b32.xlu1 %v2965_v40, %s4300_s22 }
 0x3b3   : > { %2909 = vrot.lane.b32.xlu0 %v4251_v61, %s4299_s26  ;;  %v2884_v4 = vpop.permute.xlu1 %2883 }
 0x3b4   : > { %v2878_v27 = vpop.permute.xlu0 %2877  ;;  %v2969_v55 = vmul.f32 %v6269_v54, %v2884_v4 }
 0x3b5   : > { %v2966_v8 = vmul.f32 %v6273_v57, %v2878_v27 }
 0x3b6   : > { %3039 = vrot.lane.b32.xlu1 %v2967_v59, %s4300_s22 }
 0x3b7   : > { %3025 = vrot.lane.b32.xlu0 %v2960_v63, %s4300_s22 }
 0x3b8   : > { %v2882_v32 = vpop.permute.xlu0 %2881 }
 0x3b9   : > { %v2888_v42 = vpop.permute.xlu1 %2887 }
 0x3ba   : > { %3043 = vrot.lane.b32.xlu1 %v2969_v55, %s4300_s22  ;;  %v2971_v13 = vmul.f32 %v6282_v50, %v2888_v42  ;;  %v2968_v50 = vmul.f32 %v6280_v29, %v2882_v32 }
 0x3bb   : > { %3029 = vrot.lane.b32.xlu0 %v2962_v51, %s4300_s22 }
 0x3bc   : > { %v2886_v45 = vpop.permute.xlu0 %2885 }
 0x3bd   : > { %v2970_v49 = vmul.f32 %v6288_v30, %v2886_v45 }
 0x3be   : > { %3047 = vrot.lane.b32.xlu1 %v2971_v13, %s4300_s22 }
 0x3bf   : > { %v2892_v31 = vpop.permute.xlu1 %2891  ;;  %3033 = vrot.lane.b32.xlu0 %v2964_v19, %s4300_s22 }
 0x3c0   : > { %v2973_v54 = vmul.f32 %v6292_v2, %v2892_v31  ;;  %v2890_v34 = vpop.permute.xlu0 %2889 }
 0x3c1   : > { %v2972_v2 = vmul.f32 %v6296_v39, %v2890_v34 }
 0x3c2   : > { %3051 = vrot.lane.b32.xlu1 %v2973_v54, %s4300_s22 }
 0x3c3   : > { %3037 = vrot.lane.b32.xlu0 %v2966_v8, %s4300_s22 }
 0x3c4   : > { %v2894_v57 = vpop.permute.xlu0 %2893 }
 0x3c5   : > { %v2974_v24 = vmul.f32 %v6301_v35, %v2894_v57 }
 0x3c7   : > { %3041 = vrot.lane.b32.xlu0 %v2968_v50, %s4300_s22 }
 0x3cb   : > { %3045 = vrot.lane.b32.xlu0 %v2970_v49, %s4300_s22  ;;  %v2898_v29 = vpop.permute.xlu0 %2897 }
 0x3cc   : > { %v2896_v3 = vpop.permute.xlu1 %2895  ;;  %v2976_v61 = vmul.f32 %v6305_v15, %v2898_v29 }
 0x3cd   : > { %v2975_v40 = vmul.f32 %v6307_v22, %v2896_v3 }
 0x3cf   : > { %3055 = vrot.lane.b32.xlu1 %v2975_v40, %s4300_s22  ;;  %3049 = vrot.lane.b32.xlu0 %v2972_v2, %s4300_s22 }
 0x3d3   : > { %3053 = vrot.lane.b32.xlu0 %v2974_v24, %s4300_s22 }
 0x3d7   : > { %3057 = vrot.lane.b32.xlu0 %v2976_v61, %s4300_s22 }
 0x3dc   : > { %v2900_v30 = vpop.permute.xlu1 %2899 }
 0x3dd   : > { %v2977_v59 = vmul.f32 %v6314_v48, %v2900_v30  ;;  %v6916_v30 = vld [vmem:[#allocation16_spill] sm:$0xff] }
 0x3df   : > { %3059 = vrot.lane.b32.xlu1 %v2977_v59, %s4300_s22 }
 0x3e0   : > { %v2902_v39 = vpop.permute.xlu0 %2901 }
 0x3e1   : > { %v2978_v22 = vmul.f32 %v6319_v28, %v2902_v39  ;;  %v6917_v39 = vld [vmem:[#allocation17_spill] sm:$0xff] }
 0x3e3   : > { %3061 = vrot.lane.b32.xlu0 %v2978_v22, %s4300_s22 }
 0x3f3   : > { %v2904_v4 = vpop.permute.xlu1 %2903 }
 0x3f4   : > { %v2979_v35 = vmul.f32 %v6330_v37, %v2904_v4 }
 0x3f6   : > { %3063 = vrot.lane.b32.xlu1 %v2979_v35, %s4300_s22 }
 0x404   : > { %v2912_v63 = vpop.permute.xlu1 %2911 }
 0x405   : > { %v2983_v15 = vmul.f32 %v6337_v62, %v2912_v63 }
 0x407   : > { %3071 = vrot.lane.b32.xlu1 %v2983_v15, %s4300_s22 }
 0x408   : > { %v2916_v27 = vpop.permute.xlu1 %2915 }
 0x409   : > { %v2985_v48 = vmul.f32 %v6341_v6, %v2916_v27 }
 0x40b   : > { %3075 = vrot.lane.b32.xlu1 %v2985_v48, %s4300_s22 }
 0x40c   : > { %v2908_v55 = vpop.permute.xlu1 %2907 }
 0x40d   : > { %v2981_v28 = vmul.f32 %v6345_v0, %v2908_v55  ;;  %v2914_v51 = vpop.permute.xlu0 %2913 }
 0x40e   : > { %v2984_v37 = vmul.f32 %v6348_v56, %v2914_v51  ;;  %v6918_v51 = vld [vmem:[#allocation9_spill] sm:$0xff] }
 0x40f   : > { %3067 = vrot.lane.b32.xlu1 %v2981_v28, %s4300_s22 }
 0x410   : > { %v2920_v42 = vpop.permute.xlu1 %2919  ;;  %3073 = vrot.lane.b32.xlu0 %v2984_v37, %s4300_s22 }
 0x411   : > { %v2987_v13 = vmul.f32 %v6351_v36, %v2920_v42  ;;  %v2918_v62 = vpop.permute.xlu0 %2917  ;;  %v6919_v42 = vld [vmem:[#allocation13_spill] sm:$0xff] }
 0x412   : > { %v2986_v6 = vmul.f32 %v6356_v52, %v2918_v62 }
 0x413   : > { %3079 = vrot.lane.b32.xlu1 %v2987_v13, %s4300_s22 }
 0x414   : > { %v2924_v32 = vpop.permute.xlu1 %2923  ;;  %3077 = vrot.lane.b32.xlu0 %v2986_v6, %s4300_s22  ;;  %v6920_v6 = vld [vmem:[#allocation14_spill] sm:$0xff] }
 0x415   : > { %v2989_v19 = vmul.f32 %v6361_v1, %v2924_v32  ;;  %v2906_v0 = vpop.permute.xlu0 %2905 }
 0x416   : > { %v2980_v56 = vmul.f32 %v6368_v60, %v2906_v0  ;;  %v6921_v0 = vld [vmem:[#allocation18_spill] sm:$0xff] }
 0x417   : > { %3083 = vrot.lane.b32.xlu1 %v2989_v19, %s4300_s22 }
 0x418   : > { %v3024_v36 = vpop.permute.xlu1 %3023  ;;  %3065 = vrot.lane.b32.xlu0 %v2980_v56, %s4300_s22 }
 0x419   : > { %v3119_v52 = vsel %vm1431_vm8, %v3024_v36, %v6365_v20  ;;  %v2922_v1 = vpop.permute.xlu0 %2921 }
 0x41a   : > { %3152 = vst.msk [vmem:[%s6634_s28] sm:$0xff] %vm3151_vm10, %v3119_v52  ;;  %v2988_v31 = vmul.f32 %v6378_v10, %v2922_v1  ;;  %v6922_v1 = vld [vmem:[#allocation21_spill] sm:$0xff] }
 0x41c   : > { %v3028_v54 = vpop.permute.xlu1 %3027  ;;  %3081 = vrot.lane.b32.xlu0 %v2988_v31, %s4300_s22 }
 0x41d   : > { %v3121_v8 = vsel %vm1431_vm8, %v3028_v54, %v6375_v44 }
 0x41e   : > { %3154 = vst.msk [vmem:[%s6634_s28 + $0x10] sm:$0xff] %vm3151_vm10, %v3121_v8  ;;  %v6923_v8 = vld [vmem:[#allocation22_spill] sm:$0xff] }
 0x420   : > { %v3032_v60 = vpop.permute.xlu1 %3031 }
 0x421   : > { %v3123_v20 = vsel %vm1431_vm8, %v3032_v60, %v6384_v47  ;;  %v2926_v45 = vpop.permute.xlu0 %2925 }
 0x422   : > { %3156 = vst.msk [vmem:[%s6634_s28 + $0x20] sm:$0xff] %vm3151_vm10, %v3123_v20  ;;  %v2990_v40 = vmul.f32 %v6403_v58, %v2926_v45  ;;  %v6924_v45 = vld [vmem:[#allocation15_spill] sm:$0xff] }
 0x424   : > { %v3036_v50 = vpop.permute.xlu1 %3035 }
 0x425   : > { %v3125_v10 = vsel %vm1431_vm8, %v3036_v50, %v6397_v18  ;;  %v2910_v44 = vpop.permute.xlu0 %2909 }
 0x426   : > { %3158 = vst.msk [vmem:[%s6634_s28 + $0x30] sm:$0xff] %vm3151_vm10, %v3125_v10  ;;  %v2982_v34 = vmul.f32 %v6389_v17, %v2910_v44  ;;  %v6925_v10 = vld [vmem:[#allocation19_spill] sm:$0xff] }
 0x428   : > { %v3040_v49 = vpop.permute.xlu1 %3039  ;;  %3069 = vrot.lane.b32.xlu0 %v2982_v34, %s4300_s22 }
 0x429   : > { %v3127_v3 = vsel %vm1431_vm8, %v3040_v49, %v6411_v38  ;;  %v3026_v47 = vpop.permute.xlu0 %3025  ;;  %v6926_v49 = vld [vmem:[#allocation20_spill] sm:$0xff] }
 0x42a   : > { %3160 = vst.msk [vmem:[%s6634_s28 + $0x40] sm:$0xff] %vm3151_vm10, %v3127_v3  ;;  %v3120_v18 = vsel %vm1431_vm8, %v3026_v47, %v6395_v46 }
 0x42b   : > { %3153 = vst.msk [vmem:[%s6634_s28 + $0x8] sm:$0xff] %vm3151_vm10, %v3120_v18 }
 0x42c   : > { %v3044_v2 = vpop.permute.xlu1 %3043  ;;  %3085 = vrot.lane.b32.xlu0 %v2990_v40, %s4300_s22 }
 0x42d   : > { %v3129_v17 = vsel %vm1431_vm8, %v3044_v2, %v6423_v9  ;;  %v3030_v38 = vpop.permute.xlu0 %3029 }
 0x42e   : > { %3162 = vst.msk [vmem:[%s6634_s28 + $0x50] sm:$0xff] %vm3151_vm10, %v3129_v17  ;;  %v3122_v57 = vsel %vm1431_vm8, %v3030_v38, %v6409_v33 }
 0x42f   : > { %3155 = vst.msk [vmem:[%s6634_s28 + $0x18] sm:$0xff] %vm3151_vm10, %v3122_v57 }
 0x430   : > { %v3048_v58 = vpop.permute.xlu1 %3047 }
 0x431   : > { %v3131_v46 = vsel %vm1431_vm8, %v3048_v58, %v6441_v11  ;;  %v3034_v9 = vpop.permute.xlu0 %3033 }
 0x432   : > { %3164 = vst.msk [vmem:[%s6634_s28 + $0x60] sm:$0xff] %vm3151_vm10, %v3131_v46  ;;  %v3124_v24 = vsel %vm1431_vm8, %v3034_v9, %v6421_v5 }
 0x433   : > { %3157 = vst.msk [vmem:[%s6634_s28 + $0x28] sm:$0xff] %vm3151_vm10, %v3124_v24 }
 0x434   : > { %v3052_v29 = vpop.permute.xlu1 %3051 }
 0x435   : > { %v3133_v33 = vsel %vm1431_vm8, %v3052_v29, %v6457_v16  ;;  %v3038_v61 = vpop.permute.xlu0 %3037 }
 0x436   : > { %3166 = vst.msk [vmem:[%s6634_s28 + $0x70] sm:$0xff] %vm3151_vm10, %v3133_v33  ;;  %v3126_v11 = vsel %vm1431_vm8, %v3038_v61, %v6916_v30 }
 0x437   : > { %3159 = vst.msk [vmem:[%s6634_s28 + $0x38] sm:$0xff] %vm3151_vm10, %v3126_v11 }
 0x439   : > { %v3042_v59 = vpop.permute.xlu0 %3041 }
 0x43a   : > { %v3128_v5 = vsel %vm1431_vm8, %v3042_v59, %v6917_v39 }
 0x43b   : > { %3161 = vst.msk [vmem:[%s6634_s28 + $0x48] sm:$0xff] %vm3151_vm10, %v3128_v5 }
 0x43d   : > { %v3046_v22 = vpop.permute.xlu0 %3045 }
 0x43e   : > { %v3130_v16 = vsel %vm1431_vm8, %v3046_v22, %v6450_v25 }
 0x43f   : > { %3163 = vst.msk [vmem:[%s6634_s28 + $0x58] sm:$0xff] %vm3151_vm10, %v3130_v16 }
 0x441   : > { %v3056_v4 = vpop.permute.xlu1 %3055  ;;  %v3050_v63 = vpop.permute.xlu0 %3049 }
 0x442   : > { %v3135_v35 = vsel %vm1431_vm8, %v3056_v4, %v6479_v43  ;;  %v3132_v15 = vsel %vm1431_vm8, %v3050_v63, %v6459_v41 }
 0x443   : > { %3168 = vst.msk [vmem:[%s6634_s28 + $0x80] sm:$0xff] %vm3151_vm10, %v3135_v35  ;;  %3165 = vst.msk [vmem:[%s6634_s28 + $0x68] sm:$0xff] %vm3151_vm10, %v3132_v15 }
 0x445   : > { %v3054_v27 = vpop.permute.xlu0 %3053 }
 0x446   : > { %v3134_v25 = vsel %vm1431_vm8, %v3054_v27, %v6467_v53 }
 0x447   : > { %3167 = vst.msk [vmem:[%s6634_s28 + $0x78] sm:$0xff] %vm3151_vm10, %v3134_v25 }
 0x449   : > { %v3058_v48 = vpop.permute.xlu0 %3057 }
 0x44a   : > { %v3136_v43 = vsel %vm1431_vm8, %v3058_v48, %v6477_v12 }
 0x44b   : > { %3169 = vst.msk [vmem:[%s6634_s28 + $0x88] sm:$0xff] %vm3151_vm10, %v3136_v43 }
 0x451   : > { %v3060_v55 = vpop.permute.xlu1 %3059 }
 0x452   : > { %v3137_v41 = vsel %vm1431_vm8, %v3060_v55, %v6490_v26 }
 0x453   : > { %3170 = vst.msk [vmem:[%s6634_s28 + $0x90] sm:$0xff] %vm3151_vm10, %v3137_v41 }
 0x455   : > { %v3062_v28 = vpop.permute.xlu0 %3061 }
 0x456   : > { %v3138_v53 = vsel %vm1431_vm8, %v3062_v28, %v6918_v51 }
 0x457   : > { %3171 = vst.msk [vmem:[%s6634_s28 + $0x98] sm:$0xff] %vm3151_vm10, %v3138_v53 }
 0x468   : > { %v3064_v37 = vpop.permute.xlu1 %3063 }
 0x469   : > { %v3139_v12 = vsel %vm1431_vm8, %v3064_v37, %v6919_v42 }
 0x46a   : > { %3172 = vst.msk [vmem:[%s6634_s28 + $0xa0] sm:$0xff] %vm3151_vm10, %v3139_v12 }
 0x479   : > { %v3072_v13 = vpop.permute.xlu1 %3071 }
 0x47a   : > { %v3143_v26 = vsel %vm1431_vm8, %v3072_v13, %v6509_v21 }
 0x47b   : > { %3176 = vst.msk [vmem:[%s6634_s28 + $0xc0] sm:$0xff] %vm3151_vm10, %v3143_v26 }
 0x47d   : > { %v3076_v62 = vpop.permute.xlu1 %3075 }
 0x47e   : > { %v3145_v32 = vsel %vm1431_vm8, %v3076_v62, %v6920_v6 }
 0x47f   : > { %3178 = vst.msk [vmem:[%s6634_s28 + $0xd0] sm:$0xff] %vm3151_vm10, %v3145_v32 }
 0x481   : > { %v3068_v19 = vpop.permute.xlu1 %3067 }
 0x482   : > { %v3141_v56 = vsel %vm1431_vm8, %v3068_v19, %v6921_v0  ;;  %v3074_v36 = vpop.permute.xlu0 %3073 }
 0x483   : > { %3174 = vst.msk [vmem:[%s6634_s28 + $0xb0] sm:$0xff] %vm3151_vm10, %v3141_v56  ;;  %v3144_v21 = vsel %vm1431_vm8, %v3074_v36, %v6526_v7 }
 0x484   : > { %3177 = vst.msk [vmem:[%s6634_s28 + $0xc8] sm:$0xff] %vm3151_vm10, %v3144_v21 }
 0x485   : > { %v3080_v52 = vpop.permute.xlu1 %3079 }
 0x486   : > { %v3147_v31 = vsel %vm1431_vm8, %v3080_v52, %v6922_v1  ;;  %v3078_v54 = vpop.permute.xlu0 %3077 }
 0x487   : > { %3180 = vst.msk [vmem:[%s6634_s28 + $0xe0] sm:$0xff] %vm3151_vm10, %v3147_v31  ;;  %v3146_v60 = vsel %vm1431_vm8, %v3078_v54, %v6923_v8 }
 0x488   : > { %3179 = vst.msk [vmem:[%s6634_s28 + $0xd8] sm:$0xff] %vm3151_vm10, %v3146_v60 }
 0x489   : > { %v3084_v20 = vpop.permute.xlu1 %3083 }
 0x48a   : > { %v3149_v7 = vsel %vm1431_vm8, %v3084_v20, %v6924_v45  ;;  %v3066_v50 = vpop.permute.xlu0 %3065 }
 0x48b   : > { %3182 = vst.msk [vmem:[%s6634_s28 + $0xf0] sm:$0xff] %vm3151_vm10, %v3149_v7  ;;  %v3140_v44 = vsel %vm1431_vm8, %v3066_v50, %v6925_v10 }
 0x48c   : > { %3173 = vst.msk [vmem:[%s6634_s28 + $0xa8] sm:$0xff] %vm3151_vm10, %v3140_v44 }
 0x48e   : > { %v3082_v34 = vpop.permute.xlu0 %3081 }
 0x48f   : > { %v3148_v3 = vsel %vm1431_vm8, %v3082_v34, %v6926_v49 }
 0x490   : > { %3181 = vst.msk [vmem:[%s6634_s28 + $0xe8] sm:$0xff] %vm3151_vm10, %v3148_v3 }
 0x49a   : > { %v3070_v47 = vpop.permute.xlu0 %3069 }
 0x49b   : > { %v3142_v40 = vsel %vm1431_vm8, %v3070_v47, %v6565_v23 }
 0x49c   : > { %3175 = vst.msk [vmem:[%s6634_s28 + $0xb8] sm:$0xff] %vm3151_vm10, %v3142_v40 }
 0x49e   : > { %v3086_v18 = vpop.permute.xlu0 %3085 }
 0x49f   : > { %v3150_v2 = vsel %vm1431_vm8, %v3086_v18, %v6561_v14 }
 0x4a0   : > { %3183 = vst.msk [vmem:[%s6634_s28 + $0xf8] sm:$0xff] %vm3151_vm10, %v3150_v2 }
 0x4a1 PF: > { %s14_s15 = sadd.s32 1, %s4289_s15  }
 0x4a2   : > { %p11_p4 = scmp.ge.s32.totalorder %s14_s15, 4  }
 0x4a4   :  { %13 = sbr.rel (!%p11_p4) target bundleno = 1 (0x1), region = 69 }

</bundles_post_ra>
